<compile_context>
chip_gen: v5e
topology: v5e:2x2
jax: 0.10.0
libtpu: 0.0.40
codegen_flags: <defaults>
</compile_context>

<pallas_src>
import jax
import jax.numpy as jnp
from jax.experimental import pallas as pl
from jax.experimental.pallas import tpu as pltpu

# ---- module hyper-parameters (from the PyTorch script) ----------------------
HIDDEN_SIZE = 40
PREDICTION_HORIZON = 7
DAYS_ET = 1
DAYS_P = 1
DAYS_SWL = 1
INPUT_SIZE = DAYS_P + DAYS_ET + DAYS_SWL + PREDICTION_HORIZON + PREDICTION_HORIZON  # 17
NUM_LSTM_LAYERS = 1
OUTPUT_SIZE = 7  # days_elapsed_trSWL

# ---- TPU-friendly padded sizes ----------------------------------------------
H_PAD = 128   # hidden padded so each gate occupies exactly one 128-lane span
O_PAD = 128   # lane-dense output width (real 7 columns sliced off in wrapper)
B_PAD = 8     # batch padded to the sublane multiple


def lstm_fc_kernel(x_ref, wih_ref, whh_ref, b_ref, wfc_ref, bfc_ref,
                   out_ref, xg_sc, hs_sc):
    """Whole-sequence LSTM + FC + sigmoid, single kernel invocation.

    x_ref  : (T*B_PAD, I)        time-major, batch-padded input
    wih_ref: (I, 4*H_PAD)        gate-aligned, zero-padded input weights
    whh_ref: (H_PAD, 4*H_PAD)    gate-aligned, zero-padded recurrent weights
    b_ref  : (1, 4*H_PAD)        b_ih + b_hh, gate-aligned, zero-padded
    wfc_ref: (H_PAD, O_PAD)      fc1 weight (transposed), zero-padded
    bfc_ref: (1, O_PAD)          fc1 bias, zero-padded
    out_ref: (T*B_PAD, O_PAD)    lane-dense output slab
    xg_sc  : (T*B_PAD, 4*H_PAD)  scratch: precomputed x @ W_ih + b
    hs_sc  : (T*B_PAD, H_PAD)    scratch: hidden states for all time steps
    """
    TB = x_ref.shape[0]
    T = TB // B_PAD

    # (1) hoisted, batched input projection for ALL time steps (one MXU issue).
    xg_sc[...] = (jnp.dot(x_ref[...], wih_ref[...],
                          preferred_element_type=jnp.float32) + b_ref[...])

    whh = whh_ref[...]                                   # (H_PAD, 4*H_PAD), hoisted

    h = jnp.zeros((B_PAD, H_PAD), jnp.float32)
    c = jnp.zeros((B_PAD, H_PAD), jnp.float32)

    # (2) time recurrence -- only h @ W_hh is serial.  T is known at trace time,
    #     so the loop is fully unrolled; all slices below are vreg-aligned
    #     (B_PAD = 8 sublanes, gate spans are multiples of 128 lanes).
    for t in range(T):
        g_all = xg_sc[t * B_PAD:(t + 1) * B_PAD, :] + jnp.dot(
            h, whh, preferred_element_type=jnp.float32)   # (B_PAD, 4*H_PAD)

        # PyTorch gate ordering: i, f, g, o -- each in its own 128-lane span.
        i_g = jax.nn.sigmoid(g_all[:, 0 * H_PAD:1 * H_PAD])
        f_g = jax.nn.sigmoid(g_all[:, 1 * H_PAD:2 * H_PAD])
        g_g = jnp.tanh(g_all[:, 2 * H_PAD:3 * H_PAD])
        o_g = jax.nn.sigmoid(g_all[:, 3 * H_PAD:4 * H_PAD])

        c = f_g * c + i_g * g_g
        h = o_g * jnp.tanh(c)
        hs_sc[t * B_PAD:(t + 1) * B_PAD, :] = h

    # (3) hoisted, batched FC + sigmoid over all steps; one lane-dense store.
    y = (jnp.dot(hs_sc[...], wfc_ref[...],
                 preferred_element_type=jnp.float32) + bfc_ref[...])
    out_ref[...] = jax.nn.sigmoid(y)


def net_forward(x, params):
    """x: (B, T, INPUT_SIZE) float32 -> (B, T, OUTPUT_SIZE) float32."""
    B, T, I = x.shape
    assert I == INPUT_SIZE and B <= B_PAD
    f32 = jnp.float32
    H, O = HIDDEN_SIZE, OUTPUT_SIZE

    # ---- one-time layout plumbing (outside the kernel) ----------------------
    x_tm = jnp.transpose(x, (1, 0, 2))                                  # (T, B, I)
    x_pad = jnp.zeros((T, B_PAD, I), f32).at[:, :B, :].set(x_tm)
    x_flat = x_pad.reshape(T * B_PAD, I)

    # Gate-aligned padded weights: gate k lives in lanes [k*H_PAD, k*H_PAD + H).
    wih_pad = jnp.zeros((I, 4 * H_PAD), f32)
    whh_pad = jnp.zeros((H_PAD, 4 * H_PAD), f32)
    b_pad = jnp.zeros((1, 4 * H_PAD), f32)
    b_sum = params["b_ih"] + params["b_hh"]
    for k in range(4):
        wih_pad = wih_pad.at[:, k * H_PAD:k * H_PAD + H].set(
            params["w_ih"][k * H:(k + 1) * H, :].T)
        whh_pad = whh_pad.at[:H, k * H_PAD:k * H_PAD + H].set(
            params["w_hh"][k * H:(k + 1) * H, :].T)
        b_pad = b_pad.at[0, k * H_PAD:k * H_PAD + H].set(b_sum[k * H:(k + 1) * H])

    wfc_pad = jnp.zeros((H_PAD, O_PAD), f32).at[:H, :O].set(params["w_fc"].T)
    bfc_pad = jnp.zeros((1, O_PAD), f32).at[0, :O].set(params["b_fc"])

    # ---- single kernel invocation: everything resident in VMEM --------------
    out_flat = pl.pallas_call(
        lstm_fc_kernel,
        out_shape=jax.ShapeDtypeStruct((T * B_PAD, O_PAD), f32),
        in_specs=[pl.BlockSpec(memory_space=pltpu.MemorySpace.VMEM)] * 6,
        out_specs=pl.BlockSpec(memory_space=pltpu.MemorySpace.VMEM),
        scratch_shapes=[
            pltpu.VMEM((T * B_PAD, 4 * H_PAD), f32),   # x @ W_ih + b, all steps
            pltpu.VMEM((T * B_PAD, H_PAD), f32),       # hidden states, all steps
        ],
    )(x_flat, wih_pad, whh_pad, b_pad, wfc_pad, bfc_pad)

    out = out_flat.reshape(T, B_PAD, O_PAD)[:, :B, :O]                  # (T, B, O)
    return jnp.transpose(out, (1, 0, 2))                                # (B, T, O)


def init_params(key):
    """Deterministic parameter init mirroring the PyTorch module's shapes.

    LSTM params use U(-1/sqrt(H), 1/sqrt(H)) (PyTorch default); fc1 bias uses
    N(0, 1) per the explicit nn.init.normal_ in __init__.
    """
    ks = jax.random.split(key, 6)
    bound = 1.0 / jnp.sqrt(jnp.float32(HIDDEN_SIZE))
    params = {
        "w_ih": jax.random.uniform(ks[0], (4 * HIDDEN_SIZE, INPUT_SIZE),
                                   jnp.float32, -bound, bound),
        "w_hh": jax.random.uniform(ks[1], (4 * HIDDEN_SIZE, HIDDEN_SIZE),
                                   jnp.float32, -bound, bound),
        "b_ih": jax.random.uniform(ks[2], (4 * HIDDEN_SIZE,),
                                   jnp.float32, -bound, bound),
        "b_hh": jax.random.uniform(ks[3], (4 * HIDDEN_SIZE,),
                                   jnp.float32, -bound, bound),
        "w_fc": jax.random.uniform(ks[4], (OUTPUT_SIZE, HIDDEN_SIZE),
                                   jnp.float32, -bound, bound),
        "b_fc": jax.random.normal(ks[5], (OUTPUT_SIZE,), jnp.float32),
    }
    return params


def net_forward_ref(x, params):
    """Pure-JAX reference (lax.scan LSTM) for correctness checking."""
    B, T, _ = x.shape
    wih_t = params["w_ih"].T
    whh_t = params["w_hh"].T
    b = params["b_ih"] + params["b_hh"]

    def step(carry, x_t):
        h, c = carry
        gates = x_t @ wih_t + h @ whh_t + b
        i = jax.nn.sigmoid(gates[:, 0 * HIDDEN_SIZE:1 * HIDDEN_SIZE])
        f = jax.nn.sigmoid(gates[:, 1 * HIDDEN_SIZE:2 * HIDDEN_SIZE])
        g = jnp.tanh(gates[:, 2 * HIDDEN_SIZE:3 * HIDDEN_SIZE])
        o = jax.nn.sigmoid(gates[:, 3 * HIDDEN_SIZE:4 * HIDDEN_SIZE])
        c = f * c + i * g
        h = o * jnp.tanh(c)
        return (h, c), h

    h0 = jnp.zeros((B, HIDDEN_SIZE), jnp.float32)
    c0 = jnp.zeros((B, HIDDEN_SIZE), jnp.float32)
    _, hs = jax.lax.scan(step, (h0, c0), jnp.transpose(x, (1, 0, 2)))
    hs = jnp.transpose(hs, (1, 0, 2))                          # (B, T, H)
    return jax.nn.sigmoid(hs @ params["w_fc"].T + params["b_fc"])


if __name__ == "__main__":
    key = jax.random.PRNGKey(0)
    k_param, k_x = jax.random.split(key)

    B, T = 2, 8
    x = jax.random.normal(k_x, (B, T, INPUT_SIZE), jnp.float32)
    params = init_params(k_param)

    out = net_forward(x, params)
    out = jax.block_until_ready(out)

    ref = net_forward_ref(x, params)
    assert out.shape == (B, T, OUTPUT_SIZE)
    assert jnp.allclose(out, ref, rtol=1e-4, atol=1e-5)

    print("KERNEL_OK")
</pallas_src>

<mosaic_0001>
module attributes {stable_mosaic.version = 11 : i64} {
  func.func @lstm_fc_kernel(%arg0: memref<64x17xf32, #tpu.memory_space<vmem>>, %arg1: memref<17x512xf32, #tpu.memory_space<vmem>>, %arg2: memref<128x512xf32, #tpu.memory_space<vmem>>, %arg3: memref<1x512xf32, #tpu.memory_space<vmem>>, %arg4: memref<128x128xf32, #tpu.memory_space<vmem>>, %arg5: memref<1x128xf32, #tpu.memory_space<vmem>>, %arg6: memref<64x128xf32, #tpu.memory_space<vmem>>, %arg7: memref<64x512xf32, #tpu.memory_space<vmem>>, %arg8: memref<64x128xf32, #tpu.memory_space<vmem>>) attributes {dimension_semantics = [], scalar_prefetch = 0 : i64, scratch_operands = 2 : i64, tpu.core_type = #tpu.core_type<tc>} {
    %c0 = arith.constant 0 : index
    %c0_0 = arith.constant 0 : index
    %0 = vector.load %arg0[%c0, %c0_0] : memref<64x17xf32, #tpu.memory_space<vmem>>, vector<64x17xf32>
    %c0_1 = arith.constant 0 : index
    %c0_2 = arith.constant 0 : index
    %1 = vector.load %arg1[%c0_1, %c0_2] : memref<17x512xf32, #tpu.memory_space<vmem>>, vector<17x512xf32>
    %cst = arith.constant dense<0.000000e+00> : vector<64x512xf32>
    %2 = tpu.matmul %0, %1, %cst {dimension_numbers = #tpu.dot_dimension_numbers<[1], [0], [0], [1], [0, 0, 1, 1], [], []>} : vector<64x17xf32>, vector<17x512xf32>, vector<64x512xf32> -> vector<64x512xf32>
    %c0_3 = arith.constant 0 : index
    %c0_4 = arith.constant 0 : index
    %3 = vector.load %arg3[%c0_3, %c0_4] : memref<1x512xf32, #tpu.memory_space<vmem>>, vector<1x512xf32>
    %4 = vector.broadcast %3 : vector<1x512xf32> to vector<64x512xf32>
    %5 = arith.addf %2, %4 : vector<64x512xf32>
    %c0_5 = arith.constant 0 : index
    %c0_6 = arith.constant 0 : index
    %6 = vector.load %arg7[%c0_5, %c0_6] : memref<64x512xf32, #tpu.memory_space<vmem>>, vector<64x512xf32>
    tpu.vector_store %arg7[%c0_5, %c0_6], %5 {strides = array<i32>} : memref<64x512xf32, #tpu.memory_space<vmem>>, vector<64x512xf32>,
    %c0_7 = arith.constant 0 : index
    %c0_8 = arith.constant 0 : index
    %7 = vector.load %arg2[%c0_7, %c0_8] : memref<128x512xf32, #tpu.memory_space<vmem>>, vector<128x512xf32>
    %cst_9 = arith.constant 0.000000e+00 : f32
    %8 = vector.broadcast %cst_9 : f32 to vector<8x128xf32>
    %cst_10 = arith.constant 0.000000e+00 : f32
    %9 = vector.broadcast %cst_10 : f32 to vector<8x128xf32>
    %c0_11 = arith.constant 0 : index
    %c0_12 = arith.constant 0 : index
    %10 = vector.load %arg7[%c0_11, %c0_12] : memref<64x512xf32, #tpu.memory_space<vmem>>, vector<8x512xf32>
    %cst_13 = arith.constant dense<0.000000e+00> : vector<8x512xf32>
    %11 = tpu.matmul %8, %7, %cst_13 {dimension_numbers = #tpu.dot_dimension_numbers<[1], [0], [0], [1], [0, 0, 1, 1], [], []>} : vector<8x128xf32>, vector<128x512xf32>, vector<8x512xf32> -> vector<8x512xf32>
    %12 = arith.addf %10, %11 : vector<8x512xf32>
    %13 = vector.extract_strided_slice %12 {offsets = [0, 0], sizes = [8, 128], strides = [1, 1]} : vector<8x512xf32> to vector<8x128xf32>
    %14 = arith.negf %13 : vector<8x128xf32>
    %15 = math.exp %14 : vector<8x128xf32>
    %cst_14 = arith.constant 1.000000e+00 : f32
    %16 = vector.broadcast %cst_14 : f32 to vector<8x128xf32>
    %17 = arith.addf %16, %15 : vector<8x128xf32>
    %18 = arith.divf %16, %17 : vector<8x128xf32>
    %19 = vector.extract_strided_slice %12 {offsets = [0, 128], sizes = [8, 128], strides = [1, 1]} : vector<8x512xf32> to vector<8x128xf32>
    %20 = arith.negf %19 : vector<8x128xf32>
    %21 = math.exp %20 : vector<8x128xf32>
    %cst_15 = arith.constant 1.000000e+00 : f32
    %22 = vector.broadcast %cst_15 : f32 to vector<8x128xf32>
    %23 = arith.addf %22, %21 : vector<8x128xf32>
    %24 = arith.divf %22, %23 : vector<8x128xf32>
    %25 = vector.extract_strided_slice %12 {offsets = [0, 256], sizes = [8, 128], strides = [1, 1]} : vector<8x512xf32> to vector<8x128xf32>
    %26 = math.tanh %25 : vector<8x128xf32>
    %27 = vector.extract_strided_slice %12 {offsets = [0, 384], sizes = [8, 128], strides = [1, 1]} : vector<8x512xf32> to vector<8x128xf32>
    %28 = arith.negf %27 : vector<8x128xf32>
    %29 = math.exp %28 : vector<8x128xf32>
    %cst_16 = arith.constant 1.000000e+00 : f32
    %30 = vector.broadcast %cst_16 : f32 to vector<8x128xf32>
    %31 = arith.addf %30, %29 : vector<8x128xf32>
    %32 = arith.divf %30, %31 : vector<8x128xf32>
    %33 = arith.mulf %24, %9 : vector<8x128xf32>
    %34 = arith.mulf %18, %26 : vector<8x128xf32>
    %35 = arith.addf %33, %34 : vector<8x128xf32>
    %36 = math.tanh %35 : vector<8x128xf32>
    %37 = arith.mulf %32, %36 : vector<8x128xf32>
    %c0_17 = arith.constant 0 : index
    %c0_18 = arith.constant 0 : index
    %38 = vector.load %arg8[%c0_17, %c0_18] : memref<64x128xf32, #tpu.memory_space<vmem>>, vector<8x128xf32>
    tpu.vector_store %arg8[%c0_17, %c0_18], %37 {strides = array<i32>} : memref<64x128xf32, #tpu.memory_space<vmem>>, vector<8x128xf32>,
    %c8 = arith.constant 8 : index
    %c0_19 = arith.constant 0 : index
    %39 = vector.load %arg7[%c8, %c0_19] : memref<64x512xf32, #tpu.memory_space<vmem>>, vector<8x512xf32>
    %cst_20 = arith.constant dense<0.000000e+00> : vector<8x512xf32>
    %40 = tpu.matmul %37, %7, %cst_20 {dimension_numbers = #tpu.dot_dimension_numbers<[1], [0], [0], [1], [0, 0, 1, 1], [], []>} : vector<8x128xf32>, vector<128x512xf32>, vector<8x512xf32> -> vector<8x512xf32>
    %41 = arith.addf %39, %40 : vector<8x512xf32>
    %42 = vector.extract_strided_slice %41 {offsets = [0, 0], sizes = [8, 128], strides = [1, 1]} : vector<8x512xf32> to vector<8x128xf32>
    %43 = arith.negf %42 : vector<8x128xf32>
    %44 = math.exp %43 : vector<8x128xf32>
    %cst_21 = arith.constant 1.000000e+00 : f32
    %45 = vector.broadcast %cst_21 : f32 to vector<8x128xf32>
    %46 = arith.addf %45, %44 : vector<8x128xf32>
    %47 = arith.divf %45, %46 : vector<8x128xf32>
    %48 = vector.extract_strided_slice %41 {offsets = [0, 128], sizes = [8, 128], strides = [1, 1]} : vector<8x512xf32> to vector<8x128xf32>
    %49 = arith.negf %48 : vector<8x128xf32>
    %50 = math.exp %49 : vector<8x128xf32>
    %cst_22 = arith.constant 1.000000e+00 : f32
    %51 = vector.broadcast %cst_22 : f32 to vector<8x128xf32>
    %52 = arith.addf %51, %50 : vector<8x128xf32>
    %53 = arith.divf %51, %52 : vector<8x128xf32>
    %54 = vector.extract_strided_slice %41 {offsets = [0, 256], sizes = [8, 128], strides = [1, 1]} : vector<8x512xf32> to vector<8x128xf32>
    %55 = math.tanh %54 : vector<8x128xf32>
    %56 = vector.extract_strided_slice %41 {offsets = [0, 384], sizes = [8, 128], strides = [1, 1]} : vector<8x512xf32> to vector<8x128xf32>
    %57 = arith.negf %56 : vector<8x128xf32>
    %58 = math.exp %57 : vector<8x128xf32>
    %cst_23 = arith.constant 1.000000e+00 : f32
    %59 = vector.broadcast %cst_23 : f32 to vector<8x128xf32>
    %60 = arith.addf %59, %58 : vector<8x128xf32>
    %61 = arith.divf %59, %60 : vector<8x128xf32>
    %62 = arith.mulf %53, %35 : vector<8x128xf32>
    %63 = arith.mulf %47, %55 : vector<8x128xf32>
    %64 = arith.addf %62, %63 : vector<8x128xf32>
    %65 = math.tanh %64 : vector<8x128xf32>
    %66 = arith.mulf %61, %65 : vector<8x128xf32>
    %c8_24 = arith.constant 8 : index
    %c0_25 = arith.constant 0 : index
    %67 = vector.load %arg8[%c8_24, %c0_25] : memref<64x128xf32, #tpu.memory_space<vmem>>, vector<8x128xf32>
    tpu.vector_store %arg8[%c8_24, %c0_25], %66 {strides = array<i32>} : memref<64x128xf32, #tpu.memory_space<vmem>>, vector<8x128xf32>,
    %c16 = arith.constant 16 : index
    %c0_26 = arith.constant 0 : index
    %68 = vector.load %arg7[%c16, %c0_26] : memref<64x512xf32, #tpu.memory_space<vmem>>, vector<8x512xf32>
    %cst_27 = arith.constant dense<0.000000e+00> : vector<8x512xf32>
    %69 = tpu.matmul %66, %7, %cst_27 {dimension_numbers = #tpu.dot_dimension_numbers<[1], [0], [0], [1], [0, 0, 1, 1], [], []>} : vector<8x128xf32>, vector<128x512xf32>, vector<8x512xf32> -> vector<8x512xf32>
    %70 = arith.addf %68, %69 : vector<8x512xf32>
    %71 = vector.extract_strided_slice %70 {offsets = [0, 0], sizes = [8, 128], strides = [1, 1]} : vector<8x512xf32> to vector<8x128xf32>
    %72 = arith.negf %71 : vector<8x128xf32>
    %73 = math.exp %72 : vector<8x128xf32>
    %cst_28 = arith.constant 1.000000e+00 : f32
    %74 = vector.broadcast %cst_28 : f32 to vector<8x128xf32>
    %75 = arith.addf %74, %73 : vector<8x128xf32>
    %76 = arith.divf %74, %75 : vector<8x128xf32>
    %77 = vector.extract_strided_slice %70 {offsets = [0, 128], sizes = [8, 128], strides = [1, 1]} : vector<8x512xf32> to vector<8x128xf32>
    %78 = arith.negf %77 : vector<8x128xf32>
    %79 = math.exp %78 : vector<8x128xf32>
    %cst_29 = arith.constant 1.000000e+00 : f32
    %80 = vector.broadcast %cst_29 : f32 to vector<8x128xf32>
    %81 = arith.addf %80, %79 : vector<8x128xf32>
    %82 = arith.divf %80, %81 : vector<8x128xf32>
    %83 = vector.extract_strided_slice %70 {offsets = [0, 256], sizes = [8, 128], strides = [1, 1]} : vector<8x512xf32> to vector<8x128xf32>
    %84 = math.tanh %83 : vector<8x128xf32>
    %85 = vector.extract_strided_slice %70 {offsets = [0, 384], sizes = [8, 128], strides = [1, 1]} : vector<8x512xf32> to vector<8x128xf32>
    %86 = arith.negf %85 : vector<8x128xf32>
    %87 = math.exp %86 : vector<8x128xf32>
    %cst_30 = arith.constant 1.000000e+00 : f32
    %88 = vector.broadcast %cst_30 : f32 to vector<8x128xf32>
    %89 = arith.addf %88, %87 : vector<8x128xf32>
    %90 = arith.divf %88, %89 : vector<8x128xf32>
    %91 = arith.mulf %82, %64 : vector<8x128xf32>
    %92 = arith.mulf %76, %84 : vector<8x128xf32>
    %93 = arith.addf %91, %92 : vector<8x128xf32>
    %94 = math.tanh %93 : vector<8x128xf32>
    %95 = arith.mulf %90, %94 : vector<8x128xf32>
    %c16_31 = arith.constant 16 : index
    %c0_32 = arith.constant 0 : index
    %96 = vector.load %arg8[%c16_31, %c0_32] : memref<64x128xf32, #tpu.memory_space<vmem>>, vector<8x128xf32>
    tpu.vector_store %arg8[%c16_31, %c0_32], %95 {strides = array<i32>} : memref<64x128xf32, #tpu.memory_space<vmem>>, vector<8x128xf32>,
    %c24 = arith.constant 24 : index
    %c0_33 = arith.constant 0 : index
    %97 = vector.load %arg7[%c24, %c0_33] : memref<64x512xf32, #tpu.memory_space<vmem>>, vector<8x512xf32>
    %cst_34 = arith.constant dense<0.000000e+00> : vector<8x512xf32>
    %98 = tpu.matmul %95, %7, %cst_34 {dimension_numbers = #tpu.dot_dimension_numbers<[1], [0], [0], [1], [0, 0, 1, 1], [], []>} : vector<8x128xf32>, vector<128x512xf32>, vector<8x512xf32> -> vector<8x512xf32>
    %99 = arith.addf %97, %98 : vector<8x512xf32>
    %100 = vector.extract_strided_slice %99 {offsets = [0, 0], sizes = [8, 128], strides = [1, 1]} : vector<8x512xf32> to vector<8x128xf32>
    %101 = arith.negf %100 : vector<8x128xf32>
    %102 = math.exp %101 : vector<8x128xf32>
    %cst_35 = arith.constant 1.000000e+00 : f32
    %103 = vector.broadcast %cst_35 : f32 to vector<8x128xf32>
    %104 = arith.addf %103, %102 : vector<8x128xf32>
    %105 = arith.divf %103, %104 : vector<8x128xf32>
    %106 = vector.extract_strided_slice %99 {offsets = [0, 128], sizes = [8, 128], strides = [1, 1]} : vector<8x512xf32> to vector<8x128xf32>
    %107 = arith.negf %106 : vector<8x128xf32>
    %108 = math.exp %107 : vector<8x128xf32>
    %cst_36 = arith.constant 1.000000e+00 : f32
    %109 = vector.broadcast %cst_36 : f32 to vector<8x128xf32>
    %110 = arith.addf %109, %108 : vector<8x128xf32>
    %111 = arith.divf %109, %110 : vector<8x128xf32>
    %112 = vector.extract_strided_slice %99 {offsets = [0, 256], sizes = [8, 128], strides = [1, 1]} : vector<8x512xf32> to vector<8x128xf32>
    %113 = math.tanh %112 : vector<8x128xf32>
    %114 = vector.extract_strided_slice %99 {offsets = [0, 384], sizes = [8, 128], strides = [1, 1]} : vector<8x512xf32> to vector<8x128xf32>
    %115 = arith.negf %114 : vector<8x128xf32>
    %116 = math.exp %115 : vector<8x128xf32>
    %cst_37 = arith.constant 1.000000e+00 : f32
    %117 = vector.broadcast %cst_37 : f32 to vector<8x128xf32>
    %118 = arith.addf %117, %116 : vector<8x128xf32>
    %119 = arith.divf %117, %118 : vector<8x128xf32>
    %120 = arith.mulf %111, %93 : vector<8x128xf32>
    %121 = arith.mulf %105, %113 : vector<8x128xf32>
    %122 = arith.addf %120, %121 : vector<8x128xf32>
    %123 = math.tanh %122 : vector<8x128xf32>
    %124 = arith.mulf %119, %123 : vector<8x128xf32>
    %c24_38 = arith.constant 24 : index
    %c0_39 = arith.constant 0 : index
    %125 = vector.load %arg8[%c24_38, %c0_39] : memref<64x128xf32, #tpu.memory_space<vmem>>, vector<8x128xf32>
    tpu.vector_store %arg8[%c24_38, %c0_39], %124 {strides = array<i32>} : memref<64x128xf32, #tpu.memory_space<vmem>>, vector<8x128xf32>,
    %c32 = arith.constant 32 : index
    %c0_40 = arith.constant 0 : index
    %126 = vector.load %arg7[%c32, %c0_40] : memref<64x512xf32, #tpu.memory_space<vmem>>, vector<8x512xf32>
    %cst_41 = arith.constant dense<0.000000e+00> : vector<8x512xf32>
    %127 = tpu.matmul %124, %7, %cst_41 {dimension_numbers = #tpu.dot_dimension_numbers<[1], [0], [0], [1], [0, 0, 1, 1], [], []>} : vector<8x128xf32>, vector<128x512xf32>, vector<8x512xf32> -> vector<8x512xf32>
    %128 = arith.addf %126, %127 : vector<8x512xf32>
    %129 = vector.extract_strided_slice %128 {offsets = [0, 0], sizes = [8, 128], strides = [1, 1]} : vector<8x512xf32> to vector<8x128xf32>
    %130 = arith.negf %129 : vector<8x128xf32>
    %131 = math.exp %130 : vector<8x128xf32>
    %cst_42 = arith.constant 1.000000e+00 : f32
    %132 = vector.broadcast %cst_42 : f32 to vector<8x128xf32>
    %133 = arith.addf %132, %131 : vector<8x128xf32>
    %134 = arith.divf %132, %133 : vector<8x128xf32>
    %135 = vector.extract_strided_slice %128 {offsets = [0, 128], sizes = [8, 128], strides = [1, 1]} : vector<8x512xf32> to vector<8x128xf32>
    %136 = arith.negf %135 : vector<8x128xf32>
    %137 = math.exp %136 : vector<8x128xf32>
    %cst_43 = arith.constant 1.000000e+00 : f32
    %138 = vector.broadcast %cst_43 : f32 to vector<8x128xf32>
    %139 = arith.addf %138, %137 : vector<8x128xf32>
    %140 = arith.divf %138, %139 : vector<8x128xf32>
    %141 = vector.extract_strided_slice %128 {offsets = [0, 256], sizes = [8, 128], strides = [1, 1]} : vector<8x512xf32> to vector<8x128xf32>
    %142 = math.tanh %141 : vector<8x128xf32>
    %143 = vector.extract_strided_slice %128 {offsets = [0, 384], sizes = [8, 128], strides = [1, 1]} : vector<8x512xf32> to vector<8x128xf32>
    %144 = arith.negf %143 : vector<8x128xf32>
    %145 = math.exp %144 : vector<8x128xf32>
    %cst_44 = arith.constant 1.000000e+00 : f32
    %146 = vector.broadcast %cst_44 : f32 to vector<8x128xf32>
    %147 = arith.addf %146, %145 : vector<8x128xf32>
    %148 = arith.divf %146, %147 : vector<8x128xf32>
    %149 = arith.mulf %140, %122 : vector<8x128xf32>
    %150 = arith.mulf %134, %142 : vector<8x128xf32>
    %151 = arith.addf %149, %150 : vector<8x128xf32>
    %152 = math.tanh %151 : vector<8x128xf32>
    %153 = arith.mulf %148, %152 : vector<8x128xf32>
    %c32_45 = arith.constant 32 : index
    %c0_46 = arith.constant 0 : index
    %154 = vector.load %arg8[%c32_45, %c0_46] : memref<64x128xf32, #tpu.memory_space<vmem>>, vector<8x128xf32>
    tpu.vector_store %arg8[%c32_45, %c0_46], %153 {strides = array<i32>} : memref<64x128xf32, #tpu.memory_space<vmem>>, vector<8x128xf32>,
    %c40 = arith.constant 40 : index
    %c0_47 = arith.constant 0 : index
    %155 = vector.load %arg7[%c40, %c0_47] : memref<64x512xf32, #tpu.memory_space<vmem>>, vector<8x512xf32>
    %cst_48 = arith.constant dense<0.000000e+00> : vector<8x512xf32>
    %156 = tpu.matmul %153, %7, %cst_48 {dimension_numbers = #tpu.dot_dimension_numbers<[1], [0], [0], [1], [0, 0, 1, 1], [], []>} : vector<8x128xf32>, vector<128x512xf32>, vector<8x512xf32> -> vector<8x512xf32>
    %157 = arith.addf %155, %156 : vector<8x512xf32>
    %158 = vector.extract_strided_slice %157 {offsets = [0, 0], sizes = [8, 128], strides = [1, 1]} : vector<8x512xf32> to vector<8x128xf32>
    %159 = arith.negf %158 : vector<8x128xf32>
    %160 = math.exp %159 : vector<8x128xf32>
    %cst_49 = arith.constant 1.000000e+00 : f32
    %161 = vector.broadcast %cst_49 : f32 to vector<8x128xf32>
    %162 = arith.addf %161, %160 : vector<8x128xf32>
    %163 = arith.divf %161, %162 : vector<8x128xf32>
    %164 = vector.extract_strided_slice %157 {offsets = [0, 128], sizes = [8, 128], strides = [1, 1]} : vector<8x512xf32> to vector<8x128xf32>
    %165 = arith.negf %164 : vector<8x128xf32>
    %166 = math.exp %165 : vector<8x128xf32>
    %cst_50 = arith.constant 1.000000e+00 : f32
    %167 = vector.broadcast %cst_50 : f32 to vector<8x128xf32>
    %168 = arith.addf %167, %166 : vector<8x128xf32>
    %169 = arith.divf %167, %168 : vector<8x128xf32>
    %170 = vector.extract_strided_slice %157 {offsets = [0, 256], sizes = [8, 128], strides = [1, 1]} : vector<8x512xf32> to vector<8x128xf32>
    %171 = math.tanh %170 : vector<8x128xf32>
    %172 = vector.extract_strided_slice %157 {offsets = [0, 384], sizes = [8, 128], strides = [1, 1]} : vector<8x512xf32> to vector<8x128xf32>
    %173 = arith.negf %172 : vector<8x128xf32>
    %174 = math.exp %173 : vector<8x128xf32>
    %cst_51 = arith.constant 1.000000e+00 : f32
    %175 = vector.broadcast %cst_51 : f32 to vector<8x128xf32>
    %176 = arith.addf %175, %174 : vector<8x128xf32>
    %177 = arith.divf %175, %176 : vector<8x128xf32>
    %178 = arith.mulf %169, %151 : vector<8x128xf32>
    %179 = arith.mulf %163, %171 : vector<8x128xf32>
    %180 = arith.addf %178, %179 : vector<8x128xf32>
    %181 = math.tanh %180 : vector<8x128xf32>
    %182 = arith.mulf %177, %181 : vector<8x128xf32>
    %c40_52 = arith.constant 40 : index
    %c0_53 = arith.constant 0 : index
    %183 = vector.load %arg8[%c40_52, %c0_53] : memref<64x128xf32, #tpu.memory_space<vmem>>, vector<8x128xf32>
    tpu.vector_store %arg8[%c40_52, %c0_53], %182 {strides = array<i32>} : memref<64x128xf32, #tpu.memory_space<vmem>>, vector<8x128xf32>,
    %c48 = arith.constant 48 : index
    %c0_54 = arith.constant 0 : index
    %184 = vector.load %arg7[%c48, %c0_54] : memref<64x512xf32, #tpu.memory_space<vmem>>, vector<8x512xf32>
    %cst_55 = arith.constant dense<0.000000e+00> : vector<8x512xf32>
    %185 = tpu.matmul %182, %7, %cst_55 {dimension_numbers = #tpu.dot_dimension_numbers<[1], [0], [0], [1], [0, 0, 1, 1], [], []>} : vector<8x128xf32>, vector<128x512xf32>, vector<8x512xf32> -> vector<8x512xf32>
    %186 = arith.addf %184, %185 : vector<8x512xf32>
    %187 = vector.extract_strided_slice %186 {offsets = [0, 0], sizes = [8, 128], strides = [1, 1]} : vector<8x512xf32> to vector<8x128xf32>
    %188 = arith.negf %187 : vector<8x128xf32>
    %189 = math.exp %188 : vector<8x128xf32>
    %cst_56 = arith.constant 1.000000e+00 : f32
    %190 = vector.broadcast %cst_56 : f32 to vector<8x128xf32>
    %191 = arith.addf %190, %189 : vector<8x128xf32>
    %192 = arith.divf %190, %191 : vector<8x128xf32>
    %193 = vector.extract_strided_slice %186 {offsets = [0, 128], sizes = [8, 128], strides = [1, 1]} : vector<8x512xf32> to vector<8x128xf32>
    %194 = arith.negf %193 : vector<8x128xf32>
    %195 = math.exp %194 : vector<8x128xf32>
    %cst_57 = arith.constant 1.000000e+00 : f32
    %196 = vector.broadcast %cst_57 : f32 to vector<8x128xf32>
    %197 = arith.addf %196, %195 : vector<8x128xf32>
    %198 = arith.divf %196, %197 : vector<8x128xf32>
    %199 = vector.extract_strided_slice %186 {offsets = [0, 256], sizes = [8, 128], strides = [1, 1]} : vector<8x512xf32> to vector<8x128xf32>
    %200 = math.tanh %199 : vector<8x128xf32>
    %201 = vector.extract_strided_slice %186 {offsets = [0, 384], sizes = [8, 128], strides = [1, 1]} : vector<8x512xf32> to vector<8x128xf32>
    %202 = arith.negf %201 : vector<8x128xf32>
    %203 = math.exp %202 : vector<8x128xf32>
    %cst_58 = arith.constant 1.000000e+00 : f32
    %204 = vector.broadcast %cst_58 : f32 to vector<8x128xf32>
    %205 = arith.addf %204, %203 : vector<8x128xf32>
    %206 = arith.divf %204, %205 : vector<8x128xf32>
    %207 = arith.mulf %198, %180 : vector<8x128xf32>
    %208 = arith.mulf %192, %200 : vector<8x128xf32>
    %209 = arith.addf %207, %208 : vector<8x128xf32>
    %210 = math.tanh %209 : vector<8x128xf32>
    %211 = arith.mulf %206, %210 : vector<8x128xf32>
    %c48_59 = arith.constant 48 : index
    %c0_60 = arith.constant 0 : index
    %212 = vector.load %arg8[%c48_59, %c0_60] : memref<64x128xf32, #tpu.memory_space<vmem>>, vector<8x128xf32>
    tpu.vector_store %arg8[%c48_59, %c0_60], %211 {strides = array<i32>} : memref<64x128xf32, #tpu.memory_space<vmem>>, vector<8x128xf32>,
    %c56 = arith.constant 56 : index
    %c0_61 = arith.constant 0 : index
    %213 = vector.load %arg7[%c56, %c0_61] : memref<64x512xf32, #tpu.memory_space<vmem>>, vector<8x512xf32>
    %cst_62 = arith.constant dense<0.000000e+00> : vector<8x512xf32>
    %214 = tpu.matmul %211, %7, %cst_62 {dimension_numbers = #tpu.dot_dimension_numbers<[1], [0], [0], [1], [0, 0, 1, 1], [], []>} : vector<8x128xf32>, vector<128x512xf32>, vector<8x512xf32> -> vector<8x512xf32>
    %215 = arith.addf %213, %214 : vector<8x512xf32>
    %216 = vector.extract_strided_slice %215 {offsets = [0, 0], sizes = [8, 128], strides = [1, 1]} : vector<8x512xf32> to vector<8x128xf32>
    %217 = arith.negf %216 : vector<8x128xf32>
    %218 = math.exp %217 : vector<8x128xf32>
    %cst_63 = arith.constant 1.000000e+00 : f32
    %219 = vector.broadcast %cst_63 : f32 to vector<8x128xf32>
    %220 = arith.addf %219, %218 : vector<8x128xf32>
    %221 = arith.divf %219, %220 : vector<8x128xf32>
    %222 = vector.extract_strided_slice %215 {offsets = [0, 128], sizes = [8, 128], strides = [1, 1]} : vector<8x512xf32> to vector<8x128xf32>
    %223 = arith.negf %222 : vector<8x128xf32>
    %224 = math.exp %223 : vector<8x128xf32>
    %cst_64 = arith.constant 1.000000e+00 : f32
    %225 = vector.broadcast %cst_64 : f32 to vector<8x128xf32>
    %226 = arith.addf %225, %224 : vector<8x128xf32>
    %227 = arith.divf %225, %226 : vector<8x128xf32>
    %228 = vector.extract_strided_slice %215 {offsets = [0, 256], sizes = [8, 128], strides = [1, 1]} : vector<8x512xf32> to vector<8x128xf32>
    %229 = math.tanh %228 : vector<8x128xf32>
    %230 = vector.extract_strided_slice %215 {offsets = [0, 384], sizes = [8, 128], strides = [1, 1]} : vector<8x512xf32> to vector<8x128xf32>
    %231 = arith.negf %230 : vector<8x128xf32>
    %232 = math.exp %231 : vector<8x128xf32>
    %cst_65 = arith.constant 1.000000e+00 : f32
    %233 = vector.broadcast %cst_65 : f32 to vector<8x128xf32>
    %234 = arith.addf %233, %232 : vector<8x128xf32>
    %235 = arith.divf %233, %234 : vector<8x128xf32>
    %236 = arith.mulf %227, %209 : vector<8x128xf32>
    %237 = arith.mulf %221, %229 : vector<8x128xf32>
    %238 = arith.addf %236, %237 : vector<8x128xf32>
    %239 = math.tanh %238 : vector<8x128xf32>
    %240 = arith.mulf %235, %239 : vector<8x128xf32>
    %c56_66 = arith.constant 56 : index
    %c0_67 = arith.constant 0 : index
    %241 = vector.load %arg8[%c56_66, %c0_67] : memref<64x128xf32, #tpu.memory_space<vmem>>, vector<8x128xf32>
    tpu.vector_store %arg8[%c56_66, %c0_67], %240 {strides = array<i32>} : memref<64x128xf32, #tpu.memory_space<vmem>>, vector<8x128xf32>,
    %c0_68 = arith.constant 0 : index
    %c0_69 = arith.constant 0 : index
    %242 = vector.load %arg8[%c0_68, %c0_69] : memref<64x128xf32, #tpu.memory_space<vmem>>, vector<64x128xf32>
    %c0_70 = arith.constant 0 : index
    %c0_71 = arith.constant 0 : index
    %243 = vector.load %arg4[%c0_70, %c0_71] : memref<128x128xf32, #tpu.memory_space<vmem>>, vector<128x128xf32>
    %cst_72 = arith.constant dense<0.000000e+00> : vector<64x128xf32>
    %244 = tpu.matmul %242, %243, %cst_72 {dimension_numbers = #tpu.dot_dimension_numbers<[1], [0], [0], [1], [0, 0, 1, 1], [], []>} : vector<64x128xf32>, vector<128x128xf32>, vector<64x128xf32> -> vector<64x128xf32>
    %c0_73 = arith.constant 0 : index
    %c0_74 = arith.constant 0 : index
    %245 = vector.load %arg5[%c0_73, %c0_74] : memref<1x128xf32, #tpu.memory_space<vmem>>, vector<1x128xf32>
    %246 = vector.broadcast %245 : vector<1x128xf32> to vector<64x128xf32>
    %247 = arith.addf %244, %246 : vector<64x128xf32>
    %248 = arith.negf %247 : vector<64x128xf32>
    %249 = math.exp %248 : vector<64x128xf32>
    %cst_75 = arith.constant 1.000000e+00 : f32
    %250 = vector.broadcast %cst_75 : f32 to vector<64x128xf32>
    %251 = arith.addf %250, %249 : vector<64x128xf32>
    %252 = arith.divf %250, %251 : vector<64x128xf32>
    %c0_76 = arith.constant 0 : index
    %c0_77 = arith.constant 0 : index
    %253 = vector.load %arg6[%c0_76, %c0_77] : memref<64x128xf32, #tpu.memory_space<vmem>>, vector<64x128xf32>
    tpu.vector_store %arg6[%c0_76, %c0_77], %252 {strides = array<i32>} : memref<64x128xf32, #tpu.memory_space<vmem>>, vector<64x128xf32>,
    return
  }
}

</mosaic_0001>

<bundles_post_ra>
// kernel: tpu_custom_call.1
= control target key start
LH: loop header
LB: loop body
LE: loop exit
PB: predicated region body
PF: predicated region fallthrough
CT: control target
= control target key end

     0   :  { %11 = vsyncpa [#allocation5], 0  ;;  %s3446_s0 = inlined_call_operand.vmem [shape: f32[64,17], index: 0, kind: input, shape index: {}]   ;;  %s3447_s1 = inlined_call_operand.hbm [shape: f32[17,512], index: 1, kind: input, shape index: {}]   ;;  %s3448_s2 = inlined_call_operand.hbm [shape: f32[128,512], index: 2, kind: input, shape index: {}]   ;;  %s3449_s3 = inlined_call_operand.vmem [shape: f32[1,512], index: 3, kind: input, shape index: {}]   ;;  %s3450_s4 = inlined_call_operand.hbm [shape: f32[128,128], index: 4, kind: input, shape index: {}]   ;;  %s3451_s5 = inlined_call_operand.vmem [shape: f32[1,128], index: 5, kind: input, shape index: {}]   ;;  %s3452_s6 = inlined_call_operand.hbm [shape: f32[64,128], index: 6, kind: output, shape index: {}]  }
   0x1   :  { %12 = vsyncpa [#allocation8], 0 }
   0x2   :  { %13 = vsyncpa [#allocation6], 0  ;;  %s33_s23 = sshll.u32 %s3448_s2, 4  ;;  %s2274_s24 = smov [#allocation7]   ;;  %s34_s23 = int_to_ptr.hbm [resolvable:$true] %s33_s23 }
   0x3   :  { %s35_s25 = sshll.u32 %s2274_s24, 4  ;;  %s20_s28 = sshll.u32 %s3447_s1, 4  ;;  %s36_s25 = int_to_ptr.vmem [resolvable:$true] %s35_s25  ;;  %s21_s28 = int_to_ptr.hbm [resolvable:$true] %s20_s28 }
   0x4   :  { %s2275_s29 = smov 512   ;;  %s2276_s30 = smov 32  }
   0x5   :  { %41 = dma.hbm_to_vmem [thread:$0]  %s34_s23, 8192, %s36_s25, [#allocation8], %s2275_s29, %s2275_s29, %s2276_s30  }
   0x6   :  { %s2277_s7 = smov [#allocation4]   ;;  %s48_s11 = sshll.u32 %s3450_s4, 4  ;;  %s49_s11 = int_to_ptr.hbm [resolvable:$true] %s48_s11 }
   0x7   :  { %s22_s8 = sshll.u32 %s2277_s7, 4  ;;  %s2278_s2 = smov [#allocation9]   ;;  %s23_s8 = int_to_ptr.vmem [resolvable:$true] %s22_s8 }
   0x8   :  { %28 = dma.hbm_to_vmem [thread:$0]  %s21_s28, 1536, %s23_s8, [#allocation5], %s2275_s29, %s2275_s29, %s2276_s30  }
   0x9   :  { %s50_s12 = sshll.u32 %s2278_s2, 4  ;;  %s2279_s13 = smov 128   ;;  %s51_s12 = int_to_ptr.vmem [resolvable:$true] %s50_s12 }
   0xa   :  { %s2280_s14 = smov 8  }
   0xb   :  { %56 = dma.hbm_to_vmem [thread:$0]  %s49_s11, 2048, %s51_s12, [#allocation8], %s2279_s13, %s2279_s13, %s2280_s14  }
   0xc   :  { %2268 = dma.done.wait [#allocation5], 1536  }
   0xd   :  { %2269 = vsyncadd [#allocation5], 4294965760 }
   0xe   :  { %2270 = dma.done.wait [#allocation8], 10240  }
   0xf   :  { %2271 = vsyncadd [#allocation8], 4294957056  ;;  %vm126_vm0 = vcmask 1040384   ;;  %v87_v0 = vld [vmem:[#allocation4 + $0x40] sm:$0x1]  ;;  %v85_v3 = vld [vmem:[#allocation4 + $0x30] sm:$0xff] }
  0x10   :  { %v89_v1 = vld [vmem:[#allocation4 + $0x50] sm:$0x1]  ;;  %v83_v2 = vld [vmem:[#allocation4 + $0x20] sm:$0xff]  ;;  %1932 = vmatpush.msk.msra.mxu1 %vm126_vm0, %v87_v0  ;;  %1933 = vmatpush.msk.msra.mxu3 %vm126_vm0, %v87_v0  ;;  %vm101_vm1 = vcmask 138240   ;;  %v2342_v7 = vld [vmem:[%s3446_s0 + $0x28] sm:$0xff]  ;;  %s1850_s10 = sshll.u32 %s3452_s6, 4  ;;  %s1851_s10 = int_to_ptr.hbm [resolvable:$true] %s1850_s10 }
  0x11   :  { %1882 = vmatpush.msk.msra.mxu2 %vm126_vm0, %v89_v1  ;;  %v79_v4 = vld [vmem:[#allocation4] sm:$0xff]  ;;  %1864 = vmatpush.msk.msra.mxu0 %vm126_vm0, %v87_v0  ;;  %v81_v5 = vld [vmem:[#allocation4 + $0x10] sm:$0xff]  ;;  %v90_v9 = vld [vmem:[#allocation4 + $0x58] sm:$0x1] }
  0x12   :  { %1934 = vmatpush.msra.mxu1 %v83_v2  ;;  %1935 = vmatpush.msra.mxu3 %v83_v2  ;;  %v2337_v6 = vld [vmem:[%s3446_s0 + $0x20] sm:$0xff]  ;;  %v88_v10 = vld [vmem:[#allocation4 + $0x48] sm:$0x1]  ;;  %v86_v13 = vld [vmem:[#allocation4 + $0x38] sm:$0xff] }
  0x13   :  { %235 = vmatpush.msra.mxu2 %v85_v3  ;;  %v2347_v8 = vld [vmem:[%s3446_s0] sm:$0xff]  ;;  %153 = vmatpush.msra.mxu0 %v83_v2  ;;  %v84_v12 = vld [vmem:[#allocation4 + $0x28] sm:$0xff]  ;;  %v82_v16 = vld [vmem:[#allocation4 + $0x18] sm:$0xff] }
  0x14   :  { %1936 = vmatpush.msra.mxu1 %v79_v4  ;;  %1937 = vmatpush.msra.mxu3 %v79_v4  ;;  %v2351_v11 = vld [vmem:[#allocation7 + $0x1e0] sm:$0xff]  ;;  %v80_v15 = vld [vmem:[#allocation4 + $0x8] sm:$0xff]  ;;  %v2367_v19 = vld [vmem:[#allocation7 + $0x1f8] sm:$0xff] }
  0x15   :  { %236 = vmatpush.msra.mxu2 %v81_v5  ;;  %1869 = vmatmul.msk.f32.vlgmr.msra.gmra.mxu1 %vm101_vm1, %v2337_v6  ;;  %v2359_v14 = vld [vmem:[#allocation7 + $0x1c0] sm:$0xff]  ;;  %v2364_v18 = vld [vmem:[#allocation7 + $0x1e8] sm:$0xff]  ;;  %v2374_v20 = vld [vmem:[%s3446_s0 + $0x30] sm:$0xff] }
  0x16   :  { %1870 = vmatmul.msk.f32.vlgmr.msra.gmra.mxu3 %vm101_vm1, %v2342_v7  ;;  %1883 = vmatmul.msk.f32.vlgmr.msra.gmra.mxu2 %vm101_vm1, %v2347_v8  ;;  %v2362_v17 = vld [vmem:[#allocation7 + $0x1a0] sm:$0xff]  ;;  %v2379_v21 = vld [vmem:[%s3446_s0 + $0x8] sm:$0xff]  ;;  %v2390_v24 = vld [vmem:[#allocation7 + $0x1d8] sm:$0xff] }
  0x17   :  { %1891 = vmatpush.msk.msrb.mxu3 %vm126_vm0, %v90_v9  ;;  %1873 = vmatpush.msk.msrb.mxu1 %vm126_vm0, %v88_v10  ;;  %v2382_v22 = vld [vmem:[#allocation7 + $0x180] sm:$0xff]  ;;  %v2385_v23 = vld [vmem:[#allocation7 + $0x1c8] sm:$0xff]  ;;  %v2402_v27 = vld [vmem:[#allocation7 + $0x1b8] sm:$0xff] }
  0x18   :  { %403 = vmatpush.msrb.mxu2 %v2351_v11  ;;  %154 = vmatpush.msra.mxu0 %v79_v4  ;;  %v2396_v25 = vld [vmem:[#allocation7 + $0x160] sm:$0xff]  ;;  %v2398_v26 = vld [vmem:[#allocation7 + $0x1a8] sm:$0xff]  ;;  %v2412_v30 = vld [vmem:[#allocation7 + $0x198] sm:$0xff] }
  0x19   :  { %194 = vmatpush.msrb.mxu1 %v84_v12  ;;  %276 = vmatpush.msrb.mxu3 %v86_v13  ;;  %v2404_v28 = vld [vmem:[#allocation7 + $0x140] sm:$0xff]  ;;  %v2407_v29 = vld [vmem:[#allocation7 + $0x188] sm:$0xff]  ;;  %v2421_v32 = vld [vmem:[%s3446_s0 + $0x38] sm:$0xff] }
  0x1a   :  { %404 = vmatpush.msrb.mxu2 %v2359_v14  ;;  %1865 = vmatmul.msk.f32.vlgmr.msra.gmra.mxu0 %vm101_vm1, %v2347_v8  ;;  %v2414_v31 = vld [vmem:[#allocation7 + $0x120] sm:$0xff]  ;;  %v2426_v33 = vld [vmem:[%s3446_s0 + $0x10] sm:$0xff]  ;;  %v2432_v35 = vld [vmem:[#allocation7 + $0x168] sm:$0xff] }
  0x1b   :  { %195 = vmatpush.msrb.mxu1 %v80_v15  ;;  %277 = vmatpush.msrb.mxu3 %v82_v16  ;;  %v2430_v34 = vld [vmem:[#allocation7 + $0x100] sm:$0xff]  ;;  %v2439_v36 = vld [vmem:[#allocation7 + $0x178] sm:$0xff]  ;;  %v2447_v38 = vld [vmem:[#allocation7 + $0x148] sm:$0xff] }
  0x1c   :  { %405 = vmatpush.msrb.mxu2 %v2362_v17  ;;  %555 = vmatpush.msrb.mxu0 %v2351_v11  ;;  %v2445_v37 = vld [vmem:[#allocation7 + $0xe0] sm:$0xff]  ;;  %v2451_v39 = vld [vmem:[#allocation7 + $0x158] sm:$0xff]  ;;  %v2456_v41 = vld [vmem:[#allocation7 + $0x128] sm:$0xff] }
  0x1d   :  { %423 = vmatpush.msra.mxu1 %v2364_v18  ;;  %463 = vmatpush.msra.mxu3 %v2367_v19  ;;  %v2453_v40 = vld [vmem:[#allocation7 + $0xc0] sm:$0xff]  ;;  %v2461_v42 = vld [vmem:[#allocation7 + $0x138] sm:$0xff]  ;;  %v2477_v46 = vld [vmem:[#allocation7 + $0x108] sm:$0xff] }
  0x1e   :  { %1874 = vmatmul.msk.f32.vlgmr.msrb.gmra.mxu1 %vm101_vm1, %v2347_v8  ;;  %1871 = vmatmul.msk.f32.gmra.mxu3 %vm101_vm1, %v2374_v20  ;;  %v2463_v43 = vld [vmem:[#allocation7 + $0xa0] sm:$0xff]  ;;  %v2471_v44 = vld [vmem:[%s3446_s0 + $0x18] sm:$0xff]  ;;  %v2492_v49 = vld [vmem:[#allocation7 + $0xe8] sm:$0xff] }
  0x1f   :  { %1884 = vmatmul.msk.f32.gmra.mxu2 %vm101_vm1, %v2379_v21  ;;  %424 = vmatpush.msra.mxu1 %v2385_v23  ;;  %3553 = vst [vmem:[#allocation14_spill] sm:$0xff] %v2463_v43  ;;  %v2475_v45 = vld [vmem:[#allocation7 + $0x80] sm:$0xff]  ;;  %v2484_v47 = vld [vmem:[#allocation7 + $0x118] sm:$0xff]  ;;  %v2501_v52 = vld [vmem:[#allocation7 + $0xc8] sm:$0xff] }
  0x20   :  { %406 = vmatpush.msrb.mxu2 %v2382_v22  ;;  %464 = vmatpush.msra.mxu3 %v2390_v24  ;;  %3554 = vst [vmem:[#allocation15_spill] sm:$0xff] %v2475_v45  ;;  %v2490_v48 = vld [vmem:[#allocation7 + $0x60] sm:$0xff]  ;;  %v2496_v50 = vld [vmem:[#allocation7 + $0xf8] sm:$0xff]  ;;  %v2516_v56 = vld [vmem:[#allocation7 + $0xa8] sm:$0xff] }
  0x21   :  { %425 = vmatpush.msra.mxu1 %v2398_v26  ;;  %556 = vmatpush.msrb.mxu0 %v2359_v14  ;;  %3555 = vst [vmem:[#allocation16_spill] sm:$0xff] %v2490_v48  ;;  %v2498_v51 = vld [vmem:[#allocation7 + $0x40] sm:$0xff]  ;;  %v2506_v53 = vld [vmem:[#allocation7 + $0xd8] sm:$0xff]  ;;  %v2523_v57 = vld [vmem:[#allocation7 + $0x1f0] sm:$0xff] }
  0x22   :  { %407 = vmatpush.msrb.mxu2 %v2396_v25  ;;  %465 = vmatpush.msra.mxu3 %v2402_v27  ;;  %3556 = vst [vmem:[#allocation17_spill] sm:$0xff] %v2498_v51  ;;  %v2508_v54 = vld [vmem:[#allocation7 + $0x20] sm:$0xff]  ;;  %v2529_v58 = vld [vmem:[#allocation7 + $0x88] sm:$0xff]  ;;  %v2531_v59 = vld [vmem:[#allocation7 + $0xb8] sm:$0xff] }
  0x23   :  { %426 = vmatpush.msra.mxu1 %v2407_v29  ;;  %557 = vmatpush.msrb.mxu0 %v2362_v17  ;;  %3557 = vst [vmem:[#allocation18_spill] sm:$0xff] %v2508_v54  ;;  %v2514_v55 = vld [vmem:[#allocation7] sm:$0xff]  ;;  %v2534_v60 = vld [vmem:[#allocation7 + $0x1d0] sm:$0xff]  ;;  %v2537_v61 = vld [vmem:[#allocation7 + $0x98] sm:$0xff] }
  0x24   :  { %408 = vmatpush.msrb.mxu2 %v2404_v28  ;;  %466 = vmatpush.msra.mxu3 %v2412_v30  ;;  %3558 = vst [vmem:[#allocation19_spill] sm:$0xff] %v2514_v55  ;;  %v2541_v62 = vld [vmem:[#allocation7 + $0x68] sm:$0xff]  ;;  %v2543_v63 = vld [vmem:[#allocation7 + $0x1b0] sm:$0xff]  ;;  %v2568_v4 = vld [vmem:[#allocation7 + $0x78] sm:$0xff] }
  0x25   :  { %427 = vmatpush.msra.mxu1 %v2432_v35  ;;  %558 = vmatpush.msrb.mxu0 %v2382_v22  ;;  %3559 = vst [vmem:[#allocation20_spill] sm:$0xff] %v2516_v56  ;;  %v2553_v0 = vld [vmem:[#allocation7 + $0x190] sm:$0xff]  ;;  %v2555_v1 = vld [vmem:[#allocation7 + $0x48] sm:$0xff]  ;;  %v2572_v5 = vld [vmem:[#allocation7 + $0x58] sm:$0xff] }
  0x26   :  { %1875 = vmatmul.msk.f32.gmra.mxu1 %vm101_vm1, %v2379_v21  ;;  %409 = vmatpush.msrb.mxu2 %v2414_v31  ;;  %3560 = vst [vmem:[#allocation21_spill] sm:$0xff] %v2529_v58  ;;  %v2564_v2 = vld [vmem:[#allocation7 + $0x170] sm:$0xff]  ;;  %v2566_v3 = vld [vmem:[#allocation7 + $0x28] sm:$0xff]  ;;  %v2602_v15 = vld [vmem:[#allocation7 + $0x38] sm:$0xff] }
  0x27   :  { %1872 = vmatmul.msk.f32.gmra.mxu3 %vm101_vm1, %v2421_v32  ;;  %1885 = vmatmul.msk.f32.gmra.mxu2 %vm101_vm1, %v2426_v33  ;;  %3561 = vst [vmem:[#allocation22_spill] sm:$0xff] %v2531_v59  ;;  %v2576_v9 = vld [vmem:[#allocation7 + $0x8] sm:$0xff]  ;;  %v2582_v10 = vld [vmem:[#allocation7 + $0x130] sm:$0xff]  ;;  %v2604_v16 = vld [vmem:[#allocation7 + $0x18] sm:$0xff] }
  0x28   :  { %410 = vmatpush.msrb.mxu2 %v2430_v34  ;;  %467 = vmatpush.msra.mxu3 %v2439_v36  ;;  %3562 = vst [vmem:[#allocation23_spill] sm:$0xff] %v2537_v61  ;;  %v2588_v12 = vld [vmem:[#allocation7 + $0x110] sm:$0xff] }
  0x29   :  { %428 = vmatpush.msra.mxu1 %v2447_v38  ;;  %1866 = vmatmul.msk.f32.gmra.mxu0 %vm101_vm1, %v2379_v21  ;;  %3563 = vst [vmem:[#allocation24_spill] sm:$0xff] %v2541_v62  ;;  %v2600_v13 = vld [vmem:[#allocation7 + $0xf0] sm:$0xff] }
  0x2a   :  { %411 = vmatpush.msrb.mxu2 %v2445_v37  ;;  %468 = vmatpush.msra.mxu3 %v2451_v39  ;;  %3564 = vst [vmem:[#allocation25_spill] sm:$0xff] %v2555_v1 }
  0x2b   :  { %429 = vmatpush.msra.mxu1 %v2456_v41  ;;  %559 = vmatpush.msrb.mxu0 %v2396_v25  ;;  %3565 = vst [vmem:[#allocation26_spill] sm:$0xff] %v2566_v3 }
  0x2c   :  { %412 = vmatpush.msrb.mxu2 %v2453_v40  ;;  %469 = vmatpush.msra.mxu3 %v2461_v42  ;;  %3566 = vst [vmem:[#allocation27_spill] sm:$0xff] %v2568_v4 }
  0x2d   :  { %430 = vmatpush.msra.mxu1 %v2477_v46  ;;  %560 = vmatpush.msrb.mxu0 %v2404_v28  ;;  %3567 = vst [vmem:[#allocation28_spill] sm:$0xff] %v2572_v5 }
  0x2e   :  { %1876 = vmatmul.msk.f32.gmra.mxu1 %vm101_vm1, %v2426_v33  ;;  %413 = vmatpush.msrb.mxu2 %v2463_v43  ;;  %3568 = vst [vmem:[#allocation29_spill] sm:$0xff] %v2576_v9 }
  0x2f   :  { %1886 = vmatmul.msk.f32.gmra.mxu2 %vm101_vm1, %v2471_v44  ;;  %1892 = vmatmul.msk.f32.vlgmr.msrb.gmra.mxu3 %vm101_vm1, %v2347_v8  ;;  %v2574_v8 = vld [vmem:[#allocation7 + $0x150] sm:$0xff]  ;;  %3569 = vst [vmem:[#allocation30_spill] sm:$0xff] %v2602_v15 }
  0x30   :  { %414 = vmatpush.msrb.mxu2 %v2475_v45  ;;  %470 = vmatpush.msra.mxu3 %v2484_v47  ;;  %3570 = vst [vmem:[#allocation31_spill] sm:$0xff] %v2604_v16 }
  0x31   :  { %431 = vmatpush.msra.mxu1 %v2492_v49  ;;  %561 = vmatpush.msrb.mxu0 %v2414_v31 }
  0x32   :  { %415 = vmatpush.msrb.mxu2 %v2490_v48  ;;  %471 = vmatpush.msra.mxu3 %v2496_v50 }
  0x33   :  { %432 = vmatpush.msra.mxu1 %v2501_v52  ;;  %562 = vmatpush.msrb.mxu0 %v2430_v34 }
  0x34   :  { %416 = vmatpush.msrb.mxu2 %v2498_v51  ;;  %472 = vmatpush.msra.mxu3 %v2506_v53 }
  0x35   :  { %433 = vmatpush.msra.mxu1 %v2516_v56  ;;  %1867 = vmatmul.msk.f32.gmra.mxu0 %vm101_vm1, %v2426_v33 }
  0x36   :  { %1877 = vmatmul.msk.f32.gmra.mxu1 %vm101_vm1, %v2471_v44  ;;  %417 = vmatpush.msrb.mxu2 %v2508_v54 }
  0x37   :  { %1887 = vmatmul.msk.f32.gmra.mxu2 %vm101_vm1, %v2337_v6  ;;  %1893 = vmatmul.msk.f32.gmra.mxu3 %vm101_vm1, %v2379_v21  ;;  %v2608_v21 = vld [vmem:[#allocation7 + $0xd0] sm:$0xff] }
  0x38   :  { %418 = vmatpush.msrb.mxu2 %v2514_v55  ;;  %473 = vmatpush.msra.mxu3 %v2531_v59 }
  0x39   :  { %434 = vmatpush.msra.mxu1 %v2529_v58  ;;  %563 = vmatpush.msrb.mxu0 %v2445_v37 }
  0x3a   :  { %443 = vmatpush.msra.mxu2 %v2523_v57  ;;  %474 = vmatpush.msra.mxu3 %v2537_v61 }
  0x3b   :  { %435 = vmatpush.msra.mxu1 %v2541_v62  ;;  %564 = vmatpush.msrb.mxu0 %v2453_v40 }
  0x3c   :  { %444 = vmatpush.msra.mxu2 %v2534_v60  ;;  %475 = vmatpush.msra.mxu3 %v2568_v4 }
  0x3d   :  { %436 = vmatpush.msra.mxu1 %v2555_v1  ;;  %565 = vmatpush.msrb.mxu0 %v2463_v43 }
  0x3e   :  { %445 = vmatpush.msra.mxu2 %v2543_v63  ;;  %1878 = vmatmul.msk.f32.gmra.mxu1 %vm101_vm1, %v2337_v6 }
  0x3f   :  { %1888 = vmatmul.msk.f32.gmra.mxu2 %vm101_vm1, %v2342_v7  ;;  %1894 = vmatmul.msk.f32.gmra.mxu3 %vm101_vm1, %v2426_v33  ;;  %v2614_v33 = vld [vmem:[#allocation7 + $0xb0] sm:$0xff] }
  0x40   :  { %446 = vmatpush.msra.mxu2 %v2553_v0  ;;  %437 = vmatpush.msra.mxu1 %v2566_v3  ;;  %3571 = vst [vmem:[#allocation32_spill] sm:$0xff] %v2614_v33 }
  0x41   :  { %476 = vmatpush.msra.mxu3 %v2572_v5  ;;  %566 = vmatpush.msrb.mxu0 %v2475_v45  ;;  %v2641_v45 = vld [vmem:[#allocation7 + $0x30] sm:$0xff] }
  0x42   :  { %447 = vmatpush.msra.mxu2 %v2564_v2  ;;  %438 = vmatpush.msra.mxu1 %v2576_v9  ;;  %3575 = vst [vmem:[#allocation36_spill] sm:$0xff] %v2641_v45 }
  0x43   :  { %1868 = vmatmul.msk.f32.gmra.mxu0 %vm101_vm1, %v2471_v44  ;;  %477 = vmatpush.msra.mxu3 %v2602_v15 }
  0x44   :  { %448 = vmatpush.msra.mxu2 %v2574_v8  ;;  %575 = vmatpush.msrb.mxu1 %v2364_v18 }
  0x45   :  { %567 = vmatpush.msrb.mxu0 %v2490_v48  ;;  %478 = vmatpush.msra.mxu3 %v2604_v16  ;;  %v2631_v48 = vld [vmem:[#allocation7 + $0x70] sm:$0xff] }
  0x46   :  { %1879 = vmatmul.msk.f32.gmra.mxu1 %vm101_vm1, %v2342_v7  ;;  %449 = vmatpush.msra.mxu2 %v2582_v10  ;;  %3573 = vst [vmem:[#allocation34_spill] sm:$0xff] %v2631_v48 }
  0x47   :  { %1889 = vmatmul.msk.f32.gmra.mxu2 %vm101_vm1, %v2374_v20  ;;  %1895 = vmatmul.msk.f32.gmra.mxu3 %vm101_vm1, %v2471_v44  ;;  %v2620_v44 = vld [vmem:[#allocation7 + $0x90] sm:$0xff] }
  0x48   :  { %450 = vmatpush.msra.mxu2 %v2588_v12  ;;  %576 = vmatpush.msrb.mxu1 %v2385_v23  ;;  %3572 = vst [vmem:[#allocation33_spill] sm:$0xff] %v2620_v44 }
  0x49   :  { %615 = vmatpush.msrb.mxu3 %v2367_v19  ;;  %568 = vmatpush.msrb.mxu0 %v2498_v51  ;;  %v2635_v51 = vld [vmem:[#allocation7 + $0x50] sm:$0xff] }
  0x4a   :  { %451 = vmatpush.msra.mxu2 %v2600_v13  ;;  %577 = vmatpush.msrb.mxu1 %v2398_v26  ;;  %3574 = vst [vmem:[#allocation35_spill] sm:$0xff] %v2635_v51 }
  0x4b   :  { %616 = vmatpush.msrb.mxu3 %v2390_v24  ;;  %569 = vmatpush.msrb.mxu0 %v2508_v54  ;;  %v2281_v54 = vmov 0.0  }
  0x4c   :  { %452 = vmatpush.msra.mxu2 %v2608_v21  ;;  %578 = vmatpush.msrb.mxu1 %v2407_v29 }
  0x4d   :  { %617 = vmatpush.msrb.mxu3 %v2402_v27  ;;  %570 = vmatpush.msrb.mxu0 %v2514_v55 }
  0x4e   :  { %1880 = vmatmul.msk.f32.gmra.mxu1 %vm101_vm1, %v2374_v20  ;;  %453 = vmatpush.msra.mxu2 %v2614_v33 }
  0x4f   :  { %1890 = vmatmul.msk.f32.gmra.mxu2 %vm101_vm1, %v2421_v32  ;;  %1896 = vmatmul.msk.f32.gmra.mxu3 %vm101_vm1, %v2337_v6  ;;  %v2647_v6 = vld [vmem:[#allocation7 + $0x10] sm:$0xff] }
  0x50   :  { %454 = vmatpush.msra.mxu2 %v2620_v44  ;;  %579 = vmatpush.msrb.mxu1 %v2432_v35  ;;  %3576 = vst [vmem:[#allocation37_spill] sm:$0xff] %v2647_v6 }
  0x51   :  { %618 = vmatpush.msrb.mxu3 %v2412_v30  ;;  %707 = vmatpush.msra.mxu0 %v2351_v11 }
  0x52   :  { %455 = vmatpush.msra.mxu2 %v2631_v48  ;;  %580 = vmatpush.msrb.mxu1 %v2447_v38 }
  0x53   :  { %619 = vmatpush.msrb.mxu3 %v2439_v36  ;;  %708 = vmatpush.msra.mxu0 %v2359_v14 }
  0x54   :  { %456 = vmatpush.msra.mxu2 %v2635_v51  ;;  %581 = vmatpush.msrb.mxu1 %v2456_v41 }
  0x55   :  { %620 = vmatpush.msrb.mxu3 %v2451_v39  ;;  %709 = vmatpush.msra.mxu0 %v2362_v17 }
  0x56   :  { %1881 = vmatmul.msk.f32.gmra.mxu1 %vm101_vm1, %v2421_v32  ;;  %457 = vmatpush.msra.mxu2 %v2641_v45 }
  0x57   :  { %1897 = vmatmul.msk.f32.gmra.mxu3 %vm101_vm1, %v2342_v7  ;;  %419 = vmatmul.f32.vlgmr.msrb.gmra.mxu2 %v2281_v54  ;;  %v3577_v7 = vld [vmem:[#allocation15_spill] sm:$0xff] }
  0x58   :  { %458 = vmatpush.msra.mxu2 %v2647_v6  ;;  %582 = vmatpush.msrb.mxu1 %v2477_v46 }
  0x59   :  { %621 = vmatpush.msrb.mxu3 %v2461_v42  ;;  %710 = vmatpush.msra.mxu0 %v2382_v22 }
  0x5a   :  { %595 = vmatpush.msrb.mxu2 %v2523_v57  ;;  %583 = vmatpush.msrb.mxu1 %v2492_v49 }
  0x5b   :  { %622 = vmatpush.msrb.mxu3 %v2484_v47  ;;  %711 = vmatpush.msra.mxu0 %v2396_v25 }
  0x5c   :  { %596 = vmatpush.msrb.mxu2 %v2534_v60  ;;  %584 = vmatpush.msrb.mxu1 %v2501_v52 }
  0x5d   :  { %623 = vmatpush.msrb.mxu3 %v2496_v50  ;;  %712 = vmatpush.msra.mxu0 %v2404_v28 }
  0x5e   :  { %597 = vmatpush.msrb.mxu2 %v2543_v63  ;;  %439 = vmatmul.f32.vlgmr.msra.gmra.mxu1 %v2281_v54 }
  0x5f   :  { %1898 = vmatmul.msk.f32.gmra.mxu3 %vm101_vm1, %v2374_v20  ;;  %459 = vmatmul.f32.vlgmr.msra.gmra.mxu2 %v2281_v54  ;;  %v3578_v20 = vld [vmem:[#allocation16_spill] sm:$0xff] }
  0x60   :  { %598 = vmatpush.msrb.mxu2 %v2553_v0  ;;  %624 = vmatpush.msrb.mxu3 %v2506_v53 }
  0x61   :  { %585 = vmatpush.msrb.mxu1 %v2516_v56  ;;  %713 = vmatpush.msra.mxu0 %v2414_v31 }
  0x62   :  { %599 = vmatpush.msrb.mxu2 %v2564_v2  ;;  %625 = vmatpush.msrb.mxu3 %v2531_v59 }
  0x63   :  { %586 = vmatpush.msrb.mxu1 %v2529_v58  ;;  %714 = vmatpush.msra.mxu0 %v2430_v34 }
  0x64   :  { %600 = vmatpush.msrb.mxu2 %v2574_v8  ;;  %626 = vmatpush.msrb.mxu3 %v2537_v61 }
  0x65   :  { %587 = vmatpush.msrb.mxu1 %v2541_v62  ;;  %715 = vmatpush.msra.mxu0 %v2445_v37 }
  0x66   :  { %601 = vmatpush.msrb.mxu2 %v2582_v10  ;;  %627 = vmatpush.msrb.mxu3 %v2568_v4 }
  0x67   :  { %1899 = vmatmul.msk.f32.gmra.mxu3 %vm101_vm1, %v2421_v32  ;;  %588 = vmatpush.msrb.mxu1 %v2555_v1  ;;  %v3579_v32 = vld [vmem:[#allocation17_spill] sm:$0xff] }
  0x68   :  { %602 = vmatpush.msrb.mxu2 %v2588_v12  ;;  %628 = vmatpush.msrb.mxu3 %v2572_v5 }
  0x69   :  { %589 = vmatpush.msrb.mxu1 %v2566_v3  ;;  %716 = vmatpush.msra.mxu0 %v2453_v40 }
  0x6a   :  { %603 = vmatpush.msrb.mxu2 %v2600_v13  ;;  %629 = vmatpush.msrb.mxu3 %v2602_v15 }
  0x6b   :  { %590 = vmatpush.msrb.mxu1 %v2576_v9  ;;  %717 = vmatpush.msra.mxu0 %v2463_v43 }
  0x6c   :  { %604 = vmatpush.msrb.mxu2 %v2608_v21  ;;  %630 = vmatpush.msrb.mxu3 %v2604_v16 }
  0x6d   :  { %727 = vmatpush.msra.mxu1 %v2364_v18  ;;  %718 = vmatpush.msra.mxu0 %v3577_v7 }
  0x6e   :  { %605 = vmatpush.msrb.mxu2 %v2614_v33 }
  0x6f   :  { %479 = vmatmul.f32.vlgmr.msra.gmra.mxu3 %v2281_v54  ;;  %728 = vmatpush.msra.mxu1 %v2385_v23  ;;  %v3580_v54 = vld [vmem:[#allocation18_spill] sm:$0xff] }
  0x70   :  { %606 = vmatpush.msrb.mxu2 %v2620_v44  ;;  %767 = vmatpush.msra.mxu3 %v2367_v19 }
  0x71   :  { %729 = vmatpush.msra.mxu1 %v2398_v26  ;;  %719 = vmatpush.msra.mxu0 %v3578_v20 }
  0x72   :  { %607 = vmatpush.msrb.mxu2 %v2631_v48  ;;  %768 = vmatpush.msra.mxu3 %v2390_v24 }
  0x73   :  { %730 = vmatpush.msra.mxu1 %v2407_v29  ;;  %720 = vmatpush.msra.mxu0 %v3579_v32 }
  0x74   :  { %608 = vmatpush.msrb.mxu2 %v2635_v51  ;;  %769 = vmatpush.msra.mxu3 %v2402_v27 }
  0x75   :  { %731 = vmatpush.msra.mxu1 %v2432_v35  ;;  %721 = vmatpush.msra.mxu0 %v3580_v54 }
  0x76   :  { %609 = vmatpush.msrb.mxu2 %v2641_v45  ;;  %770 = vmatpush.msra.mxu3 %v2412_v30 }
  0x77   :  { %732 = vmatpush.msra.mxu1 %v2447_v38  ;;  %722 = vmatpush.msra.mxu0 %v2514_v55 }
  0x78   :  { %610 = vmatpush.msrb.mxu2 %v2647_v6  ;;  %771 = vmatpush.msra.mxu3 %v2439_v36 }
  0x79   :  { %733 = vmatpush.msra.mxu1 %v2456_v41 }
  0x7a   :  { %747 = vmatpush.msra.mxu2 %v2523_v57  ;;  %772 = vmatpush.msra.mxu3 %v2451_v39 }
  0x7b   :  { %734 = vmatpush.msra.mxu1 %v2477_v46 }
  0x7c   :  { %748 = vmatpush.msra.mxu2 %v2534_v60  ;;  %773 = vmatpush.msra.mxu3 %v2461_v42 }
  0x7d   :  { %735 = vmatpush.msra.mxu1 %v2492_v49 }
  0x7e   :  { %749 = vmatpush.msra.mxu2 %v2543_v63  ;;  %774 = vmatpush.msra.mxu3 %v2484_v47 }
  0x7f   :  { %736 = vmatpush.msra.mxu1 %v2501_v52 }
  0x80   :  { %750 = vmatpush.msra.mxu2 %v2553_v0  ;;  %775 = vmatpush.msra.mxu3 %v2496_v50 }
  0x81   :  { %737 = vmatpush.msra.mxu1 %v2516_v56 }
  0x82   :  { %751 = vmatpush.msra.mxu2 %v2564_v2  ;;  %776 = vmatpush.msra.mxu3 %v2506_v53 }
  0x83   :  { %738 = vmatpush.msra.mxu1 %v2529_v58 }
  0x84   :  { %752 = vmatpush.msra.mxu2 %v2574_v8  ;;  %777 = vmatpush.msra.mxu3 %v2531_v59 }
  0x85   :  { %739 = vmatpush.msra.mxu1 %v2541_v62 }
  0x86   :  { %753 = vmatpush.msra.mxu2 %v2582_v10  ;;  %778 = vmatpush.msra.mxu3 %v2537_v61 }
  0x87   :  { %740 = vmatpush.msra.mxu1 %v2555_v1 }
  0x88   :  { %754 = vmatpush.msra.mxu2 %v2588_v12  ;;  %779 = vmatpush.msra.mxu3 %v2568_v4 }
  0x89   :  { %741 = vmatpush.msra.mxu1 %v2566_v3 }
  0x8a   :  { %755 = vmatpush.msra.mxu2 %v2600_v13  ;;  %780 = vmatpush.msra.mxu3 %v2572_v5 }
  0x8b   :  { %742 = vmatpush.msra.mxu1 %v2576_v9 }
  0x8c   :  { %756 = vmatpush.msra.mxu2 %v2608_v21  ;;  %781 = vmatpush.msra.mxu3 %v2602_v15 }
  0x8e   :  { %757 = vmatpush.msra.mxu2 %v2614_v33  ;;  %782 = vmatpush.msra.mxu3 %v2604_v16  ;;  %v91_v16 = vld [vmem:[%s3449_s3] sm:$0xf] }
  0x8f   :  { %v2769_v54 = vperm.slane %v91_v16, 2  ;;  %v94_v5 = vperm.slane %v91_v16, 1 }
  0x90   :  { %758 = vmatpush.msra.mxu2 %v2620_v44 }
  0x92   :  { %759 = vmatpush.msra.mxu2 %v2631_v48  ;;  %v2757_v55 = vpop.f32.mrf.mxu1 }
  0x93   :  { %3581 = vst [vmem:[#allocation38_spill] sm:$0xff] %v2757_v55 }
  0x94   :  { %760 = vmatpush.msra.mxu2 %v2635_v51 }
  0x96   :  { %761 = vmatpush.msra.mxu2 %v2641_v45 }
  0x98   :  { %762 = vmatpush.msra.mxu2 %v2647_v6 }
  0x99   :  { %v2762_v3 = vpop.f32.mrf.mxu3  ;;  %v2764_v9 = vpop.f32.mrf.mxu2 }
  0x9a   :  { %3582 = vst [vmem:[#allocation39_spill] sm:$0xff] %v2762_v3 }
  0x9b   :  { %v197_v15 = vpop.f32.mrf.mxu1 }
  0xa1   :  { %v2771_v1 = vpop.f32.mrf.mxu3 }
  0xa2   :  { %3583 = vst [vmem:[#allocation40_spill] sm:$0xff] %v2771_v1  ;;  %v241_v55 = vpop.f32.mrf.mxu2 }
  0xa3   :  { %v2774_v51 = vadd.f32 %v241_v55, %v2769_v54  ;;  %v200_v45 = vpop.f32.mrf.mxu1 }
  0xa4   :  { %v2776_v6 = vadd.f32 %v200_v45, %v94_v5 }
  0xa5   :  { %3584 = vst [vmem:[#allocation41_spill] sm:$0xff] %v2774_v51  ;;  %v96_v51 = vperm.slane %v91_v16, 3 }
  0xa6   :  { %3585 = vst [vmem:[#allocation42_spill] sm:$0xff] %v2776_v6 }
  0xaa   :  { %v2778_v3 = vpop.f32.mrf.mxu3  ;;  %v244_v32 = vpop.f32.mrf.mxu2 }
  0xab   :  { %3586 = vst [vmem:[#allocation43_spill] sm:$0xff] %v2778_v3  ;;  %v2781_v4 = vadd.f32 %v244_v32, %v2769_v54  ;;  %v203_v48 = vpop.f32.mrf.mxu1 }
  0xac   :  { %v2783_v62 = vadd.f32 %v203_v48, %v94_v5 }
  0xad   :  { %3587 = vst [vmem:[#allocation44_spill] sm:$0xff] %v2781_v4 }
  0xae   :  { %3588 = vst [vmem:[#allocation45_spill] sm:$0xff] %v2783_v62 }
  0xb2   :  { %v247_v20 = vpop.f32.mrf.mxu2  ;;  %v279_v61 = vpop.f32.mrf.mxu3 }
  0xb3   :  { %v2786_v1 = vadd.f32 %v247_v20, %v2769_v54  ;;  %v206_v44 = vpop.f32.mrf.mxu1 }
  0xb4   :  { %v2788_v55 = vadd.f32 %v206_v44, %v94_v5 }
  0xb5   :  { %3589 = vst [vmem:[#allocation46_spill] sm:$0xff] %v2786_v1 }
  0xb6   :  { %3590 = vst [vmem:[#allocation47_spill] sm:$0xff] %v2788_v55 }
  0xba   :  { %v250_v45 = vpop.f32.mrf.mxu2  ;;  %v282_v6 = vpop.f32.mrf.mxu3 }
  0xbb   :  { %v2791_v3 = vadd.f32 %v250_v45, %v2769_v54  ;;  %v2793_v58 = vadd.f32 %v282_v6, %v96_v51  ;;  %v209_v32 = vpop.f32.mrf.mxu1 }
  0xbc   :  { %v2795_v4 = vadd.f32 %v209_v32, %v94_v5 }
  0xbd   :  { %3591 = vst [vmem:[#allocation48_spill] sm:$0xff] %v2791_v3 }
  0xbe   :  { %3592 = vst [vmem:[#allocation49_spill] sm:$0xff] %v2793_v58 }
  0xbf   :  { %3593 = vst [vmem:[#allocation50_spill] sm:$0xff] %v2795_v4 }
  0xc2   :  { %v253_v48 = vpop.f32.mrf.mxu2  ;;  %v285_v62 = vpop.f32.mrf.mxu3 }
  0xc3   :  { %v2798_v7 = vadd.f32 %v253_v48, %v2769_v54  ;;  %v2800_v20 = vadd.f32 %v285_v62, %v96_v51  ;;  %v212_v44 = vpop.f32.mrf.mxu1 }
  0xc4   :  { %v2802_v1 = vadd.f32 %v212_v44, %v94_v5 }
  0xc5   :  { %3594 = vst [vmem:[#allocation51_spill] sm:$0xff] %v2798_v7 }
  0xc6   :  { %3595 = vst [vmem:[#allocation52_spill] sm:$0xff] %v2800_v20  ;;  %v2818_v20 = vperm.slane %v91_v16, 0 }
  0xc7   :  { %3596 = vst [vmem:[#allocation53_spill] sm:$0xff] %v2802_v1  ;;  %v156_v1 = vpop.f32.mrf.mxu0 }
  0xc8   :  { %3603 = vst [vmem:[#allocation60_spill] sm:$0xff] %v2818_v20 }
  0xca   :  { %v256_v55 = vpop.f32.mrf.mxu2  ;;  %v288_v59 = vpop.f32.mrf.mxu3 }
  0xcb   :  { %v2805_v45 = vadd.f32 %v256_v55, %v2769_v54  ;;  %v2807_v6 = vadd.f32 %v288_v59, %v96_v51  ;;  %v215_v3 = vpop.f32.mrf.mxu1  ;;  %v157_v55 = vadd.f32 %v156_v1, %v2818_v20  ;;  %v198_v59 = vadd.f32 %v197_v15, %v94_v5 }
  0xcc   :  { %v2809_v32 = vadd.f32 %v215_v3, %v94_v5 }
  0xcd   :  { %3597 = vst [vmem:[#allocation54_spill] sm:$0xff] %v2805_v45 }
  0xce   :  { %3598 = vst [vmem:[#allocation55_spill] sm:$0xff] %v2807_v6 }
  0xcf   :  { %3599 = vst [vmem:[#allocation56_spill] sm:$0xff] %v2809_v32 }
  0xd2   :  { %v259_v4 = vpop.f32.mrf.mxu2  ;;  %v291_v58 = vpop.f32.mrf.mxu3 }
  0xd3   :  { %v2812_v48 = vadd.f32 %v259_v4, %v2769_v54  ;;  %v2814_v62 = vadd.f32 %v291_v58, %v96_v51  ;;  %v218_v7 = vpop.f32.mrf.mxu1 }
  0xd4   :  { %v2816_v44 = vadd.f32 %v218_v7, %v94_v5 }
  0xd5   :  { %3600 = vst [vmem:[#allocation57_spill] sm:$0xff] %v2812_v48 }
  0xd6   :  { %3601 = vst [vmem:[#allocation58_spill] sm:$0xff] %v2814_v62 }
  0xd7   :  { %3602 = vst [vmem:[#allocation59_spill] sm:$0xff] %v2816_v44 }
  0xda   :  { %v294_v45 = vpop.f32.mrf.mxu3  ;;  %v420_v6 = vpop.f32.mrf.mxu2 }
  0xdb   :  { %v2821_v3 = vadd.f32 %v294_v45, %v96_v51  ;;  %v483_v32 = vadd.f32 %v420_v6, %v157_v55  ;;  %v440_v33 = vpop.f32.mrf.mxu1 }
  0xdc   :  { %v484_v56 = vadd.f32 %v440_v33, %v198_v59 }
  0xdd   :  { %3604 = vst [vmem:[#allocation61_spill] sm:$0xff] %v2821_v3  ;;  %v1900_v4 = vmul.f32 -1.442695, %v483_v32  ;;  %v280_v32 = vadd.f32 %v279_v61, %v96_v51 }
  0xde   :  { %v1901_v48 = vmul.f32 -1.442695, %v484_v56 }
  0xdf   :  { %1948 = vpow2.f32 %v1900_v4 }
  0xe0   :  { %1950 = vpow2.f32 %v1901_v48 }
  0xe2   :  { %v297_v58 = vpop.f32.mrf.mxu3 }
  0xe3   :  { %v2823_v7 = vadd.f32 %v297_v58, %v96_v51 }
  0xe5   :  { %3605 = vst [vmem:[#allocation62_spill] sm:$0xff] %v2823_v7  ;;  %v1949_v44 = vpop.eup %1948  ;;  %v460_v7 = vpop.f32.mrf.mxu2 }
  0xe6   :  { %v1951_v16 = vpop.eup %1950  ;;  %v490_v62 = vadd.f32 1.0, %v1949_v44  ;;  %v239_v44 = vadd.f32 %v2764_v9, %v2769_v54 }
  0xe7   :  { %v509_v43 = vadd.f32 1.0, %v1951_v16 }
  0xe8   :  { %1952 = vrcp.f32 %v490_v62  ;;  %vm496_vm2 = vweird.f32 %v490_v62  ;;  %v502_v20 = vand.u32 2147483648, %v490_v62 }
  0xe9   :  { %1954 = vrcp.f32 %v509_v43  ;;  %vm515_vm5 = vweird.f32 %v509_v43 }
  0xea   :  { %v300_v1 = vpop.f32.mrf.mxu3  ;;  %v503_v54 = vor.u32 1.1754944e-38, %v502_v20 }
  0xeb   :  { %v2825_v5 = vadd.f32 %v300_v1, %v96_v51  ;;  %v521_v1 = vand.u32 2147483648, %v509_v43 }
  0xed   :  { %3606 = vst [vmem:[#allocation63_spill] sm:$0xff] %v2825_v5  ;;  %v485_v5 = vadd.f32 %v460_v7, %v239_v44  ;;  %v522_v9 = vor.u32 1.1754944e-38, %v521_v1 }
  0xee   :  { %v1953_v15 = vpop.eup %1952 }
  0xef   :  { %v1955_v45 = vpop.eup %1954  ;;  %v492_v6 = vmul.f32 %v1953_v15, %v490_v62  ;;  %vm497_vm3 = vweird.f32 %v1953_v15 }
  0xf0   :  { %v511_v33 = vmul.f32 %v1955_v45, %v509_v43  ;;  %vm516_vm4 = vweird.f32 %v1955_v45  ;;  %vm2829_vm6 = vmor %vm496_vm2, %vm497_vm3 }
  0xf1   :  { %v493_v56 = vsub.f32 1.0, %v492_v6  ;;  %v500_v6 = vand.u32 2147483647, %v490_v62  ;;  %vm517_vm7 = vmor %vm515_vm5, %vm516_vm4 }
  0xf2   :  { %v512_v55 = vsub.f32 1.0, %v511_v33  ;;  %v480_v48 = vpop.f32.mrf.mxu3  ;;  %v519_v33 = vand.u32 2147483647, %v509_v43 }
  0xf3   :  { %v486_v59 = vadd.f32 %v480_v48, %v280_v32  ;;  %v494_v3 = vmul.f32 %v1953_v15, %v493_v56  ;;  %vm501_vm8 = vcmp.eq.f32.partialorder %v500_v6, 8.507059e+37 }
  0xf4   :  { %v513_v4 = vmul.f32 %v1955_v45, %v512_v55  ;;  %vm520_vm9 = vcmp.eq.f32.partialorder %v519_v33, 8.507059e+37 }
  0xf5   :  { %v1902_v58 = vmul.f32 -1.442695, %v486_v59  ;;  %v495_v51 = vadd.f32 %v1953_v15, %v494_v3 }
  0xf6   :  { %v514_v16 = vadd.f32 %v1955_v45, %v513_v4 }
  0xf7   :  { %1956 = vpow2.f32 %v1902_v58  ;;  %v499_v55 = vsel %vm2829_vm6, %v1953_v15, %v495_v51 }
  0xf8   :  { %v518_v32 = vsel %vm517_vm7, %v1955_v45, %v514_v16  ;;  %1958 = vtanh.f32 %v485_v5  ;;  %v504_v3 = vsel %vm501_vm8, %v503_v54, %v499_v55 }
  0xf9   :  { %v523_v48 = vsel %vm520_vm9, %v522_v9, %v518_v32  ;;  %v3636_v9 = vld [vmem:[#allocation42_spill] sm:$0xff] }
  0xfa   :  { %v545_v59 = vmul.f32 0.0, %v523_v48 }
  0xfd   :  { %v1957_v56 = vpop.eup %1956 }
  0xfe   :  { %v529_v7 = vadd.f32 1.0, %v1957_v56  ;;  %v1959_v4 = vpop.eup %1958 }
  0xff   :  { %v546_v58 = vmul.f32 %v1959_v4, %v504_v3  ;;  %v3637_v3 = vld [vmem:[#allocation49_spill] sm:$0xff] }
 0x100   :  { %1960 = vrcp.f32 %v529_v7  ;;  %v541_v20 = vand.u32 2147483648, %v529_v7  ;;  %v539_v15 = vand.u32 2147483647, %v529_v7  ;;  %vm535_vm11 = vweird.f32 %v529_v7 }
 0x101   :  { %v2835_v43 = vadd.f32 %v546_v58, %v545_v59 }
 0x102   :  { %v542_v1 = vor.u32 1.1754944e-38, %v541_v20  ;;  %vm540_vm13 = vcmp.eq.f32.partialorder %v539_v15, 8.507059e+37 }
 0x103   :  { %1962 = vtanh.f32 %v2835_v43 }
 0x106   :  { %v1961_v62 = vpop.eup %1960 }
 0x107   :  { %v531_v45 = vmul.f32 %v1961_v62, %v529_v7  ;;  %vm536_vm10 = vweird.f32 %v1961_v62 }
 0x108   :  { %vm537_vm12 = vmor %vm535_vm11, %vm536_vm10 }
 0x109   :  { %v532_v44 = vsub.f32 1.0, %v531_v45  ;;  %v1963_v61 = vpop.eup %1962 }
 0x10b   :  { %v533_v5 = vmul.f32 %v1961_v62, %v532_v44 }
 0x10d   :  { %v534_v16 = vadd.f32 %v1961_v62, %v533_v5 }
 0x10f   :  { %v538_v51 = vsel %vm537_vm12, %v1961_v62, %v534_v16 }
 0x110   :  { %v543_v6 = vsel %vm540_vm13, %v542_v1, %v538_v51  ;;  %v3638_v1 = vld [vmem:[#allocation41_spill] sm:$0xff] }
 0x111   :  { %v2838_v33 = vmul.f32 %v1963_v61, %v543_v6 }
 0x113   :  { %3609 = vst [vmem:[#allocation64_spill] sm:$0xff] %v2838_v33  ;;  %571 = vmatmul.f32.vlgmr.msrb.gmra.mxu0 %v2838_v33  ;;  %591 = vmatmul.f32.vlgmr.msrb.gmra.mxu1 %v2838_v33 }
 0x114   :  { %611 = vmatmul.f32.vlgmr.msrb.gmra.mxu2 %v2838_v33  ;;  %631 = vmatmul.f32.vlgmr.msrb.gmra.mxu3 %v2838_v33 }
 0x115   :  { %859 = vmatpush.msrb.mxu0 %v2351_v11  ;;  %879 = vmatpush.msrb.mxu1 %v2364_v18  ;;  %v3610_v11 = vld [vmem:[#allocation14_spill] sm:$0xff] }
 0x116   :  { %899 = vmatpush.msrb.mxu2 %v2523_v57  ;;  %919 = vmatpush.msrb.mxu3 %v2367_v19  ;;  %v3613_v18 = vld [vmem:[#allocation22_spill] sm:$0xff]  ;;  %v3614_v19 = vld [vmem:[#allocation15_spill] sm:$0xff] }
 0x117   :  { %860 = vmatpush.msrb.mxu0 %v2359_v14  ;;  %880 = vmatpush.msrb.mxu1 %v2385_v23  ;;  %v3611_v14 = vld [vmem:[#allocation20_spill] sm:$0xff]  ;;  %v3616_v23 = vld [vmem:[#allocation33_spill] sm:$0xff] }
 0x118   :  { %900 = vmatpush.msrb.mxu2 %v2534_v60  ;;  %920 = vmatpush.msrb.mxu3 %v2390_v24  ;;  %v3617_v24 = vld [vmem:[#allocation23_spill] sm:$0xff] }
 0x119   :  { %861 = vmatpush.msrb.mxu0 %v2362_v17  ;;  %881 = vmatpush.msrb.mxu1 %v2398_v26  ;;  %v3612_v17 = vld [vmem:[#allocation32_spill] sm:$0xff] }
 0x11a   :  { %901 = vmatpush.msrb.mxu2 %v2543_v63  ;;  %921 = vmatpush.msrb.mxu3 %v2402_v27  ;;  %v3619_v26 = vld [vmem:[#allocation24_spill] sm:$0xff]  ;;  %v3620_v27 = vld [vmem:[#allocation34_spill] sm:$0xff] }
 0x11b   :  { %862 = vmatpush.msrb.mxu0 %v2382_v22  ;;  %882 = vmatpush.msrb.mxu1 %v2407_v29  ;;  %v3615_v22 = vld [vmem:[#allocation21_spill] sm:$0xff] }
 0x11c   :  { %902 = vmatpush.msrb.mxu2 %v2553_v0  ;;  %922 = vmatpush.msrb.mxu3 %v2412_v30  ;;  %v3622_v29 = vld [vmem:[#allocation17_spill] sm:$0xff] }
 0x11d   :  { %863 = vmatpush.msrb.mxu0 %v2396_v25  ;;  %883 = vmatpush.msrb.mxu1 %v2432_v35  ;;  %v3618_v25 = vld [vmem:[#allocation16_spill] sm:$0xff]  ;;  %v3623_v30 = vld [vmem:[#allocation25_spill] sm:$0xff]  ;;  %v3626_v35 = vld [vmem:[#allocation18_spill] sm:$0xff] }
 0x11e   :  { %903 = vmatpush.msrb.mxu2 %v2564_v2  ;;  %923 = vmatpush.msrb.mxu3 %v2439_v36  ;;  %v3627_v36 = vld [vmem:[#allocation26_spill] sm:$0xff] }
 0x11f   :  { %864 = vmatpush.msrb.mxu0 %v2404_v28  ;;  %884 = vmatpush.msrb.mxu1 %v2447_v38  ;;  %v3621_v28 = vld [vmem:[#allocation27_spill] sm:$0xff]  ;;  %v3629_v38 = vld [vmem:[#allocation30_spill] sm:$0xff] }
 0x120   :  { %904 = vmatpush.msrb.mxu2 %v2574_v8  ;;  %924 = vmatpush.msrb.mxu3 %v2451_v39  ;;  %v3630_v39 = vld [vmem:[#allocation19_spill] sm:$0xff] }
 0x121   :  { %865 = vmatpush.msrb.mxu0 %v2414_v31  ;;  %885 = vmatpush.msrb.mxu1 %v2456_v41  ;;  %v3624_v31 = vld [vmem:[#allocation35_spill] sm:$0xff]  ;;  %v3632_v41 = vld [vmem:[#allocation37_spill] sm:$0xff] }
 0x122   :  { %905 = vmatpush.msrb.mxu2 %v2582_v10  ;;  %925 = vmatpush.msrb.mxu3 %v2461_v42  ;;  %v3633_v42 = vld [vmem:[#allocation31_spill] sm:$0xff] }
 0x123   :  { %866 = vmatpush.msrb.mxu0 %v2430_v34  ;;  %886 = vmatpush.msrb.mxu1 %v2477_v46  ;;  %v3625_v34 = vld [vmem:[#allocation28_spill] sm:$0xff]  ;;  %v159_v46 = vpop.f32.mrf.mxu0 }
 0x124   :  { %906 = vmatpush.msrb.mxu2 %v2588_v12  ;;  %926 = vmatpush.msrb.mxu3 %v2484_v47 }
 0x125   :  { %867 = vmatpush.msrb.mxu0 %v2445_v37  ;;  %887 = vmatpush.msrb.mxu1 %v2492_v49  ;;  %v3628_v37 = vld [vmem:[#allocation36_spill] sm:$0xff] }
 0x126   :  { %907 = vmatpush.msrb.mxu2 %v2600_v13  ;;  %927 = vmatpush.msrb.mxu3 %v2496_v50  ;;  %v3635_v50 = vld [vmem:[#allocation60_spill] sm:$0xff] }
 0x127   :  { %868 = vmatpush.msrb.mxu0 %v2453_v40  ;;  %888 = vmatpush.msrb.mxu1 %v2501_v52  ;;  %v3631_v40 = vld [vmem:[#allocation29_spill] sm:$0xff]  ;;  %v160_v52 = vadd.f32 %v159_v46, %v3635_v50 }
 0x128   :  { %908 = vmatpush.msrb.mxu2 %v2608_v21  ;;  %928 = vmatpush.msrb.mxu3 %v2506_v53 }
 0x129   :  { %869 = vmatpush.msrb.mxu0 %v3610_v11  ;;  %889 = vmatpush.msrb.mxu1 %v3611_v14 }
 0x12a   :  { %909 = vmatpush.msrb.mxu2 %v3612_v17  ;;  %929 = vmatpush.msrb.mxu3 %v3613_v18 }
 0x12b   :  { %870 = vmatpush.msrb.mxu0 %v3614_v19  ;;  %890 = vmatpush.msrb.mxu1 %v3615_v22  ;;  %v2908_v47 = vpop.f32.mrf.mxu0 }
 0x12c   :  { %910 = vmatpush.msrb.mxu2 %v3616_v23  ;;  %930 = vmatpush.msrb.mxu3 %v3617_v24 }
 0x12d   :  { %871 = vmatpush.msrb.mxu0 %v3618_v25  ;;  %891 = vmatpush.msrb.mxu1 %v3619_v26 }
 0x12e   :  { %911 = vmatpush.msrb.mxu2 %v3620_v27  ;;  %931 = vmatpush.msrb.mxu3 %v3621_v28 }
 0x12f   :  { %872 = vmatpush.msrb.mxu0 %v3622_v29  ;;  %892 = vmatpush.msrb.mxu1 %v3623_v30 }
 0x130   :  { %912 = vmatpush.msrb.mxu2 %v3624_v31  ;;  %932 = vmatpush.msrb.mxu3 %v3625_v34 }
 0x131   :  { %873 = vmatpush.msrb.mxu0 %v3626_v35  ;;  %893 = vmatpush.msrb.mxu1 %v3627_v36 }
 0x132   :  { %913 = vmatpush.msrb.mxu2 %v3628_v37  ;;  %933 = vmatpush.msrb.mxu3 %v3629_v38 }
 0x133   :  { %874 = vmatpush.msrb.mxu0 %v3630_v39  ;;  %894 = vmatpush.msrb.mxu1 %v3631_v40  ;;  %v2910_v49 = vpop.f32.mrf.mxu0 }
 0x134   :  { %914 = vmatpush.msrb.mxu2 %v3632_v41  ;;  %934 = vmatpush.msrb.mxu3 %v3633_v42  ;;  %3634 = vst [vmem:[#allocation14_spill] sm:$0xff] %v2910_v49 }
 0x190   :  { %v572_v53 = vpop.f32.mrf.mxu0  ;;  %v592_v32 = vpop.f32.mrf.mxu1 }
 0x191   :  { %v635_v56 = vadd.f32 %v572_v53, %v160_v52  ;;  %v636_v54 = vadd.f32 %v592_v32, %v3636_v9 }
 0x193   :  { %v1903_v55 = vmul.f32 -1.442695, %v635_v56  ;;  %v1904_v7 = vmul.f32 -1.442695, %v636_v54 }
 0x195   :  { %1964 = vpow2.f32 %v1903_v55 }
 0x196   :  { %1966 = vpow2.f32 %v1904_v7 }
 0x197   :  { %v632_v48 = vpop.f32.mrf.mxu3  ;;  %v612_v20 = vpop.f32.mrf.mxu2 }
 0x198   :  { %v638_v59 = vadd.f32 %v632_v48, %v3637_v3  ;;  %v637_v51 = vadd.f32 %v612_v20, %v3638_v1 }
 0x19a   :  { %v1905_v4 = vmul.f32 -1.442695, %v638_v59 }
 0x19b   :  { %v1965_v58 = vpop.eup %1964 }
 0x19c   :  { %v1967_v62 = vpop.eup %1966  ;;  %v642_v45 = vadd.f32 1.0, %v1965_v58  ;;  %1968 = vpow2.f32 %v1905_v4 }
 0x19d   :  { %v661_v44 = vadd.f32 1.0, %v1967_v62 }
 0x19e   :  { %1970 = vrcp.f32 %v642_v45  ;;  %v654_v19 = vand.u32 2147483648, %v642_v45  ;;  %v652_v25 = vand.u32 2147483647, %v642_v45  ;;  %vm648_vm0 = vweird.f32 %v642_v45 }
 0x19f   :  { %1972 = vrcp.f32 %v661_v44  ;;  %v673_v22 = vand.u32 2147483648, %v661_v44  ;;  %v671_v29 = vand.u32 2147483647, %v661_v44  ;;  %vm667_vm1 = vweird.f32 %v661_v44 }
 0x1a0   :  { %v655_v46 = vor.u32 1.1754944e-38, %v654_v19  ;;  %vm653_vm4 = vcmp.eq.f32.partialorder %v652_v25, 8.507059e+37  ;;  %v2953_v19 = vld [vmem:[#allocation7 + $0x1b8] sm:$0xff]  ;;  %v2966_v25 = vld [vmem:[#allocation7 + $0x160] sm:$0xff] }
 0x1a1   :  { %v674_v32 = vor.u32 1.1754944e-38, %v673_v22  ;;  %vm672_vm5 = vcmp.eq.f32.partialorder %v671_v29, 8.507059e+37  ;;  %v2956_v22 = vld [vmem:[#allocation7 + $0x180] sm:$0xff] }
 0x1a2   :  { %v1969_v5 = vpop.eup %1968  ;;  %v2976_v29 = vld [vmem:[#allocation7 + $0x140] sm:$0xff] }
 0x1a3   :  { %v681_v15 = vadd.f32 1.0, %v1969_v5 }
 0x1a4   :  { %v1971_v16 = vpop.eup %1970 }
 0x1a5   :  { %v1973_v61 = vpop.eup %1972  ;;  %v644_v6 = vmul.f32 %v1971_v16, %v642_v45  ;;  %1974 = vrcp.f32 %v681_v15  ;;  %vm649_vm14 = vweird.f32 %v1971_v16  ;;  %v693_v45 = vand.u32 2147483648, %v681_v15 }
 0x1a6   :  { %v663_v11 = vmul.f32 %v1973_v61, %v661_v44  ;;  %1976 = vtanh.f32 %v637_v51  ;;  %vm668_vm15 = vweird.f32 %v1973_v61  ;;  %vm650_vm2 = vmor %vm648_vm0, %vm649_vm14  ;;  %vm687_vm7 = vweird.f32 %v681_v15 }
 0x1a7   :  { %v645_v14 = vsub.f32 1.0, %v644_v6  ;;  %vm669_vm3 = vmor %vm667_vm1, %vm668_vm15  ;;  %v691_v44 = vand.u32 2147483647, %v681_v15  ;;  %v694_v5 = vor.u32 1.1754944e-38, %v693_v45  ;;  %v2936_v6 = vld [vmem:[#allocation7 + $0x1c0] sm:$0xff] }
 0x1a8   :  { %v664_v18 = vsub.f32 1.0, %v663_v11  ;;  %v2939_v11 = vld [vmem:[#allocation7 + $0x1c8] sm:$0xff] }
 0x1a9   :  { %v646_v24 = vmul.f32 %v1971_v16, %v645_v14  ;;  %vm692_vm9 = vcmp.eq.f32.partialorder %v691_v44, 8.507059e+37  ;;  %v2943_v14 = vld [vmem:[#allocation7 + $0x1d8] sm:$0xff]  ;;  %v3653_v44 = vld [vmem:[#allocation52_spill] sm:$0xff] }
 0x1aa   :  { %v665_v26 = vmul.f32 %v1973_v61, %v664_v18  ;;  %v2946_v18 = vld [vmem:[#allocation7 + $0x1a0] sm:$0xff] }
 0x1ab   :  { %v1975_v35 = vpop.eup %1974  ;;  %v647_v39 = vadd.f32 %v1971_v16, %v646_v24  ;;  %v2963_v24 = vld [vmem:[#allocation7 + $0x198] sm:$0xff] }
 0x1ac   :  { %v666_v52 = vadd.f32 %v1973_v61, %v665_v26  ;;  %v683_v53 = vmul.f32 %v1975_v35, %v681_v15  ;;  %v1977_v9 = vpop.eup %1976  ;;  %vm688_vm6 = vweird.f32 %v1975_v35  ;;  %v2929_v15 = vld [vmem:[#allocation7 + $0x1e8] sm:$0xff]  ;;  %v2973_v26 = vld [vmem:[#allocation7 + $0x178] sm:$0xff] }
 0x1ad   :  { %v651_v56 = vsel %vm650_vm2, %v1971_v16, %v647_v39  ;;  %vm689_vm8 = vmor %vm687_vm7, %vm688_vm6  ;;  %v2986_v39 = vld [vmem:[#allocation7 + $0x120] sm:$0xff] }
 0x1ae   :  { %v656_v54 = vsel %vm653_vm4, %v655_v46, %v651_v56  ;;  %v670_v55 = vsel %vm669_vm3, %v1973_v61, %v666_v52  ;;  %v684_v7 = vsub.f32 1.0, %v683_v53  ;;  %v2933_v61 = vld [vmem:[#allocation7 + $0x1f8] sm:$0xff]  ;;  %v2996_v52 = vld [vmem:[#allocation7 + $0x100] sm:$0xff] }
 0x1af   :  { %v675_v48 = vsel %vm672_vm5, %v674_v32, %v670_v55  ;;  %v698_v3 = vmul.f32 %v1977_v9, %v656_v54  ;;  %v2993_v46 = vld [vmem:[#allocation7 + $0x138] sm:$0xff]  ;;  %v3006_v32 = vld [vmem:[#allocation7 + $0xe0] sm:$0xff] }
 0x1b0   :  { %v697_v59 = vmul.f32 %v675_v48, %v2835_v43  ;;  %v685_v4 = vmul.f32 %v1975_v35, %v684_v7  ;;  %v2926_v43 = vld [vmem:[#allocation7 + $0x1e0] sm:$0xff]  ;;  %v3003_v53 = vld [vmem:[#allocation7 + $0x118] sm:$0xff] }
 0x1b1   :  { %v3013_v56 = vld [vmem:[#allocation7 + $0xf8] sm:$0xff]  ;;  %v3016_v9 = vld [vmem:[#allocation7 + $0xc0] sm:$0xff] }
 0x1b2   :  { %v2917_v58 = vadd.f32 %v698_v3, %v697_v59  ;;  %v686_v62 = vadd.f32 %v1975_v35, %v685_v4  ;;  %v3023_v54 = vld [vmem:[#allocation7 + $0xd8] sm:$0xff]  ;;  %v3026_v55 = vld [vmem:[#allocation7 + $0xa0] sm:$0xff] }
 0x1b3   :  { %3640 = vst [vmem:[#allocation32_spill] sm:$0xff] %v3023_v54  ;;  %v3033_v7 = vld [vmem:[#allocation7 + $0xb8] sm:$0xff]  ;;  %v3036_v48 = vld [vmem:[#allocation7 + $0x80] sm:$0xff] }
 0x1b4   :  { %1978 = vtanh.f32 %v2917_v58  ;;  %v690_v20 = vsel %vm689_vm8, %v1975_v35, %v686_v62  ;;  %v2983_v35 = vld [vmem:[#allocation7 + $0x158] sm:$0xff]  ;;  %3641 = vst [vmem:[#allocation22_spill] sm:$0xff] %v3026_v55  ;;  %v3046_v59 = vld [vmem:[#allocation7 + $0x60] sm:$0xff] }
 0x1b5   :  { %v695_v1 = vsel %vm692_vm9, %v694_v5, %v690_v20  ;;  %3643 = vst [vmem:[#allocation21_spill] sm:$0xff] %v3033_v7  ;;  %v3043_v3 = vld [vmem:[#allocation7 + $0x98] sm:$0xff]  ;;  %v3054_v4 = vld [vmem:[#allocation7 + $0x40] sm:$0xff] }
 0x1b6   :  { %3644 = vst [vmem:[#allocation33_spill] sm:$0xff] %v3036_v48 }
 0x1b7   :  { %3646 = vst [vmem:[#allocation16_spill] sm:$0xff] %v3043_v3 }
 0x1b8   :  { %3647 = vst [vmem:[#allocation24_spill] sm:$0xff] %v3046_v59 }
 0x1b9   :  { %3649 = vst [vmem:[#allocation27_spill] sm:$0xff] %v3054_v4 }
 0x1ba   :  { %v1979_v16 = vpop.eup %1978 }
 0x1bb   :  { %v2920_v51 = vmul.f32 %v1979_v16, %v695_v1 }
 0x1bd   :  { %3639 = vst [vmem:[#allocation20_spill] sm:$0xff] %v2920_v51  ;;  %723 = vmatmul.f32.vlgmr.msra.gmra.mxu0 %v2920_v51  ;;  %743 = vmatmul.f32.vlgmr.msra.gmra.mxu1 %v2920_v51 }
 0x1be   :  { %763 = vmatmul.f32.vlgmr.msra.gmra.mxu2 %v2920_v51  ;;  %783 = vmatmul.f32.vlgmr.msra.gmra.mxu3 %v2920_v51 }
 0x1bf   :  { %1011 = vmatpush.msra.mxu0 %v2926_v43  ;;  %1031 = vmatpush.msra.mxu1 %v2929_v15 }
 0x1c0   :  { %1051 = vmatpush.msra.mxu2 %v2523_v57  ;;  %1071 = vmatpush.msra.mxu3 %v2933_v61  ;;  %v2949_v57 = vld [vmem:[#allocation7 + $0x1a8] sm:$0xff] }
 0x1c1   :  { %1012 = vmatpush.msra.mxu0 %v2936_v6  ;;  %1032 = vmatpush.msra.mxu1 %v2939_v11 }
 0x1c2   :  { %1052 = vmatpush.msra.mxu2 %v2534_v60  ;;  %1072 = vmatpush.msra.mxu3 %v2943_v14  ;;  %v2959_v60 = vld [vmem:[#allocation7 + $0x188] sm:$0xff] }
 0x1c3   :  { %1013 = vmatpush.msra.mxu0 %v2946_v18  ;;  %1033 = vmatpush.msra.mxu1 %v2949_v57 }
 0x1c4   :  { %1053 = vmatpush.msra.mxu2 %v2543_v63  ;;  %1073 = vmatpush.msra.mxu3 %v2953_v19  ;;  %v2969_v63 = vld [vmem:[#allocation7 + $0x168] sm:$0xff] }
 0x1c5   :  { %1014 = vmatpush.msra.mxu0 %v2956_v22  ;;  %1034 = vmatpush.msra.mxu1 %v2959_v60 }
 0x1c6   :  { %1054 = vmatpush.msra.mxu2 %v2553_v0  ;;  %1074 = vmatpush.msra.mxu3 %v2963_v24  ;;  %v2979_v0 = vld [vmem:[#allocation7 + $0x148] sm:$0xff] }
 0x1c7   :  { %1015 = vmatpush.msra.mxu0 %v2966_v25  ;;  %1035 = vmatpush.msra.mxu1 %v2969_v63 }
 0x1c8   :  { %1055 = vmatpush.msra.mxu2 %v2564_v2  ;;  %1075 = vmatpush.msra.mxu3 %v2973_v26  ;;  %v2989_v2 = vld [vmem:[#allocation7 + $0x128] sm:$0xff] }
 0x1c9   :  { %1016 = vmatpush.msra.mxu0 %v2976_v29  ;;  %1036 = vmatpush.msra.mxu1 %v2979_v0 }
 0x1ca   :  { %1056 = vmatpush.msra.mxu2 %v2574_v8  ;;  %1076 = vmatpush.msra.mxu3 %v2983_v35  ;;  %v2999_v8 = vld [vmem:[#allocation7 + $0x108] sm:$0xff] }
 0x1cb   :  { %1017 = vmatpush.msra.mxu0 %v2986_v39  ;;  %1037 = vmatpush.msra.mxu1 %v2989_v2 }
 0x1cc   :  { %1057 = vmatpush.msra.mxu2 %v2582_v10  ;;  %1077 = vmatpush.msra.mxu3 %v2993_v46  ;;  %v3009_v10 = vld [vmem:[#allocation7 + $0xe8] sm:$0xff] }
 0x1cd   :  { %1018 = vmatpush.msra.mxu0 %v2996_v52  ;;  %1038 = vmatpush.msra.mxu1 %v2999_v8 }
 0x1ce   :  { %1058 = vmatpush.msra.mxu2 %v2588_v12  ;;  %1078 = vmatpush.msra.mxu3 %v3003_v53  ;;  %v3019_v12 = vld [vmem:[#allocation7 + $0xc8] sm:$0xff] }
 0x1cf   :  { %1019 = vmatpush.msra.mxu0 %v3006_v32  ;;  %1039 = vmatpush.msra.mxu1 %v3009_v10 }
 0x1d0   :  { %1059 = vmatpush.msra.mxu2 %v2600_v13  ;;  %1079 = vmatpush.msra.mxu3 %v3013_v56  ;;  %v3029_v13 = vld [vmem:[#allocation7 + $0xa8] sm:$0xff] }
 0x1d1   :  { %1020 = vmatpush.msra.mxu0 %v3016_v9  ;;  %1040 = vmatpush.msra.mxu1 %v3019_v12  ;;  %3642 = vst [vmem:[#allocation15_spill] sm:$0xff] %v3029_v13 }
 0x1d2   :  { %1060 = vmatpush.msra.mxu2 %v2608_v21  ;;  %1080 = vmatpush.msra.mxu3 %v3023_v54  ;;  %v3039_v21 = vld [vmem:[#allocation7 + $0x88] sm:$0xff] }
 0x1d3   :  { %1021 = vmatpush.msra.mxu0 %v3026_v55  ;;  %1041 = vmatpush.msra.mxu1 %v3029_v13  ;;  %3645 = vst [vmem:[#allocation23_spill] sm:$0xff] %v3039_v21 }
 0x1d4   :  { %1061 = vmatpush.msra.mxu2 %v3612_v17  ;;  %1081 = vmatpush.msra.mxu3 %v3033_v7  ;;  %v3049_v17 = vld [vmem:[#allocation7 + $0x68] sm:$0xff] }
 0x1d5   :  { %1022 = vmatpush.msra.mxu0 %v3036_v48  ;;  %1042 = vmatpush.msra.mxu1 %v3039_v21  ;;  %3648 = vst [vmem:[#allocation34_spill] sm:$0xff] %v3049_v17 }
 0x1d6   :  { %1062 = vmatpush.msra.mxu2 %v3616_v23  ;;  %1082 = vmatpush.msra.mxu3 %v3043_v3  ;;  %v3060_v23 = vld [vmem:[#allocation7 + $0x20] sm:$0xff] }
 0x1d7   :  { %1023 = vmatpush.msra.mxu0 %v3046_v59  ;;  %1043 = vmatpush.msra.mxu1 %v3049_v17  ;;  %3650 = vst [vmem:[#allocation17_spill] sm:$0xff] %v3060_v23 }
 0x1d8   :  { %1063 = vmatpush.msra.mxu2 %v3620_v27  ;;  %1083 = vmatpush.msra.mxu3 %v3621_v28  ;;  %v3066_v27 = vld [vmem:[#allocation7] sm:$0xff]  ;;  %v163_v28 = vadd.f32 %v2908_v47, %v3635_v50 }
 0x1d9   :  { %1024 = vmatpush.msra.mxu0 %v3054_v4  ;;  %1044 = vmatpush.msra.mxu1 %v3623_v30  ;;  %3651 = vst [vmem:[#allocation25_spill] sm:$0xff] %v3066_v27 }
 0x1da   :  { %1064 = vmatpush.msra.mxu2 %v3624_v31  ;;  %1084 = vmatpush.msra.mxu3 %v3625_v34 }
 0x1db   :  { %1025 = vmatpush.msra.mxu0 %v3060_v23  ;;  %1045 = vmatpush.msra.mxu1 %v3627_v36  ;;  %v3652_v36 = vld [vmem:[#allocation45_spill] sm:$0xff] }
 0x1dc   :  { %1065 = vmatpush.msra.mxu2 %v3628_v37  ;;  %1085 = vmatpush.msra.mxu3 %v3629_v38 }
 0x1dd   :  { %1026 = vmatpush.msra.mxu0 %v3066_v27  ;;  %1046 = vmatpush.msra.mxu1 %v3631_v40 }
 0x1de   :  { %1066 = vmatpush.msra.mxu2 %v3632_v41  ;;  %1086 = vmatpush.msra.mxu3 %v3633_v42 }
 0x23a   :  { %v724_v30 = vpop.f32.mrf.mxu0  ;;  %v744_v31 = vpop.f32.mrf.mxu1 }
 0x23b   :  { %v787_v34 = vadd.f32 %v724_v30, %v163_v28  ;;  %v788_v37 = vadd.f32 %v744_v31, %v3652_v36  ;;  %v3654_v31 = vld [vmem:[#allocation44_spill] sm:$0xff] }
 0x23d   :  { %v1906_v62 = vmul.f32 -1.442695, %v787_v34  ;;  %v1907_v38 = vmul.f32 -1.442695, %v788_v37 }
 0x23f   :  { %1980 = vpow2.f32 %v1906_v62 }
 0x240   :  { %1982 = vpow2.f32 %v1907_v38 }
 0x241   :  { %v784_v45 = vpop.f32.mrf.mxu3  ;;  %v764_v47 = vpop.f32.mrf.mxu2 }
 0x242   :  { %v790_v20 = vadd.f32 %v784_v45, %v3653_v44  ;;  %v789_v34 = vadd.f32 %v764_v47, %v3654_v31 }
 0x244   :  { %v1908_v40 = vmul.f32 -1.442695, %v790_v20 }
 0x245   :  { %v1981_v5 = vpop.eup %1980 }
 0x246   :  { %v1983_v41 = vpop.eup %1982  ;;  %v794_v16 = vadd.f32 1.0, %v1981_v5  ;;  %1984 = vpow2.f32 %v1908_v40 }
 0x247   :  { %v813_v42 = vadd.f32 1.0, %v1983_v41 }
 0x248   :  { %1986 = vrcp.f32 %v794_v16  ;;  %v806_v44 = vand.u32 2147483648, %v794_v16  ;;  %v804_v40 = vand.u32 2147483647, %v794_v16  ;;  %vm800_vm12 = vweird.f32 %v794_v16 }
 0x249   :  { %1988 = vrcp.f32 %v813_v42  ;;  %v825_v20 = vand.u32 2147483648, %v813_v42  ;;  %v823_v51 = vand.u32 2147483647, %v813_v42  ;;  %vm819_vm13 = vweird.f32 %v813_v42 }
 0x24a   :  { %v807_v47 = vor.u32 1.1754944e-38, %v806_v44  ;;  %vm805_vm0 = vcmp.eq.f32.partialorder %v804_v40, 8.507059e+37 }
 0x24b   :  { %vm824_vm1 = vcmp.eq.f32.partialorder %v823_v51, 8.507059e+37 }
 0x24c   :  { %v1985_v1 = vpop.eup %1984 }
 0x24d   :  { %v833_v28 = vadd.f32 1.0, %v1985_v1 }
 0x24e   :  { %v1987_v30 = vpop.eup %1986 }
 0x24f   :  { %v1989_v36 = vpop.eup %1988  ;;  %v796_v37 = vmul.f32 %v1987_v30, %v794_v16  ;;  %1990 = vrcp.f32 %v833_v28  ;;  %vm801_vm10 = vweird.f32 %v1987_v30  ;;  %v845_v44 = vand.u32 2147483648, %v833_v28 }
 0x250   :  { %v815_v62 = vmul.f32 %v1989_v36, %v813_v42  ;;  %1992 = vtanh.f32 %v789_v34  ;;  %vm820_vm11 = vweird.f32 %v1989_v36  ;;  %vm802_vm14 = vmor %vm800_vm12, %vm801_vm10  ;;  %vm839_vm3 = vweird.f32 %v833_v28 }
 0x251   :  { %v797_v38 = vsub.f32 1.0, %v796_v37  ;;  %vm821_vm15 = vmor %vm819_vm13, %vm820_vm11  ;;  %v826_v37 = vor.u32 1.1754944e-38, %v825_v20  ;;  %v846_v40 = vor.u32 1.1754944e-38, %v845_v44  ;;  %v3665_v44 = vld [vmem:[#allocation17_spill] sm:$0xff] }
 0x252   :  { %v816_v45 = vsub.f32 1.0, %v815_v62 }
 0x253   :  { %v798_v5 = vmul.f32 %v1987_v30, %v797_v38 }
 0x254   :  { %v817_v41 = vmul.f32 %v1989_v36, %v816_v45 }
 0x255   :  { %v1991_v33 = vpop.eup %1990  ;;  %v799_v1 = vadd.f32 %v1987_v30, %v798_v5 }
 0x256   :  { %v818_v31 = vadd.f32 %v1989_v36, %v817_v41  ;;  %v835_v49 = vmul.f32 %v1991_v33, %v833_v28  ;;  %v1993_v34 = vpop.eup %1992  ;;  %vm840_vm2 = vweird.f32 %v1991_v33  ;;  %v3131_v41 = vld [vmem:[#allocation7 + $0x110] sm:$0xff] }
 0x257   :  { %v803_v62 = vsel %vm802_vm14, %v1987_v30, %v799_v1  ;;  %v843_v30 = vand.u32 2147483647, %v833_v28  ;;  %vm841_vm4 = vmor %vm839_vm3, %vm840_vm2  ;;  %v3125_v28 = vld [vmem:[#allocation7 + $0x130] sm:$0xff] }
 0x258   :  { %v808_v50 = vsel %vm805_vm0, %v807_v47, %v803_v62  ;;  %v822_v38 = vsel %vm821_vm15, %v1989_v36, %v818_v31  ;;  %v836_v27 = vsub.f32 1.0, %v835_v49  ;;  %v3137_v1 = vld [vmem:[#allocation7 + $0xf0] sm:$0xff] }
 0x259   :  { %v827_v45 = vsel %vm824_vm1, %v826_v37, %v822_v38  ;;  %v850_v23 = vmul.f32 %v1993_v34, %v808_v50  ;;  %vm844_vm5 = vcmp.eq.f32.partialorder %v843_v30, 8.507059e+37  ;;  %v3089_v50 = vld [vmem:[#allocation7 + $0x1f0] sm:$0xff]  ;;  %v3164_v34 = vld [vmem:[#allocation7 + $0x78] sm:$0xff]  ;;  %v3661_v38 = vld [vmem:[#allocation27_spill] sm:$0xff] }
 0x25a   :  { %v849_v4 = vmul.f32 %v827_v45, %v2917_v58  ;;  %v837_v5 = vmul.f32 %v1991_v33, %v836_v27  ;;  %v3101_v58 = vld [vmem:[#allocation7 + $0x1b0] sm:$0xff]  ;;  %3660 = vst [vmem:[#allocation30_spill] sm:$0xff] %v3164_v34  ;;  %v3168_v45 = vld [vmem:[#allocation7 + $0x48] sm:$0xff] }
 0x25b   :  { %v3119_v27 = vld [vmem:[#allocation7 + $0x150] sm:$0xff]  ;;  %3662 = vst [vmem:[#allocation19_spill] sm:$0xff] %v3168_v45  ;;  %v3178_v30 = vld [vmem:[#allocation7 + $0x28] sm:$0xff] }
 0x25c   :  { %v3078_v16 = vadd.f32 %v850_v23, %v849_v4  ;;  %v838_v42 = vadd.f32 %v1991_v33, %v837_v5  ;;  %v3107_v4 = vld [vmem:[#allocation7 + $0x190] sm:$0xff]  ;;  %3666 = vst [vmem:[#allocation31_spill] sm:$0xff] %v3178_v30 }
 0x25d   :  { %v3113_v23 = vld [vmem:[#allocation7 + $0x170] sm:$0xff] }
 0x25e   :  { %1994 = vtanh.f32 %v3078_v16  ;;  %v842_v20 = vsel %vm841_vm4, %v1991_v33, %v838_v42  ;;  %v3095_v33 = vld [vmem:[#allocation7 + $0x1d0] sm:$0xff]  ;;  %v3174_v42 = vld [vmem:[#allocation7 + $0x58] sm:$0xff] }
 0x25f   :  { %v847_v49 = vsel %vm844_vm5, %v846_v40, %v842_v20  ;;  %v3143_v47 = vld [vmem:[#allocation7 + $0xd0] sm:$0xff]  ;;  %3664 = vst [vmem:[#allocation37_spill] sm:$0xff] %v3174_v42  ;;  %v3184_v40 = vld [vmem:[#allocation7 + $0x38] sm:$0xff] }
 0x260   :  { %3656 = vst [vmem:[#allocation28_spill] sm:$0xff] %v3143_v47  ;;  %v3149_v31 = vld [vmem:[#allocation7 + $0xb0] sm:$0xff] }
 0x261   :  { %3657 = vst [vmem:[#allocation18_spill] sm:$0xff] %v3149_v31  ;;  %v3155_v37 = vld [vmem:[#allocation7 + $0x90] sm:$0xff] }
 0x262   :  { %3658 = vst [vmem:[#allocation26_spill] sm:$0xff] %v3155_v37  ;;  %v3161_v62 = vld [vmem:[#allocation7 + $0x70] sm:$0xff] }
 0x263   :  { %3659 = vst [vmem:[#allocation36_spill] sm:$0xff] %v3161_v62  ;;  %v3171_v5 = vld [vmem:[#allocation7 + $0x50] sm:$0xff] }
 0x264   :  { %v1995_v51 = vpop.eup %1994  ;;  %3663 = vst [vmem:[#allocation29_spill] sm:$0xff] %v3171_v5  ;;  %v3181_v20 = vld [vmem:[#allocation7 + $0x30] sm:$0xff] }
 0x265   :  { %v3081_v36 = vmul.f32 %v1995_v51, %v847_v49  ;;  %3667 = vst [vmem:[#allocation42_spill] sm:$0xff] %v3181_v20  ;;  %v3669_v51 = vld [vmem:[#allocation25_spill] sm:$0xff]  ;;  %v3188_v49 = vld [vmem:[#allocation7 + $0x8] sm:$0xff] }
 0x266   :  { %3668 = vst [vmem:[#allocation49_spill] sm:$0xff] %v3184_v40 }
 0x267   :  { %3655 = vst [vmem:[#allocation35_spill] sm:$0xff] %v3081_v36  ;;  %875 = vmatmul.f32.vlgmr.msrb.gmra.mxu0 %v3081_v36  ;;  %895 = vmatmul.f32.vlgmr.msrb.gmra.mxu1 %v3081_v36 }
 0x268   :  { %915 = vmatmul.f32.vlgmr.msrb.gmra.mxu2 %v3081_v36  ;;  %935 = vmatmul.f32.vlgmr.msrb.gmra.mxu3 %v3081_v36  ;;  %3670 = vst [vmem:[#allocation41_spill] sm:$0xff] %v3188_v49  ;;  %v3191_v36 = vld [vmem:[#allocation7 + $0x10] sm:$0xff] }
 0x269   :  { %1163 = vmatpush.msrb.mxu0 %v2926_v43  ;;  %1183 = vmatpush.msrb.mxu1 %v2929_v15  ;;  %3671 = vst [vmem:[#allocation45_spill] sm:$0xff] %v3191_v36 }
 0x26a   :  { %1203 = vmatpush.msrb.mxu2 %v3089_v50  ;;  %1223 = vmatpush.msrb.mxu3 %v2933_v61 }
 0x26b   :  { %1164 = vmatpush.msrb.mxu0 %v2936_v6  ;;  %1184 = vmatpush.msrb.mxu1 %v2939_v11 }
 0x26c   :  { %1204 = vmatpush.msrb.mxu2 %v3095_v33  ;;  %1224 = vmatpush.msrb.mxu3 %v2943_v14 }
 0x26d   :  { %1165 = vmatpush.msrb.mxu0 %v2946_v18  ;;  %1185 = vmatpush.msrb.mxu1 %v2949_v57 }
 0x26e   :  { %1205 = vmatpush.msrb.mxu2 %v3101_v58  ;;  %1225 = vmatpush.msrb.mxu3 %v2953_v19 }
 0x26f   :  { %1166 = vmatpush.msrb.mxu0 %v2956_v22  ;;  %1186 = vmatpush.msrb.mxu1 %v2959_v60 }
 0x270   :  { %1206 = vmatpush.msrb.mxu2 %v3107_v4  ;;  %1226 = vmatpush.msrb.mxu3 %v2963_v24 }
 0x271   :  { %1167 = vmatpush.msrb.mxu0 %v2966_v25  ;;  %1187 = vmatpush.msrb.mxu1 %v2969_v63 }
 0x272   :  { %1207 = vmatpush.msrb.mxu2 %v3113_v23  ;;  %1227 = vmatpush.msrb.mxu3 %v2973_v26 }
 0x273   :  { %1168 = vmatpush.msrb.mxu0 %v2976_v29  ;;  %1188 = vmatpush.msrb.mxu1 %v2979_v0 }
 0x274   :  { %1208 = vmatpush.msrb.mxu2 %v3119_v27  ;;  %1228 = vmatpush.msrb.mxu3 %v2983_v35 }
 0x275   :  { %1169 = vmatpush.msrb.mxu0 %v2986_v39  ;;  %1189 = vmatpush.msrb.mxu1 %v2989_v2 }
 0x276   :  { %1209 = vmatpush.msrb.mxu2 %v3125_v28  ;;  %1229 = vmatpush.msrb.mxu3 %v2993_v46 }
 0x277   :  { %1170 = vmatpush.msrb.mxu0 %v2996_v52  ;;  %1190 = vmatpush.msrb.mxu1 %v2999_v8 }
 0x278   :  { %1210 = vmatpush.msrb.mxu2 %v3131_v41  ;;  %1230 = vmatpush.msrb.mxu3 %v3003_v53 }
 0x279   :  { %1171 = vmatpush.msrb.mxu0 %v3006_v32  ;;  %1191 = vmatpush.msrb.mxu1 %v3009_v10 }
 0x27a   :  { %1211 = vmatpush.msrb.mxu2 %v3137_v1  ;;  %1231 = vmatpush.msrb.mxu3 %v3013_v56 }
 0x27b   :  { %1172 = vmatpush.msrb.mxu0 %v3016_v9  ;;  %1192 = vmatpush.msrb.mxu1 %v3019_v12 }
 0x27c   :  { %1212 = vmatpush.msrb.mxu2 %v3143_v47  ;;  %1232 = vmatpush.msrb.mxu3 %v3023_v54 }
 0x27d   :  { %1173 = vmatpush.msrb.mxu0 %v3026_v55  ;;  %1193 = vmatpush.msrb.mxu1 %v3029_v13 }
 0x27e   :  { %1213 = vmatpush.msrb.mxu2 %v3149_v31  ;;  %1233 = vmatpush.msrb.mxu3 %v3033_v7 }
 0x27f   :  { %1174 = vmatpush.msrb.mxu0 %v3036_v48  ;;  %1194 = vmatpush.msrb.mxu1 %v3039_v21 }
 0x280   :  { %1214 = vmatpush.msrb.mxu2 %v3155_v37  ;;  %1234 = vmatpush.msrb.mxu3 %v3043_v3 }
 0x281   :  { %1175 = vmatpush.msrb.mxu0 %v3046_v59  ;;  %1195 = vmatpush.msrb.mxu1 %v3049_v17  ;;  %v3676_v17 = vld [vmem:[#allocation55_spill] sm:$0xff] }
 0x282   :  { %1215 = vmatpush.msrb.mxu2 %v3161_v62  ;;  %1235 = vmatpush.msrb.mxu3 %v3164_v34 }
 0x283   :  { %1176 = vmatpush.msrb.mxu0 %v3661_v38  ;;  %1196 = vmatpush.msrb.mxu1 %v3168_v45  ;;  %v3675_v38 = vld [vmem:[#allocation47_spill] sm:$0xff] }
 0x284   :  { %1216 = vmatpush.msrb.mxu2 %v3171_v5  ;;  %1236 = vmatpush.msrb.mxu3 %v3174_v42 }
 0x285   :  { %1177 = vmatpush.msrb.mxu0 %v3665_v44  ;;  %1197 = vmatpush.msrb.mxu1 %v3178_v30  ;;  %v3194_v44 = vld [vmem:[#allocation7 + $0x18] sm:$0xff]  ;;  %v3673_v30 = vld [vmem:[#allocation60_spill] sm:$0xff] }
 0x286   :  { %1217 = vmatpush.msrb.mxu2 %v3181_v20  ;;  %1237 = vmatpush.msrb.mxu3 %v3184_v40  ;;  %3672 = vst [vmem:[#allocation52_spill] sm:$0xff] %v3194_v44  ;;  %v3674_v20 = vld [vmem:[#allocation14_spill] sm:$0xff] }
 0x287   :  { %1178 = vmatpush.msrb.mxu0 %v3669_v51  ;;  %1198 = vmatpush.msrb.mxu1 %v3188_v49  ;;  %v166_v42 = vadd.f32 %v3674_v20, %v3673_v30 }
 0x288   :  { %1218 = vmatpush.msrb.mxu2 %v3191_v36  ;;  %1238 = vmatpush.msrb.mxu3 %v3194_v44 }
 0x2e4   :  { %v876_v5 = vpop.f32.mrf.mxu0  ;;  %v896_v45 = vpop.f32.mrf.mxu1 }
 0x2e5   :  { %v939_v40 = vadd.f32 %v876_v5, %v166_v42  ;;  %v940_v51 = vadd.f32 %v896_v45, %v3675_v38  ;;  %v3677_v38 = vld [vmem:[#allocation46_spill] sm:$0xff] }
 0x2e7   :  { %v1909_v34 = vmul.f32 -1.442695, %v939_v40  ;;  %v1910_v62 = vmul.f32 -1.442695, %v940_v51 }
 0x2e9   :  { %1996 = vpow2.f32 %v1909_v34 }
 0x2ea   :  { %1998 = vpow2.f32 %v1910_v62 }
 0x2eb   :  { %v936_v49 = vpop.f32.mrf.mxu3  ;;  %v916_v20 = vpop.f32.mrf.mxu2 }
 0x2ec   :  { %v942_v59 = vadd.f32 %v936_v49, %v3676_v17  ;;  %v941_v45 = vadd.f32 %v916_v20, %v3677_v38 }
 0x2ee   :  { %v1911_v36 = vmul.f32 -1.442695, %v942_v59 }
 0x2ef   :  { %v1997_v3 = vpop.eup %1996 }
 0x2f0   :  { %v1999_v37 = vpop.eup %1998  ;;  %v946_v21 = vadd.f32 1.0, %v1997_v3  ;;  %2000 = vpow2.f32 %v1911_v36 }
 0x2f1   :  { %v965_v44 = vadd.f32 1.0, %v1999_v37 }
 0x2f2   :  { %2002 = vrcp.f32 %v946_v21  ;;  %v958_v59 = vand.u32 2147483648, %v946_v21  ;;  %v956_v36 = vand.u32 2147483647, %v946_v21  ;;  %vm952_vm8 = vweird.f32 %v946_v21 }
 0x2f3   :  { %2004 = vrcp.f32 %v965_v44  ;;  %v977_v49 = vand.u32 2147483648, %v965_v44  ;;  %v975_v48 = vand.u32 2147483647, %v965_v44  ;;  %vm971_vm9 = vweird.f32 %v965_v44 }
 0x2f4   :  { %v959_v20 = vor.u32 1.1754944e-38, %v958_v59  ;;  %vm957_vm12 = vcmp.eq.f32.partialorder %v956_v36, 8.507059e+37 }
 0x2f5   :  { %vm976_vm13 = vcmp.eq.f32.partialorder %v975_v48, 8.507059e+37 }
 0x2f6   :  { %v2001_v30 = vpop.eup %2000 }
 0x2f7   :  { %v985_v5 = vadd.f32 1.0, %v2001_v30 }
 0x2f8   :  { %v2003_v42 = vpop.eup %2002 }
 0x2f9   :  { %v2005_v40 = vpop.eup %2004  ;;  %v948_v34 = vmul.f32 %v2003_v42, %v946_v21  ;;  %2006 = vrcp.f32 %v985_v5  ;;  %vm953_vm6 = vweird.f32 %v2003_v42  ;;  %v997_v59 = vand.u32 2147483648, %v985_v5 }
 0x2fa   :  { %v967_v62 = vmul.f32 %v2005_v40, %v965_v44  ;;  %2008 = vtanh.f32 %v941_v45  ;;  %vm972_vm7 = vweird.f32 %v2005_v40  ;;  %vm954_vm10 = vmor %vm952_vm8, %vm953_vm6  ;;  %vm991_vm15 = vweird.f32 %v985_v5 }
 0x2fb   :  { %v949_v51 = vsub.f32 1.0, %v948_v34  ;;  %vm973_vm11 = vmor %vm971_vm9, %vm972_vm7  ;;  %v978_v34 = vor.u32 1.1754944e-38, %v977_v49  ;;  %v998_v36 = vor.u32 1.1754944e-38, %v997_v59  ;;  %v3697_v59 = vld [vmem:[#allocation17_spill] sm:$0xff] }
 0x2fc   :  { %v968_v17 = vsub.f32 1.0, %v967_v62 }
 0x2fd   :  { %v950_v3 = vmul.f32 %v2003_v42, %v949_v51 }
 0x2fe   :  { %v969_v37 = vmul.f32 %v2005_v40, %v968_v17 }
 0x2ff   :  { %v2007_v7 = vpop.eup %2006  ;;  %v951_v30 = vadd.f32 %v2003_v42, %v950_v3 }
 0x300   :  { %v970_v38 = vadd.f32 %v2005_v40, %v969_v37  ;;  %v987_v31 = vmul.f32 %v2007_v7, %v985_v5  ;;  %v2009_v45 = vpop.eup %2008  ;;  %vm992_vm14 = vweird.f32 %v2007_v7  ;;  %v3686_v37 = vld [vmem:[#allocation23_spill] sm:$0xff] }
 0x301   :  { %v955_v62 = vsel %vm954_vm10, %v2003_v42, %v951_v30  ;;  %v995_v42 = vand.u32 2147483647, %v985_v5  ;;  %vm993_vm0 = vmor %vm991_vm15, %vm992_vm14  ;;  %v3685_v5 = vld [vmem:[#allocation33_spill] sm:$0xff]  ;;  %v3687_v30 = vld [vmem:[#allocation26_spill] sm:$0xff] }
 0x302   :  { %v960_v13 = vsel %vm957_vm12, %v959_v20, %v955_v62  ;;  %v974_v51 = vsel %vm973_vm11, %v2005_v40, %v970_v38  ;;  %v988_v55 = vsub.f32 1.0, %v987_v31  ;;  %v3688_v20 = vld [vmem:[#allocation16_spill] sm:$0xff] }
 0x303   :  { %v979_v17 = vsel %vm976_vm13, %v978_v34, %v974_v51  ;;  %v1002_v54 = vmul.f32 %v2009_v45, %v960_v13  ;;  %vm996_vm1 = vcmp.eq.f32.partialorder %v995_v42, 8.507059e+37  ;;  %v3681_v13 = vld [vmem:[#allocation22_spill] sm:$0xff]  ;;  %v3689_v38 = vld [vmem:[#allocation24_spill] sm:$0xff]  ;;  %v3693_v51 = vld [vmem:[#allocation27_spill] sm:$0xff] }
 0x304   :  { %v1001_v47 = vmul.f32 %v979_v17, %v3078_v16  ;;  %v989_v3 = vmul.f32 %v2007_v7, %v988_v55  ;;  %v3680_v55 = vld [vmem:[#allocation32_spill] sm:$0xff]  ;;  %v3683_v16 = vld [vmem:[#allocation18_spill] sm:$0xff]  ;;  %v3694_v17 = vld [vmem:[#allocation19_spill] sm:$0xff] }
 0x305   :  { %v3690_v34 = vld [vmem:[#allocation34_spill] sm:$0xff]  ;;  %v3691_v62 = vld [vmem:[#allocation36_spill] sm:$0xff]  ;;  %v3698_v42 = vld [vmem:[#allocation31_spill] sm:$0xff] }
 0x306   :  { %v3203_v21 = vadd.f32 %v1002_v54, %v1001_v47  ;;  %v990_v44 = vadd.f32 %v2007_v7, %v989_v3  ;;  %v3679_v54 = vld [vmem:[#allocation28_spill] sm:$0xff]  ;;  %v3684_v47 = vld [vmem:[#allocation21_spill] sm:$0xff]  ;;  %v3692_v45 = vld [vmem:[#allocation30_spill] sm:$0xff] }
 0x307   :  { %v3695_v3 = vld [vmem:[#allocation29_spill] sm:$0xff] }
 0x308   :  { %2010 = vtanh.f32 %v3203_v21  ;;  %v994_v49 = vsel %vm993_vm0, %v2007_v7, %v990_v44  ;;  %v3682_v7 = vld [vmem:[#allocation15_spill] sm:$0xff]  ;;  %v3696_v44 = vld [vmem:[#allocation37_spill] sm:$0xff] }
 0x309   :  { %v999_v31 = vsel %vm996_vm1, %v998_v36, %v994_v49  ;;  %v3699_v49 = vld [vmem:[#allocation42_spill] sm:$0xff]  ;;  %v3700_v36 = vld [vmem:[#allocation49_spill] sm:$0xff] }
 0x30e   :  { %v2011_v48 = vpop.eup %2010 }
 0x30f   :  { %v3206_v40 = vmul.f32 %v2011_v48, %v999_v31  ;;  %v3701_v48 = vld [vmem:[#allocation25_spill] sm:$0xff] }
 0x310   :  { %v3702_v31 = vld [vmem:[#allocation41_spill] sm:$0xff] }
 0x311   :  { %3678 = vst [vmem:[#allocation44_spill] sm:$0xff] %v3206_v40  ;;  %1027 = vmatmul.f32.vlgmr.msra.gmra.mxu0 %v3206_v40  ;;  %1047 = vmatmul.f32.vlgmr.msra.gmra.mxu1 %v3206_v40 }
 0x312   :  { %1067 = vmatmul.f32.vlgmr.msra.gmra.mxu2 %v3206_v40  ;;  %1087 = vmatmul.f32.vlgmr.msra.gmra.mxu3 %v3206_v40  ;;  %v3703_v40 = vld [vmem:[#allocation45_spill] sm:$0xff] }
 0x313   :  { %1315 = vmatpush.msra.mxu0 %v2926_v43  ;;  %1335 = vmatpush.msra.mxu1 %v2929_v15 }
 0x314   :  { %1355 = vmatpush.msra.mxu2 %v3089_v50  ;;  %1375 = vmatpush.msra.mxu3 %v2933_v61 }
 0x315   :  { %1316 = vmatpush.msra.mxu0 %v2936_v6  ;;  %1336 = vmatpush.msra.mxu1 %v2939_v11 }
 0x316   :  { %1356 = vmatpush.msra.mxu2 %v3095_v33  ;;  %1376 = vmatpush.msra.mxu3 %v2943_v14 }
 0x317   :  { %1317 = vmatpush.msra.mxu0 %v2946_v18  ;;  %1337 = vmatpush.msra.mxu1 %v2949_v57 }
 0x318   :  { %1357 = vmatpush.msra.mxu2 %v3101_v58  ;;  %1377 = vmatpush.msra.mxu3 %v2953_v19 }
 0x319   :  { %1318 = vmatpush.msra.mxu0 %v2956_v22  ;;  %1338 = vmatpush.msra.mxu1 %v2959_v60 }
 0x31a   :  { %1358 = vmatpush.msra.mxu2 %v3107_v4  ;;  %1378 = vmatpush.msra.mxu3 %v2963_v24 }
 0x31b   :  { %1319 = vmatpush.msra.mxu0 %v2966_v25  ;;  %1339 = vmatpush.msra.mxu1 %v2969_v63 }
 0x31c   :  { %1359 = vmatpush.msra.mxu2 %v3113_v23  ;;  %1379 = vmatpush.msra.mxu3 %v2973_v26 }
 0x31d   :  { %1320 = vmatpush.msra.mxu0 %v2976_v29  ;;  %1340 = vmatpush.msra.mxu1 %v2979_v0 }
 0x31e   :  { %1360 = vmatpush.msra.mxu2 %v3119_v27  ;;  %1380 = vmatpush.msra.mxu3 %v2983_v35 }
 0x31f   :  { %1321 = vmatpush.msra.mxu0 %v2986_v39  ;;  %1341 = vmatpush.msra.mxu1 %v2989_v2 }
 0x320   :  { %1361 = vmatpush.msra.mxu2 %v3125_v28  ;;  %1381 = vmatpush.msra.mxu3 %v2993_v46 }
 0x321   :  { %1322 = vmatpush.msra.mxu0 %v2996_v52  ;;  %1342 = vmatpush.msra.mxu1 %v2999_v8 }
 0x322   :  { %1362 = vmatpush.msra.mxu2 %v3131_v41  ;;  %1382 = vmatpush.msra.mxu3 %v3003_v53 }
 0x323   :  { %1323 = vmatpush.msra.mxu0 %v3006_v32  ;;  %1343 = vmatpush.msra.mxu1 %v3009_v10 }
 0x324   :  { %1363 = vmatpush.msra.mxu2 %v3137_v1  ;;  %1383 = vmatpush.msra.mxu3 %v3013_v56 }
 0x325   :  { %1324 = vmatpush.msra.mxu0 %v3016_v9  ;;  %1344 = vmatpush.msra.mxu1 %v3019_v12 }
 0x326   :  { %1364 = vmatpush.msra.mxu2 %v3679_v54  ;;  %1384 = vmatpush.msra.mxu3 %v3680_v55 }
 0x327   :  { %1325 = vmatpush.msra.mxu0 %v3681_v13  ;;  %1345 = vmatpush.msra.mxu1 %v3682_v7 }
 0x328   :  { %1365 = vmatpush.msra.mxu2 %v3683_v16  ;;  %1385 = vmatpush.msra.mxu3 %v3684_v47 }
 0x329   :  { %1326 = vmatpush.msra.mxu0 %v3685_v5  ;;  %1346 = vmatpush.msra.mxu1 %v3686_v37 }
 0x32a   :  { %1366 = vmatpush.msra.mxu2 %v3687_v30  ;;  %1386 = vmatpush.msra.mxu3 %v3688_v20 }
 0x32b   :  { %1327 = vmatpush.msra.mxu0 %v3689_v38  ;;  %1347 = vmatpush.msra.mxu1 %v3690_v34  ;;  %v3707_v34 = vld [vmem:[#allocation50_spill] sm:$0xff] }
 0x32c   :  { %1367 = vmatpush.msra.mxu2 %v3691_v62  ;;  %1387 = vmatpush.msra.mxu3 %v3692_v45 }
 0x32d   :  { %1328 = vmatpush.msra.mxu0 %v3693_v51  ;;  %1348 = vmatpush.msra.mxu1 %v3694_v17  ;;  %v3704_v51 = vld [vmem:[#allocation52_spill] sm:$0xff] }
 0x32e   :  { %1368 = vmatpush.msra.mxu2 %v3695_v3  ;;  %1388 = vmatpush.msra.mxu3 %v3696_v44  ;;  %v3705_v17 = vld [vmem:[#allocation60_spill] sm:$0xff]  ;;  %v3706_v3 = vld [vmem:[#allocation38_spill] sm:$0xff] }
 0x32f   :  { %1329 = vmatpush.msra.mxu0 %v3697_v59  ;;  %1349 = vmatpush.msra.mxu1 %v3698_v42  ;;  %v169_v45 = vadd.f32 %v3706_v3, %v3705_v17 }
 0x330   :  { %1369 = vmatpush.msra.mxu2 %v3699_v49  ;;  %1389 = vmatpush.msra.mxu3 %v3700_v36 }
 0x331   :  { %1330 = vmatpush.msra.mxu0 %v3701_v48  ;;  %1350 = vmatpush.msra.mxu1 %v3702_v31  ;;  %v3708_v48 = vld [vmem:[#allocation58_spill] sm:$0xff] }
 0x332   :  { %1370 = vmatpush.msra.mxu2 %v3703_v40  ;;  %1390 = vmatpush.msra.mxu3 %v3704_v51 }
 0x38e   :  { %v1028_v44 = vpop.f32.mrf.mxu0  ;;  %v1048_v62 = vpop.f32.mrf.mxu1 }
 0x38f   :  { %v1091_v59 = vadd.f32 %v1028_v44, %v169_v45  ;;  %v1092_v42 = vadd.f32 %v1048_v62, %v3707_v34  ;;  %v3709_v34 = vld [vmem:[#allocation48_spill] sm:$0xff] }
 0x391   :  { %v1912_v38 = vmul.f32 -1.442695, %v1091_v59  ;;  %v1913_v49 = vmul.f32 -1.442695, %v1092_v42 }
 0x393   :  { %2012 = vpow2.f32 %v1912_v38 }
 0x394   :  { %2014 = vpow2.f32 %v1913_v49 }
 0x395   :  { %v1088_v36 = vpop.f32.mrf.mxu3  ;;  %v1068_v3 = vpop.f32.mrf.mxu2 }
 0x396   :  { %v1094_v20 = vadd.f32 %v1088_v36, %v3708_v48  ;;  %v1093_v62 = vadd.f32 %v1068_v3, %v3709_v34 }
 0x398   :  { %v1914_v31 = vmul.f32 -1.442695, %v1094_v20 }
 0x399   :  { %v2013_v30 = vpop.eup %2012 }
 0x39a   :  { %v2015_v40 = vpop.eup %2014  ;;  %v1098_v37 = vadd.f32 1.0, %v2013_v30  ;;  %2016 = vpow2.f32 %v1914_v31 }
 0x39b   :  { %v1117_v51 = vadd.f32 1.0, %v2015_v40 }
 0x39c   :  { %2018 = vrcp.f32 %v1098_v37  ;;  %v1110_v20 = vand.u32 2147483648, %v1098_v37  ;;  %v1108_v40 = vand.u32 2147483647, %v1098_v37  ;;  %vm1104_vm4 = vweird.f32 %v1098_v37 }
 0x39d   :  { %2020 = vrcp.f32 %v1117_v51  ;;  %v1129_v48 = vand.u32 2147483648, %v1117_v51  ;;  %v1127_v5 = vand.u32 2147483647, %v1117_v51  ;;  %vm1123_vm5 = vweird.f32 %v1117_v51 }
 0x39e   :  { %v1111_v3 = vor.u32 1.1754944e-38, %v1110_v20  ;;  %vm1109_vm8 = vcmp.eq.f32.partialorder %v1108_v40, 8.507059e+37 }
 0x39f   :  { %vm1128_vm9 = vcmp.eq.f32.partialorder %v1127_v5, 8.507059e+37 }
 0x3a0   :  { %v2017_v17 = vpop.eup %2016 }
 0x3a1   :  { %v1137_v45 = vadd.f32 1.0, %v2017_v17 }
 0x3a2   :  { %v2019_v44 = vpop.eup %2018 }
 0x3a3   :  { %v2021_v59 = vpop.eup %2020  ;;  %v1100_v38 = vmul.f32 %v2019_v44, %v1098_v37  ;;  %2022 = vrcp.f32 %v1137_v45  ;;  %vm1105_vm2 = vweird.f32 %v2019_v44  ;;  %v1149_v20 = vand.u32 2147483648, %v1137_v45 }
 0x3a4   :  { %v1119_v42 = vmul.f32 %v2021_v59, %v1117_v51  ;;  %2024 = vtanh.f32 %v1093_v62  ;;  %vm1124_vm3 = vweird.f32 %v2021_v59  ;;  %vm1106_vm6 = vmor %vm1104_vm4, %vm1105_vm2  ;;  %vm1143_vm11 = vweird.f32 %v1137_v45 }
 0x3a5   :  { %v1101_v49 = vsub.f32 1.0, %v1100_v38  ;;  %vm1125_vm7 = vmor %vm1123_vm5, %vm1124_vm3  ;;  %v1130_v38 = vor.u32 1.1754944e-38, %v1129_v48  ;;  %v1150_v40 = vor.u32 1.1754944e-38, %v1149_v20 }
 0x3a6   :  { %v1120_v36 = vsub.f32 1.0, %v1119_v42 }
 0x3a7   :  { %v1102_v30 = vmul.f32 %v2019_v44, %v1101_v49 }
 0x3a8   :  { %v1121_v31 = vmul.f32 %v2021_v59, %v1120_v36 }
 0x3a9   :  { %v2023_v47 = vpop.eup %2022  ;;  %v1103_v17 = vadd.f32 %v2019_v44, %v1102_v30 }
 0x3aa   :  { %v1122_v34 = vadd.f32 %v2021_v59, %v1121_v31  ;;  %v1139_v16 = vmul.f32 %v2023_v47, %v1137_v45  ;;  %v2025_v62 = vpop.eup %2024  ;;  %vm1144_vm10 = vweird.f32 %v2023_v47 }
 0x3ab   :  { %v1107_v42 = vsel %vm1106_vm6, %v2019_v44, %v1103_v17  ;;  %v1147_v44 = vand.u32 2147483647, %v1137_v45  ;;  %vm1145_vm12 = vmor %vm1143_vm11, %vm1144_vm10 }
 0x3ac   :  { %v1112_v7 = vsel %vm1109_vm8, %v1111_v3, %v1107_v42  ;;  %v1126_v49 = vsel %vm1125_vm7, %v2021_v59, %v1122_v34  ;;  %v1140_v13 = vsub.f32 1.0, %v1139_v16  ;;  %v3740_v34 = vld [vmem:[#allocation51_spill] sm:$0xff] }
 0x3ad   :  { %v1131_v36 = vsel %vm1128_vm9, %v1130_v38, %v1126_v49  ;;  %v1154_v55 = vmul.f32 %v2025_v62, %v1112_v7  ;;  %vm1148_vm13 = vcmp.eq.f32.partialorder %v1147_v44, 8.507059e+37 }
 0x3ae   :  { %v1153_v54 = vmul.f32 %v1131_v36, %v3203_v21  ;;  %v1141_v30 = vmul.f32 %v2023_v47, %v1140_v13 }
 0x3b0   :  { %v3282_v37 = vadd.f32 %v1154_v55, %v1153_v54  ;;  %v1142_v51 = vadd.f32 %v2023_v47, %v1141_v30 }
 0x3b2   :  { %2026 = vtanh.f32 %v3282_v37  ;;  %v1146_v48 = vsel %vm1145_vm12, %v2023_v47, %v1142_v51 }
 0x3b3   :  { %v1151_v16 = vsel %vm1148_vm13, %v1150_v40, %v1146_v48 }
 0x3b8   :  { %v2027_v5 = vpop.eup %2026 }
 0x3b9   :  { %v3285_v59 = vmul.f32 %v2027_v5, %v1151_v16 }
 0x3bb   :  { %1179 = vmatmul.f32.vlgmr.msrb.gmra.mxu0 %v3285_v59  ;;  %1199 = vmatmul.f32.vlgmr.msrb.gmra.mxu1 %v3285_v59 }
 0x3bc   :  { %1219 = vmatmul.f32.vlgmr.msrb.gmra.mxu2 %v3285_v59  ;;  %1239 = vmatmul.f32.vlgmr.msrb.gmra.mxu3 %v3285_v59 }
 0x3bd   :  { %1467 = vmatpush.msrb.mxu0 %v2926_v43  ;;  %1487 = vmatpush.msrb.mxu1 %v2929_v15  ;;  %v3710_v43 = vld [vmem:[#allocation28_spill] sm:$0xff] }
 0x3be   :  { %1507 = vmatpush.msrb.mxu2 %v3089_v50  ;;  %1527 = vmatpush.msrb.mxu3 %v2933_v61  ;;  %v3711_v15 = vld [vmem:[#allocation32_spill] sm:$0xff]  ;;  %v3712_v61 = vld [vmem:[#allocation22_spill] sm:$0xff] }
 0x3bf   :  { %1468 = vmatpush.msrb.mxu0 %v2936_v6  ;;  %1488 = vmatpush.msrb.mxu1 %v2939_v11  ;;  %v3713_v6 = vld [vmem:[#allocation15_spill] sm:$0xff]  ;;  %v3714_v11 = vld [vmem:[#allocation18_spill] sm:$0xff] }
 0x3c0   :  { %1508 = vmatpush.msrb.mxu2 %v3095_v33  ;;  %1528 = vmatpush.msrb.mxu3 %v2943_v14  ;;  %v3715_v14 = vld [vmem:[#allocation21_spill] sm:$0xff] }
 0x3c1   :  { %1469 = vmatpush.msrb.mxu0 %v2946_v18  ;;  %1489 = vmatpush.msrb.mxu1 %v2949_v57  ;;  %v3716_v18 = vld [vmem:[#allocation33_spill] sm:$0xff]  ;;  %v3717_v57 = vld [vmem:[#allocation23_spill] sm:$0xff] }
 0x3c2   :  { %1509 = vmatpush.msrb.mxu2 %v3101_v58  ;;  %1529 = vmatpush.msrb.mxu3 %v2953_v19  ;;  %v3718_v19 = vld [vmem:[#allocation26_spill] sm:$0xff] }
 0x3c3   :  { %1470 = vmatpush.msrb.mxu0 %v2956_v22  ;;  %1490 = vmatpush.msrb.mxu1 %v2959_v60  ;;  %v3719_v22 = vld [vmem:[#allocation16_spill] sm:$0xff] }
 0x3c4   :  { %1510 = vmatpush.msrb.mxu2 %v3107_v4  ;;  %1530 = vmatpush.msrb.mxu3 %v2963_v24  ;;  %v3720_v60 = vld [vmem:[#allocation24_spill] sm:$0xff]  ;;  %v3721_v24 = vld [vmem:[#allocation34_spill] sm:$0xff]  ;;  %v3738_v4 = vld [vmem:[#allocation53_spill] sm:$0xff] }
 0x3c5   :  { %1471 = vmatpush.msrb.mxu0 %v2966_v25  ;;  %1491 = vmatpush.msrb.mxu1 %v2969_v63  ;;  %v3722_v25 = vld [vmem:[#allocation36_spill] sm:$0xff]  ;;  %v3723_v63 = vld [vmem:[#allocation30_spill] sm:$0xff] }
 0x3c6   :  { %1511 = vmatpush.msrb.mxu2 %v3113_v23  ;;  %1531 = vmatpush.msrb.mxu3 %v2973_v26  ;;  %v3724_v26 = vld [vmem:[#allocation27_spill] sm:$0xff] }
 0x3c7   :  { %1472 = vmatpush.msrb.mxu0 %v2976_v29  ;;  %1492 = vmatpush.msrb.mxu1 %v2979_v0  ;;  %v3725_v29 = vld [vmem:[#allocation19_spill] sm:$0xff]  ;;  %v3726_v0 = vld [vmem:[#allocation29_spill] sm:$0xff] }
 0x3c8   :  { %1512 = vmatpush.msrb.mxu2 %v3119_v27  ;;  %1532 = vmatpush.msrb.mxu3 %v2983_v35  ;;  %v3727_v35 = vld [vmem:[#allocation37_spill] sm:$0xff] }
 0x3c9   :  { %1473 = vmatpush.msrb.mxu0 %v2986_v39  ;;  %1493 = vmatpush.msrb.mxu1 %v2989_v2  ;;  %v3728_v39 = vld [vmem:[#allocation17_spill] sm:$0xff]  ;;  %v3729_v2 = vld [vmem:[#allocation31_spill] sm:$0xff] }
 0x3ca   :  { %1513 = vmatpush.msrb.mxu2 %v3125_v28  ;;  %1533 = vmatpush.msrb.mxu3 %v2993_v46  ;;  %v3730_v46 = vld [vmem:[#allocation42_spill] sm:$0xff] }
 0x3cb   :  { %1474 = vmatpush.msrb.mxu0 %v2996_v52  ;;  %1494 = vmatpush.msrb.mxu1 %v2999_v8  ;;  %v3731_v52 = vld [vmem:[#allocation49_spill] sm:$0xff] }
 0x3cc   :  { %1514 = vmatpush.msrb.mxu2 %v3131_v41  ;;  %1534 = vmatpush.msrb.mxu3 %v3003_v53  ;;  %v3732_v8 = vld [vmem:[#allocation25_spill] sm:$0xff] }
 0x3cd   :  { %1475 = vmatpush.msrb.mxu0 %v3006_v32  ;;  %1495 = vmatpush.msrb.mxu1 %v3009_v10  ;;  %v3733_v53 = vld [vmem:[#allocation41_spill] sm:$0xff]  ;;  %v3735_v10 = vld [vmem:[#allocation52_spill] sm:$0xff] }
 0x3ce   :  { %1515 = vmatpush.msrb.mxu2 %v3137_v1  ;;  %1535 = vmatpush.msrb.mxu3 %v3013_v56  ;;  %v3734_v32 = vld [vmem:[#allocation45_spill] sm:$0xff]  ;;  %v3736_v56 = vld [vmem:[#allocation60_spill] sm:$0xff] }
 0x3cf   :  { %1476 = vmatpush.msrb.mxu0 %v3016_v9  ;;  %1496 = vmatpush.msrb.mxu1 %v3019_v12  ;;  %v3737_v9 = vld [vmem:[#allocation39_spill] sm:$0xff]  ;;  %v3739_v1 = vld [vmem:[#allocation61_spill] sm:$0xff] }
 0x3d0   :  { %1516 = vmatpush.msrb.mxu2 %v3710_v43  ;;  %1536 = vmatpush.msrb.mxu3 %v3711_v15  ;;  %v172_v12 = vadd.f32 %v3737_v9, %v3736_v56  ;;  %v1634_v9 = vld [vmem:[#allocation9 + $0x58] sm:$0xff] }
 0x3d1   :  { %1477 = vmatpush.msrb.mxu0 %v3712_v61  ;;  %1497 = vmatpush.msrb.mxu1 %v3713_v6 }
 0x3d2   :  { %1517 = vmatpush.msrb.mxu2 %v3714_v11  ;;  %1537 = vmatpush.msrb.mxu3 %v3715_v14 }
 0x3d3   :  { %1478 = vmatpush.msrb.mxu0 %v3716_v18  ;;  %1498 = vmatpush.msrb.mxu1 %v3717_v57 }
 0x3d4   :  { %1518 = vmatpush.msrb.mxu2 %v3718_v19  ;;  %1538 = vmatpush.msrb.mxu3 %v3719_v22 }
 0x3d5   :  { %1479 = vmatpush.msrb.mxu0 %v3720_v60  ;;  %1499 = vmatpush.msrb.mxu1 %v3721_v24 }
 0x3d6   :  { %1519 = vmatpush.msrb.mxu2 %v3722_v25  ;;  %1539 = vmatpush.msrb.mxu3 %v3723_v63 }
 0x3d7   :  { %1480 = vmatpush.msrb.mxu0 %v3724_v26  ;;  %1500 = vmatpush.msrb.mxu1 %v3725_v29 }
 0x3d8   :  { %1520 = vmatpush.msrb.mxu2 %v3726_v0  ;;  %1540 = vmatpush.msrb.mxu3 %v3727_v35 }
 0x3d9   :  { %1481 = vmatpush.msrb.mxu0 %v3728_v39  ;;  %1501 = vmatpush.msrb.mxu1 %v3729_v2 }
 0x3da   :  { %1521 = vmatpush.msrb.mxu2 %v3730_v46  ;;  %1541 = vmatpush.msrb.mxu3 %v3731_v52 }
 0x3db   :  { %1482 = vmatpush.msrb.mxu0 %v3732_v8  ;;  %1502 = vmatpush.msrb.mxu1 %v3733_v53  ;;  %v1637_v53 = vld [vmem:[#allocation9 + $0x70] sm:$0xff] }
 0x3dc   :  { %1522 = vmatpush.msrb.mxu2 %v3734_v32  ;;  %1542 = vmatpush.msrb.mxu3 %v3735_v10  ;;  %v1636_v32 = vld [vmem:[#allocation9 + $0x68] sm:$0xff]  ;;  %v1635_v10 = vld [vmem:[#allocation9 + $0x60] sm:$0xff] }
 0x438   :  { %v1180_v50 = vpop.f32.mrf.mxu0  ;;  %v1200_v33 = vpop.f32.mrf.mxu1 }
 0x439   :  { %v1243_v58 = vadd.f32 %v1180_v50, %v172_v12  ;;  %v1244_v23 = vadd.f32 %v1200_v33, %v3738_v4  ;;  %v3741_v12 = vld [vmem:[#allocation40_spill] sm:$0xff] }
 0x43a   :  { %v175_v50 = vadd.f32 %v3741_v12, %v3736_v56  ;;  %v1633_v4 = vld [vmem:[#allocation9 + $0x50] sm:$0xff] }
 0x43b   :  { %v1915_v27 = vmul.f32 -1.442695, %v1243_v58  ;;  %v1916_v28 = vmul.f32 -1.442695, %v1244_v23 }
 0x43d   :  { %2028 = vpow2.f32 %v1915_v27  ;;  %v3742_v27 = vld [vmem:[#allocation56_spill] sm:$0xff] }
 0x43e   :  { %2030 = vpow2.f32 %v1916_v28 }
 0x43f   :  { %v1240_v41 = vpop.f32.mrf.mxu3  ;;  %v1220_v45 = vpop.f32.mrf.mxu2 }
 0x440   :  { %v1246_v21 = vadd.f32 %v1240_v41, %v3739_v1  ;;  %v1245_v38 = vadd.f32 %v1220_v45, %v3740_v34  ;;  %v1632_v41 = vld [vmem:[#allocation9 + $0x48] sm:$0xff] }
 0x442   :  { %v1917_v54 = vmul.f32 -1.442695, %v1246_v21 }
 0x443   :  { %v2029_v55 = vpop.eup %2028 }
 0x444   :  { %v2031_v13 = vpop.eup %2030  ;;  %v1250_v7 = vadd.f32 1.0, %v2029_v55  ;;  %2032 = vpow2.f32 %v1917_v54  ;;  %v1631_v54 = vld [vmem:[#allocation9 + $0x40] sm:$0xff]  ;;  %v1630_v55 = vld [vmem:[#allocation9 + $0x38] sm:$0xff] }
 0x445   :  { %v1269_v47 = vadd.f32 1.0, %v2031_v13  ;;  %v1629_v13 = vld [vmem:[#allocation9 + $0x30] sm:$0xff] }
 0x446   :  { %2034 = vrcp.f32 %v1250_v7  ;;  %v1262_v51 = vand.u32 2147483648, %v1250_v7  ;;  %v1260_v48 = vand.u32 2147483647, %v1250_v7  ;;  %vm1256_vm0 = vweird.f32 %v1250_v7 }
 0x447   :  { %2036 = vrcp.f32 %v1269_v47  ;;  %v1281_v20 = vand.u32 2147483648, %v1269_v47  ;;  %v1279_v5 = vand.u32 2147483647, %v1269_v47  ;;  %vm1275_vm1 = vweird.f32 %v1269_v47 }
 0x448   :  { %v1263_v15 = vor.u32 1.1754944e-38, %v1262_v51  ;;  %vm1261_vm4 = vcmp.eq.f32.partialorder %v1260_v48, 8.507059e+37 }
 0x449   :  { %v1282_v11 = vor.u32 1.1754944e-38, %v1281_v20  ;;  %vm1280_vm5 = vcmp.eq.f32.partialorder %v1279_v5, 8.507059e+37  ;;  %v3744_v5 = vld [vmem:[#allocation54_spill] sm:$0xff] }
 0x44a   :  { %v2033_v31 = vpop.eup %2032 }
 0x44b   :  { %v1289_v17 = vadd.f32 1.0, %v2033_v31  ;;  %v1628_v31 = vld [vmem:[#allocation9 + $0x28] sm:$0xff] }
 0x44c   :  { %v2035_v3 = vpop.eup %2034 }
 0x44d   :  { %v2037_v42 = vpop.eup %2036  ;;  %v1252_v62 = vmul.f32 %v2035_v3, %v1250_v7  ;;  %2038 = vrcp.f32 %v1289_v17  ;;  %vm1257_vm14 = vweird.f32 %v2035_v3  ;;  %v1301_v0 = vand.u32 2147483648, %v1289_v17 }
 0x44e   :  { %v1271_v49 = vmul.f32 %v2037_v42, %v1269_v47  ;;  %2040 = vtanh.f32 %v1245_v38  ;;  %vm1276_vm15 = vweird.f32 %v2037_v42  ;;  %vm1258_vm2 = vmor %vm1256_vm0, %vm1257_vm14  ;;  %vm1295_vm7 = vweird.f32 %v1289_v17  ;;  %v3743_v47 = vld [vmem:[#allocation62_spill] sm:$0xff] }
 0x44f   :  { %v1253_v36 = vsub.f32 1.0, %v1252_v62  ;;  %vm1277_vm3 = vmor %vm1275_vm1, %vm1276_vm15  ;;  %v1299_v35 = vand.u32 2147483647, %v1289_v17  ;;  %v1302_v2 = vor.u32 1.1754944e-38, %v1301_v0 }
 0x450   :  { %v1272_v30 = vsub.f32 1.0, %v1271_v49  ;;  %v1626_v49 = vld [vmem:[#allocation9 + $0x18] sm:$0xff] }
 0x451   :  { %v1254_v44 = vmul.f32 %v2035_v3, %v1253_v36  ;;  %vm1300_vm9 = vcmp.eq.f32.partialorder %v1299_v35, 8.507059e+37  ;;  %v1625_v36 = vld [vmem:[#allocation9 + $0x10] sm:$0xff] }
 0x452   :  { %v1273_v40 = vmul.f32 %v2037_v42, %v1272_v30  ;;  %v1624_v30 = vld [vmem:[#allocation9 + $0x8] sm:$0xff] }
 0x453   :  { %v2039_v16 = vpop.eup %2038  ;;  %v1255_v43 = vadd.f32 %v2035_v3, %v1254_v44  ;;  %v1623_v44 = vld [vmem:[#allocation9] sm:$0xff] }
 0x454   :  { %v1274_v61 = vadd.f32 %v2037_v42, %v1273_v40  ;;  %v1291_v6 = vmul.f32 %v2039_v16, %v1289_v17  ;;  %v2041_v18 = vpop.eup %2040  ;;  %vm1296_vm6 = vweird.f32 %v2039_v16 }
 0x455   :  { %v1259_v14 = vsel %vm1258_vm2, %v2035_v3, %v1255_v43  ;;  %vm1297_vm8 = vmor %vm1295_vm7, %vm1296_vm6  ;;  %v1627_v3 = vld [vmem:[#allocation9 + $0x20] sm:$0xff] }
 0x456   :  { %v1264_v57 = vsel %vm1261_vm4, %v1263_v15, %v1259_v14  ;;  %v1278_v19 = vsel %vm1277_vm3, %v2037_v42, %v1274_v61  ;;  %v1292_v22 = vsub.f32 1.0, %v1291_v6 }
 0x457   :  { %v1283_v60 = vsel %vm1280_vm5, %v1282_v11, %v1278_v19  ;;  %v1306_v24 = vmul.f32 %v2041_v18, %v1264_v57 }
 0x458   :  { %v1305_v25 = vmul.f32 %v1283_v60, %v3282_v37  ;;  %v1293_v63 = vmul.f32 %v2039_v16, %v1292_v22  ;;  %v1638_v37 = vld [vmem:[#allocation9 + $0x78] sm:$0xff] }
 0x45a   :  { %v3361_v26 = vadd.f32 %v1306_v24, %v1305_v25  ;;  %v1294_v29 = vadd.f32 %v2039_v16, %v1293_v63 }
 0x45c   :  { %2042 = vtanh.f32 %v3361_v26  ;;  %v1298_v39 = vsel %vm1297_vm8, %v2039_v16, %v1294_v29 }
 0x45d   :  { %v1303_v52 = vsel %vm1300_vm9, %v1302_v2, %v1298_v39 }
 0x462   :  { %v2043_v46 = vpop.eup %2042 }
 0x463   :  { %v3364_v8 = vmul.f32 %v2043_v46, %v1303_v52 }
 0x465   :  { %1331 = vmatmul.f32.vlgmr.msra.gmra.mxu0 %v3364_v8  ;;  %1351 = vmatmul.f32.vlgmr.msra.gmra.mxu1 %v3364_v8 }
 0x466   :  { %1371 = vmatmul.f32.vlgmr.msra.gmra.mxu2 %v3364_v8  ;;  %1391 = vmatmul.f32.vlgmr.msra.gmra.mxu3 %v3364_v8 }
 0x467   :  { %1643 = vmatpush.msra.mxu0 %v1638_v37 }
 0x469   :  { %1644 = vmatpush.msra.mxu0 %v1637_v53 }
 0x46b   :  { %1645 = vmatpush.msra.mxu0 %v1636_v32 }
 0x46d   :  { %1646 = vmatpush.msra.mxu0 %v1635_v10 }
 0x46f   :  { %1647 = vmatpush.msra.mxu0 %v1634_v9 }
 0x471   :  { %1648 = vmatpush.msra.mxu0 %v1633_v4 }
 0x473   :  { %1649 = vmatpush.msra.mxu0 %v1632_v41 }
 0x475   :  { %1650 = vmatpush.msra.mxu0 %v1631_v54  ;;  %v3748_v54 = vld [vmem:[#allocation44_spill] sm:$0xff] }
 0x477   :  { %1651 = vmatpush.msra.mxu0 %v1630_v55  ;;  %v3749_v55 = vld [vmem:[#allocation43_spill] sm:$0xff] }
 0x479   :  { %1652 = vmatpush.msra.mxu0 %v1629_v13  ;;  %v178_v13 = vadd.f32 %v3749_v55, %v3736_v56 }
 0x47b   :  { %1653 = vmatpush.msra.mxu0 %v1628_v31  ;;  %v3750_v31 = vld [vmem:[#allocation59_spill] sm:$0xff] }
 0x47d   :  { %1654 = vmatpush.msra.mxu0 %v1627_v3 }
 0x47f   :  { %1655 = vmatpush.msra.mxu0 %v1626_v49 }
 0x481   :  { %1656 = vmatpush.msra.mxu0 %v1625_v36 }
 0x483   :  { %1657 = vmatpush.msra.mxu0 %v1624_v30 }
 0x485   :  { %1658 = vmatpush.msra.mxu0 %v1623_v44 }
 0x4e2   :  { %v1332_v33 = vpop.f32.mrf.mxu0  ;;  %v1352_v58 = vpop.f32.mrf.mxu1 }
 0x4e3   :  { %v1395_v23 = vadd.f32 %v1332_v33, %v175_v50  ;;  %v1396_v28 = vadd.f32 %v1352_v58, %v3742_v27 }
 0x4e5   :  { %v1918_v1 = vmul.f32 -1.442695, %v1395_v23  ;;  %v1919_v21 = vmul.f32 -1.442695, %v1396_v28 }
 0x4e7   :  { %2044 = vpow2.f32 %v1918_v1  ;;  %v3746_v1 = vld [vmem:[#allocation20_spill] sm:$0xff] }
 0x4e8   :  { %2046 = vpow2.f32 %v1919_v21  ;;  %v3747_v21 = vld [vmem:[#allocation35_spill] sm:$0xff] }
 0x4e9   :  { %v1392_v7 = vpop.f32.mrf.mxu3  ;;  %v1372_v51 = vpop.f32.mrf.mxu2 }
 0x4ea   :  { %v1398_v45 = vadd.f32 %v1392_v7, %v3743_v47  ;;  %v1397_v16 = vadd.f32 %v1372_v51, %v3744_v5 }
 0x4ec   :  { %v1920_v17 = vmul.f32 -1.442695, %v1398_v45 }
 0x4ed   :  { %v2045_v34 = vpop.eup %2044 }
 0x4ee   :  { %v2047_v38 = vpop.eup %2046  ;;  %v1402_v42 = vadd.f32 1.0, %v2045_v34  ;;  %2048 = vpow2.f32 %v1920_v17 }
 0x4ef   :  { %v1421_v62 = vadd.f32 1.0, %v2047_v38  ;;  %v3391_v38 = vld [vmem:[%s3451_s5] ss:$0 sm:$0xff]  ;;  %s2282_s5 = smov [#allocation10]  }
 0x4f0   :  { %2050 = vrcp.f32 %v1402_v42  ;;  %v1414_v14 = vand.u32 2147483648, %v1402_v42  ;;  %v1412_v19 = vand.u32 2147483647, %v1402_v42  ;;  %vm1408_vm12 = vweird.f32 %v1402_v42  ;;  %s1848_s7 = sshll.u32 %s2282_s5, 4  ;;  %s1849_s7 = int_to_ptr.vmem [resolvable:$true] %s1848_s7 }
 0x4f1   :  { %2052 = vrcp.f32 %v1421_v62  ;;  %v1433_v18 = vand.u32 2147483648, %v1421_v62  ;;  %v1431_v60 = vand.u32 2147483647, %v1421_v62  ;;  %vm1427_vm13 = vweird.f32 %v1421_v62 }
 0x4f2   :  { %v1415_v63 = vor.u32 1.1754944e-38, %v1414_v14  ;;  %vm1413_vm0 = vcmp.eq.f32.partialorder %v1412_v19, 8.507059e+37 }
 0x4f3   :  { %v1434_v35 = vor.u32 1.1754944e-38, %v1433_v18  ;;  %vm1432_vm1 = vcmp.eq.f32.partialorder %v1431_v60, 8.507059e+37 }
 0x4f4   :  { %v2049_v20 = vpop.eup %2048 }
 0x4f5   :  { %v1441_v48 = vadd.f32 1.0, %v2049_v20 }
 0x4f6   :  { %v2051_v40 = vpop.eup %2050 }
 0x4f7   :  { %v2053_v43 = vpop.eup %2052  ;;  %v1404_v15 = vmul.f32 %v2051_v40, %v1402_v42  ;;  %2054 = vrcp.f32 %v1441_v48  ;;  %vm1409_vm10 = vweird.f32 %v2051_v40  ;;  %v1453_v33 = vand.u32 2147483648, %v1441_v48 }
 0x4f8   :  { %v1423_v61 = vmul.f32 %v2053_v43, %v1421_v62  ;;  %2056 = vtanh.f32 %v1397_v16  ;;  %vm1428_vm11 = vweird.f32 %v2053_v43  ;;  %vm1410_vm14 = vmor %vm1408_vm12, %vm1409_vm10  ;;  %vm1447_vm3 = vweird.f32 %v1441_v48 }
 0x4f9   :  { %v1405_v6 = vsub.f32 1.0, %v1404_v15  ;;  %vm1429_vm15 = vmor %vm1427_vm13, %vm1428_vm11  ;;  %v1451_v58 = vand.u32 2147483647, %v1441_v48  ;;  %v1454_v23 = vor.u32 1.1754944e-38, %v1453_v33 }
 0x4fa   :  { %v1424_v11 = vsub.f32 1.0, %v1423_v61 }
 0x4fb   :  { %v1406_v57 = vmul.f32 %v2051_v40, %v1405_v6  ;;  %vm1452_vm5 = vcmp.eq.f32.partialorder %v1451_v58, 8.507059e+37 }
 0x4fc   :  { %v1425_v22 = vmul.f32 %v2053_v43, %v1424_v11  ;;  %v3752_v11 = vld [vmem:[#allocation57_spill] sm:$0xff] }
 0x4fd   :  { %v2055_v24 = vpop.eup %2054  ;;  %v1407_v25 = vadd.f32 %v2051_v40, %v1406_v57 }
 0x4fe   :  { %v1426_v29 = vadd.f32 %v2053_v43, %v1425_v22  ;;  %v1443_v0 = vmul.f32 %v2055_v24, %v1441_v48  ;;  %v2057_v2 = vpop.eup %2056  ;;  %vm1448_vm2 = vweird.f32 %v2055_v24 }
 0x4ff   :  { %v1411_v39 = vsel %vm1410_vm14, %v2051_v40, %v1407_v25  ;;  %vm1449_vm4 = vmor %vm1447_vm3, %vm1448_vm2 }
 0x500   :  { %v1416_v46 = vsel %vm1413_vm0, %v1415_v63, %v1411_v39  ;;  %v1430_v52 = vsel %vm1429_vm15, %v2053_v43, %v1426_v29  ;;  %v1444_v37 = vsub.f32 1.0, %v1443_v0 }
 0x501   :  { %v1435_v53 = vsel %vm1432_vm1, %v1434_v35, %v1430_v52  ;;  %v1458_v32 = vmul.f32 %v2057_v2, %v1416_v46 }
 0x502   :  { %v1457_v10 = vmul.f32 %v1435_v53, %v3361_v26  ;;  %v1445_v9 = vmul.f32 %v2055_v24, %v1444_v37  ;;  %v3745_v26 = vld [vmem:[#allocation64_spill] sm:$0xff] }
 0x504   :  { %v3376_v12 = vadd.f32 %v1458_v32, %v1457_v10  ;;  %v1446_v50 = vadd.f32 %v2055_v24, %v1445_v9 }
 0x506   :  { %2058 = vtanh.f32 %v3376_v12  ;;  %v1450_v4 = vsel %vm1449_vm4, %v2055_v24, %v1446_v50 }
 0x507   :  { %v1455_v28 = vsel %vm1452_vm5, %v1454_v23, %v1450_v4 }
 0x50c   :  { %v2059_v27 = vpop.eup %2058 }
 0x50d   :  { %v1461_v41 = vmul.f32 %v2059_v27, %v1455_v28 }
 0x50f   :  { %1483 = vmatmul.f32.vlgmr.msrb.gmra.mxu0 %v1461_v41  ;;  %1503 = vmatmul.f32.vlgmr.msrb.gmra.mxu1 %v1461_v41 }
 0x510   :  { %1523 = vmatmul.f32.vlgmr.msrb.gmra.mxu2 %v1461_v41  ;;  %1543 = vmatmul.f32.vlgmr.msrb.gmra.mxu3 %v1461_v41 }
 0x517   :  { %1659 = vmatmul.f32.vlgmr.msra.gmra.mxu0 %v3745_v26 }
 0x51f   :  { %1662 = vmatmul.f32.gmra.mxu0 %v3746_v1 }
 0x527   :  { %1665 = vmatmul.f32.gmra.mxu0 %v3747_v21 }
 0x52f   :  { %1668 = vmatmul.f32.gmra.mxu0 %v3748_v54 }
 0x537   :  { %1671 = vmatmul.f32.gmra.mxu0 %v3285_v59 }
 0x53f   :  { %1674 = vmatmul.f32.gmra.mxu0 %v3364_v8  ;;  %v3751_v8 = vld [vmem:[#allocation63_spill] sm:$0xff] }
 0x547   :  { %1677 = vmatmul.f32.gmra.mxu0 %v1461_v41 }
 0x58c   :  { %v1484_v7 = vpop.f32.mrf.mxu0  ;;  %v1504_v47 = vpop.f32.mrf.mxu1 }
 0x58d   :  { %v1547_v45 = vadd.f32 %v1484_v7, %v178_v13  ;;  %v1548_v17 = vadd.f32 %v1504_v47, %v3750_v31 }
 0x58f   :  { %v1921_v3 = vmul.f32 -1.442695, %v1547_v45  ;;  %v1922_v34 = vmul.f32 -1.442695, %v1548_v17 }
 0x591   :  { %2060 = vpow2.f32 %v1921_v3 }
 0x592   :  { %2062 = vpow2.f32 %v1922_v34 }
 0x593   :  { %v1544_v59 = vpop.f32.mrf.mxu3  ;;  %v1524_v40 = vpop.f32.mrf.mxu2 }
 0x594   :  { %v1550_v42 = vadd.f32 %v1544_v59, %v3751_v8  ;;  %v1660_v62 = vpop.f32.mrf.mxu0  ;;  %v1549_v14 = vadd.f32 %v1524_v40, %v3752_v11 }
 0x595   :  { %v1661_v56 = vadd.f32 %v3391_v38, %v1660_v62 }
 0x596   :  { %v1923_v49 = vmul.f32 -1.442695, %v1550_v42 }
 0x597   :  { %v2061_v36 = vpop.eup %2060  ;;  %v1924_v30 = vmul.f32 -1.442695, %v1661_v56 }
 0x598   :  { %v2063_v51 = vpop.eup %2062  ;;  %v1554_v20 = vadd.f32 1.0, %v2061_v36  ;;  %2064 = vpow2.f32 %v1923_v49 }
 0x599   :  { %v1573_v44 = vadd.f32 1.0, %v2063_v51  ;;  %2066 = vpow2.f32 %v1924_v30 }
 0x59a   :  { %2068 = vrcp.f32 %v1554_v20  ;;  %v1564_v25 = vand.u32 2147483647, %v1554_v20  ;;  %v1566_v63 = vand.u32 2147483648, %v1554_v20  ;;  %vm1560_vm9 = vweird.f32 %v1554_v20 }
 0x59b   :  { %2070 = vrcp.f32 %v1573_v44  ;;  %v1585_v0 = vand.u32 2147483648, %v1573_v44  ;;  %v1583_v46 = vand.u32 2147483647, %v1573_v44  ;;  %vm1579_vm8 = vweird.f32 %v1573_v44 }
 0x59c   :  { %v1663_v48 = vpop.f32.mrf.mxu0  ;;  %vm1565_vm11 = vcmp.eq.f32.partialorder %v1564_v25, 8.507059e+37  ;;  %v1567_v10 = vor.u32 1.1754944e-38, %v1566_v63 }
 0x59d   :  { %v1664_v5 = vadd.f32 %v3391_v38, %v1663_v48  ;;  %v1586_v58 = vor.u32 1.1754944e-38, %v1585_v0  ;;  %vm1584_vm13 = vcmp.eq.f32.partialorder %v1583_v46, 8.507059e+37 }
 0x59e   :  { %v2065_v16 = vpop.eup %2064 }
 0x59f   :  { %v2067_v43 = vpop.eup %2066  ;;  %v3396_v15 = vadd.f32 1.0, %v2065_v16  ;;  %v1925_v61 = vmul.f32 -1.442695, %v1664_v5 }
 0x5a0   :  { %v2069_v6 = vpop.eup %2068  ;;  %v3399_v18 = vadd.f32 1.0, %v2067_v43 }
 0x5a1   :  { %v2071_v57 = vpop.eup %2070  ;;  %v1556_v19 = vmul.f32 %v2069_v6, %v1554_v20  ;;  %2072 = vrcp.f32 %v3396_v15  ;;  %vm1561_vm6 = vweird.f32 %v2069_v6  ;;  %v1605_v48 = vand.u32 2147483648, %v3396_v15 }
 0x5a2   :  { %v1575_v22 = vmul.f32 %v2071_v57, %v1573_v44  ;;  %2074 = vrcp.f32 %v3399_v18  ;;  %vm1580_vm7 = vweird.f32 %v2071_v57  ;;  %vm1562_vm10 = vmor %vm1560_vm9, %vm1561_vm6  ;;  %v1725_v13 = vand.u32 2147483647, %v3399_v18 }
 0x5a3   :  { %v1557_v60 = vsub.f32 1.0, %v1556_v19  ;;  %2076 = vpow2.f32 %v1925_v61  ;;  %vm1581_vm12 = vmor %vm1579_vm8, %vm1580_vm7  ;;  %v1727_v7 = vand.u32 2147483648, %v3399_v18  ;;  %vm1721_vm15 = vweird.f32 %v3399_v18 }
 0x5a4   :  { %v1576_v24 = vsub.f32 1.0, %v1575_v22  ;;  %2078 = vtanh.f32 %v1549_v14  ;;  %v1666_v29 = vpop.f32.mrf.mxu0  ;;  %vm1726_vm1 = vcmp.eq.f32.partialorder %v1725_v13, 8.507059e+37  ;;  %v1603_v44 = vand.u32 2147483647, %v3396_v15 }
 0x5a5   :  { %v1558_v35 = vmul.f32 %v2069_v6, %v1557_v60  ;;  %v1667_v39 = vadd.f32 %v3391_v38, %v1666_v29  ;;  %v1728_v62 = vor.u32 1.1754944e-38, %v1727_v7  ;;  %vm1599_vm3 = vweird.f32 %v3396_v15 }
 0x5a6   :  { %v1577_v2 = vmul.f32 %v2071_v57, %v1576_v24  ;;  %vm1604_vm6 = vcmp.eq.f32.partialorder %v1603_v44, 8.507059e+37 }
 0x5a7   :  { %v3404_v52 = vpop.eup %2072  ;;  %v1559_v37 = vadd.f32 %v2069_v6, %v1558_v35  ;;  %v1926_v53 = vmul.f32 -1.442695, %v1667_v39 }
 0x5a8   :  { %v2075_v32 = vpop.eup %2074  ;;  %v1578_v9 = vadd.f32 %v2071_v57, %v1577_v2  ;;  %v1595_v50 = vmul.f32 %v3404_v52, %v3396_v15  ;;  %vm1600_vm2 = vweird.f32 %v3404_v52  ;;  %v1606_v15 = vor.u32 1.1754944e-38, %v1605_v48 }
 0x5a9   :  { %v2077_v33 = vpop.eup %2076  ;;  %v1563_v4 = vsel %vm1562_vm10, %v2069_v6, %v1559_v37  ;;  %v1717_v23 = vmul.f32 %v2075_v32, %v3399_v18  ;;  %2080 = vpow2.f32 %v1926_v53  ;;  %vm1722_vm14 = vweird.f32 %v2075_v32  ;;  %vm3429_vm4 = vmor %vm1599_vm3, %vm1600_vm2 }
 0x5aa   :  { %v2079_v27 = vpop.eup %2078  ;;  %v1568_v28 = vsel %vm1565_vm11, %v1567_v10, %v1563_v4  ;;  %v3411_v41 = vadd.f32 1.0, %v2077_v33  ;;  %v1582_v26 = vsel %vm1581_vm12, %v2071_v57, %v1578_v9  ;;  %v1596_v55 = vsub.f32 1.0, %v1595_v50  ;;  %vm1723_vm0 = vmor %vm1721_vm15, %vm1722_vm14 }
 0x5ab   :  { %v1610_v1 = vmul.f32 %v2079_v27, %v1568_v28  ;;  %v1718_v21 = vsub.f32 1.0, %v1717_v23  ;;  %v1587_v54 = vsel %vm1584_vm13, %v1586_v58, %v1582_v26 }
 0x5ac   :  { %2082 = vrcp.f32 %v3411_v41  ;;  %v1669_v47 = vpop.f32.mrf.mxu0  ;;  %v1609_v17 = vmul.f32 %v1587_v54, %v3376_v12  ;;  %v1597_v8 = vmul.f32 %v3404_v52, %v1596_v55  ;;  %v1740_v16 = vand.u32 2147483647, %v3411_v41 }
 0x5ad   :  { %v1719_v45 = vmul.f32 %v2075_v32, %v1718_v21  ;;  %v1670_v31 = vadd.f32 %v3391_v38, %v1669_v47  ;;  %v1742_v43 = vand.u32 2147483648, %v3411_v41  ;;  %vm1736_vm7 = vweird.f32 %v3411_v41 }
 0x5ae   :  { %v1611_v42 = vadd.f32 %v1610_v1, %v1609_v17  ;;  %v1598_v51 = vadd.f32 %v3404_v52, %v1597_v8  ;;  %vm1741_vm9 = vcmp.eq.f32.partialorder %v1740_v16, 8.507059e+37 }
 0x5af   :  { %v2081_v3 = vpop.eup %2080  ;;  %v1720_v34 = vadd.f32 %v2075_v32, %v1719_v45  ;;  %v1927_v59 = vmul.f32 -1.442695, %v1670_v31  ;;  %v1743_v25 = vor.u32 1.1754944e-38, %v1742_v43 }
 0x5b0   :  { %v1710_v56 = vadd.f32 1.0, %v2081_v3  ;;  %v1602_v18 = vsel %vm3429_vm4, %v3404_v52, %v1598_v51 }
 0x5b1   :  { %v1724_v49 = vsel %vm1723_vm0, %v2075_v32, %v1720_v34  ;;  %2084 = vpow2.f32 %v1927_v59  ;;  %v1607_v63 = vsel %vm1604_vm6, %v1606_v15, %v1602_v18 }
 0x5b2   :  { %v2083_v36 = vpop.eup %2082  ;;  %v1729_v30 = vsel %vm1726_vm1, %v1728_v62, %v1724_v49  ;;  %2086 = vrcp.f32 %v1710_v56  ;;  %v1757_v2 = vand.u32 2147483648, %v1710_v56  ;;  %v1755_v37 = vand.u32 2147483647, %v1710_v56 }
 0x5b3   :  { %1836 = vst [vmem:[#allocation10] sm:$0xff] %v1729_v30  ;;  %v1732_v12 = vmul.f32 %v2083_v36, %v3411_v41  ;;  %2088 = vtanh.f32 %v1611_v42  ;;  %vm1737_vm5 = vweird.f32 %v2083_v36  ;;  %vm1751_vm11 = vweird.f32 %v1710_v56 }
 0x5b4   :  { %v1672_v20 = vpop.f32.mrf.mxu0  ;;  %vm1738_vm8 = vmor %vm1736_vm7, %vm1737_vm5  ;;  %v1758_v33 = vor.u32 1.1754944e-38, %v1757_v2  ;;  %vm1756_vm13 = vcmp.eq.f32.partialorder %v1755_v37, 8.507059e+37 }
 0x5b5   :  { %v1733_v40 = vsub.f32 1.0, %v1732_v12  ;;  %v1673_v5 = vadd.f32 %v3391_v38, %v1672_v20 }
 0x5b7   :  { %v2085_v6 = vpop.eup %2084  ;;  %v1734_v11 = vmul.f32 %v2083_v36, %v1733_v40  ;;  %v1928_v14 = vmul.f32 -1.442695, %v1673_v5 }
 0x5b8   :  { %v2087_v57 = vpop.eup %2086  ;;  %v1711_v19 = vadd.f32 1.0, %v2085_v6 }
 0x5b9   :  { %v1735_v22 = vadd.f32 %v2083_v36, %v1734_v11  ;;  %v1747_v60 = vmul.f32 %v2087_v57, %v1710_v56  ;;  %2090 = vpow2.f32 %v1928_v14  ;;  %v2089_v24 = vpop.eup %2088  ;;  %vm1752_vm10 = vweird.f32 %v2087_v57 }
 0x5ba   :  { %2092 = vrcp.f32 %v1711_v19  ;;  %v1613_v35 = vmul.f32 %v2089_v24, %v1607_v63  ;;  %vm1753_vm12 = vmor %vm1751_vm11, %vm1752_vm10  ;;  %v1772_v41 = vand.u32 2147483648, %v1711_v19  ;;  %v1770_v21 = vand.u32 2147483647, %v1711_v19 }
 0x5bb   :  { %v1739_v29 = vsel %vm1738_vm8, %v2083_v36, %v1735_v22  ;;  %v1748_v0 = vsub.f32 1.0, %v1747_v60  ;;  %vm1766_vm15 = vweird.f32 %v1711_v19 }
 0x5bc   :  { %v1744_v39 = vsel %vm1741_vm9, %v1743_v25, %v1739_v29  ;;  %v1675_v46 = vpop.f32.mrf.mxu0  ;;  %1680 = vmatmul.f32.gmra.mxu0 %v1613_v35  ;;  %v1773_v45 = vor.u32 1.1754944e-38, %v1772_v41  ;;  %vm1771_vm1 = vcmp.eq.f32.partialorder %v1770_v21, 8.507059e+37 }
 0x5bd   :  { %1837 = vst [vmem:[#allocation10 + $0x8] sm:$0xff] %v1744_v39  ;;  %v1749_v52 = vmul.f32 %v2087_v57, %v1748_v0  ;;  %v1676_v53 = vadd.f32 %v3391_v38, %v1675_v46 }
 0x5bf   :  { %v2091_v32 = vpop.eup %2090  ;;  %v1750_v10 = vadd.f32 %v2087_v57, %v1749_v52  ;;  %v1929_v9 = vmul.f32 -1.442695, %v1676_v53 }
 0x5c0   :  { %v2093_v50 = vpop.eup %2092  ;;  %v1712_v58 = vadd.f32 1.0, %v2091_v32 }
 0x5c1   :  { %v1754_v4 = vsel %vm1753_vm12, %v2087_v57, %v1750_v10  ;;  %v1762_v23 = vmul.f32 %v2093_v50, %v1711_v19  ;;  %2094 = vpow2.f32 %v1929_v9  ;;  %vm1767_vm14 = vweird.f32 %v2093_v50 }
 0x5c2   :  { %v1759_v27 = vsel %vm1756_vm13, %v1758_v33, %v1754_v4  ;;  %2096 = vrcp.f32 %v1712_v58  ;;  %vm1768_vm0 = vmor %vm1766_vm15, %vm1767_vm14  ;;  %v1787_v8 = vand.u32 2147483648, %v1712_v58  ;;  %v1785_v62 = vand.u32 2147483647, %v1712_v58 }
 0x5c3   :  { %1838 = vst [vmem:[#allocation10 + $0x10] sm:$0xff] %v1759_v27  ;;  %v1763_v28 = vsub.f32 1.0, %v1762_v23  ;;  %vm1781_vm3 = vweird.f32 %v1712_v58 }
 0x5c4   :  { %v1678_v26 = vpop.f32.mrf.mxu0  ;;  %v1788_v30 = vor.u32 1.1754944e-38, %v1787_v8  ;;  %vm1786_vm5 = vcmp.eq.f32.partialorder %v1785_v62, 8.507059e+37 }
 0x5c5   :  { %v1764_v1 = vmul.f32 %v2093_v50, %v1763_v28  ;;  %v1679_v54 = vadd.f32 %v3391_v38, %v1678_v26 }
 0x5c7   :  { %v2095_v55 = vpop.eup %2094  ;;  %v1765_v13 = vadd.f32 %v2093_v50, %v1764_v1  ;;  %v1930_v7 = vmul.f32 -1.442695, %v1679_v54 }
 0x5c8   :  { %v2097_v47 = vpop.eup %2096  ;;  %v1713_v31 = vadd.f32 1.0, %v2095_v55 }
 0x5c9   :  { %v1769_v17 = vsel %vm1768_vm0, %v2093_v50, %v1765_v13  ;;  %v1777_v3 = vmul.f32 %v2097_v47, %v1712_v58  ;;  %2098 = vpow2.f32 %v1930_v7  ;;  %vm1782_vm2 = vweird.f32 %v2097_v47 }
 0x5ca   :  { %v1774_v34 = vsel %vm1771_vm1, %v1773_v45, %v1769_v17  ;;  %2100 = vrcp.f32 %v1713_v31  ;;  %vm1783_vm4 = vmor %vm1781_vm3, %vm1782_vm2  ;;  %v1802_v40 = vand.u32 2147483648, %v1713_v31  ;;  %v1800_v16 = vand.u32 2147483647, %v1713_v31 }
 0x5cb   :  { %1839 = vst [vmem:[#allocation10 + $0x18] sm:$0xff] %v1774_v34  ;;  %v1778_v59 = vsub.f32 1.0, %v1777_v3  ;;  %vm1796_vm7 = vweird.f32 %v1713_v31 }
 0x5cc   :  { %v1803_v6 = vor.u32 1.1754944e-38, %v1802_v40  ;;  %vm1801_vm9 = vcmp.eq.f32.partialorder %v1800_v16, 8.507059e+37 }
 0x5cd   :  { %v1779_v42 = vmul.f32 %v2097_v47, %v1778_v59 }
 0x5cf   :  { %v2099_v56 = vpop.eup %2098  ;;  %v1780_v49 = vadd.f32 %v2097_v47, %v1779_v42 }
 0x5d0   :  { %v2101_v36 = vpop.eup %2100  ;;  %v1714_v12 = vadd.f32 1.0, %v2099_v56 }
 0x5d1   :  { %v1784_v51 = vsel %vm1783_vm4, %v2097_v47, %v1780_v49  ;;  %v1792_v20 = vmul.f32 %v2101_v36, %v1713_v31  ;;  %vm1797_vm6 = vweird.f32 %v2101_v36 }
 0x5d2   :  { %v1789_v44 = vsel %vm1786_vm5, %v1788_v30, %v1784_v51  ;;  %2102 = vrcp.f32 %v1714_v12  ;;  %vm1798_vm8 = vmor %vm1796_vm7, %vm1797_vm6  ;;  %v1817_v19 = vand.u32 2147483648, %v1714_v12  ;;  %v1815_v22 = vand.u32 2147483647, %v1714_v12 }
 0x5d3   :  { %1840 = vst [vmem:[#allocation10 + $0x20] sm:$0xff] %v1789_v44  ;;  %v1793_v48 = vsub.f32 1.0, %v1792_v20  ;;  %vm1811_vm11 = vweird.f32 %v1714_v12 }
 0x5d4   :  { %v1818_v24 = vor.u32 1.1754944e-38, %v1817_v19  ;;  %vm1816_vm13 = vcmp.eq.f32.partialorder %v1815_v22, 8.507059e+37 }
 0x5d5   :  { %v1794_v5 = vmul.f32 %v2101_v36, %v1793_v48 }
 0x5d7   :  { %v1795_v43 = vadd.f32 %v2101_v36, %v1794_v5 }
 0x5d8   :  { %v2103_v61 = vpop.eup %2102 }
 0x5d9   :  { %v1799_v11 = vsel %vm1798_vm8, %v2101_v36, %v1795_v43  ;;  %v1807_v14 = vmul.f32 %v2103_v61, %v1714_v12  ;;  %vm1812_vm10 = vweird.f32 %v2103_v61 }
 0x5da   :  { %v1804_v18 = vsel %vm1801_vm9, %v1803_v6, %v1799_v11  ;;  %vm1813_vm12 = vmor %vm1811_vm11, %vm1812_vm10 }
 0x5db   :  { %1841 = vst [vmem:[#allocation10 + $0x28] sm:$0xff] %v1804_v18  ;;  %v1808_v57 = vsub.f32 1.0, %v1807_v14 }
 0x5dd   :  { %v1809_v15 = vmul.f32 %v2103_v61, %v1808_v57 }
 0x5df   :  { %v1810_v60 = vadd.f32 %v2103_v61, %v1809_v15 }
 0x5e1   :  { %v1814_v25 = vsel %vm1813_vm12, %v2103_v61, %v1810_v60 }
 0x5e2   :  { %v1819_v63 = vsel %vm1816_vm13, %v1818_v24, %v1814_v25 }
 0x5e3   :  { %1842 = vst [vmem:[#allocation10 + $0x30] sm:$0xff] %v1819_v63 }
 0x639   :  { %v1681_v29 = vpop.f32.mrf.mxu0 }
 0x63a   :  { %v1682_v0 = vadd.f32 %v3391_v38, %v1681_v29 }
 0x63c   :  { %v1931_v35 = vmul.f32 -1.442695, %v1682_v0 }
 0x63e   :  { %2104 = vpow2.f32 %v1931_v35 }
 0x644   :  { %v2105_v39 = vpop.eup %2104 }
 0x645   :  { %v1715_v2 = vadd.f32 1.0, %v2105_v39 }
 0x647   :  { %2106 = vrcp.f32 %v1715_v2  ;;  %v1832_v53 = vand.u32 2147483648, %v1715_v2  ;;  %v1830_v10 = vand.u32 2147483647, %v1715_v2  ;;  %vm1826_vm15 = vweird.f32 %v1715_v2 }
 0x649   :  { %v1833_v38 = vor.u32 1.1754944e-38, %v1832_v53  ;;  %vm1831_vm1 = vcmp.eq.f32.partialorder %v1830_v10, 8.507059e+37 }
 0x64d   :  { %v2107_v46 = vpop.eup %2106 }
 0x64e   :  { %v1822_v52 = vmul.f32 %v2107_v46, %v1715_v2  ;;  %vm1827_vm14 = vweird.f32 %v2107_v46 }
 0x64f   :  { %vm1828_vm0 = vmor %vm1826_vm15, %vm1827_vm14 }
 0x650   :  { %v1823_v37 = vsub.f32 1.0, %v1822_v52 }
 0x652   :  { %v1824_v32 = vmul.f32 %v2107_v46, %v1823_v37 }
 0x654   :  { %v1825_v9 = vadd.f32 %v2107_v46, %v1824_v32 }
 0x656   :  { %v1829_v50 = vsel %vm1828_vm0, %v2107_v46, %v1825_v9 }
 0x657   :  { %v1834_v33 = vsel %vm1831_vm1, %v1833_v38, %v1829_v50 }
 0x658   :  { %1843 = vst [vmem:[#allocation10 + $0x38] sm:$0xff] %v1834_v33 }
 0x659   :  { %1856 = dma.vmem_to_hbm [thread:$0]  %s1849_s7, 1024, %s1851_s10, [#allocation6], %s2279_s13, %s2279_s13, %s2280_s14  }
 0x65a   :  { %2272 = dma.done.wait [#allocation6], 1024  }
 0x65b   :  { %2273 = vsyncadd [#allocation6], 4294966272 }
 0x65c   :  { %1861 = vsyncpa [#allocation5], 1 }
 0x65d   :  { %1862 = vsyncpa [#allocation8], 1 }
 0x65e   :  { %1863 = vsyncpa [#allocation6], 1 }

</bundles_post_ra>
